<compile_context>
chip_gen: v5e
topology: v5e:2x2
jax: 0.10.0
libtpu: 0.0.40
codegen_flags: <defaults>
</compile_context>

<pallas_src>
import math
import functools

import jax
import jax.numpy as jnp
from jax import lax
from jax.experimental import pallas as pl
from jax.experimental.pallas import tpu as pltpu


# ---------------------------------------------------------------------------
# small helpers
# ---------------------------------------------------------------------------
def _round_up(x, m):
    return (x + m - 1) // m * m


def _pad_to(x, shape):
    pads = [(0, s - d) for d, s in zip(x.shape, shape)]
    if any(p[1] for p in pads):
        x = jnp.pad(x, pads)
    return x


_VMEM_LIMIT = None


def _vmem_limit_bytes():
    """Scoped-VMEM request ~= half of physical VMEM (64 MiB on v5e/v6e,
    32 MiB on v7x), conservative fallback if the query is unavailable."""
    global _VMEM_LIMIT
    if _VMEM_LIMIT is None:
        cap = 64 * 1024 * 1024
        try:
            cap = int(getattr(pltpu.get_tpu_info(), "vmem_capacity_bytes", cap))
        except Exception:
            pass
        _VMEM_LIMIT = int(min(96 * 1024 * 1024, max(32 * 1024 * 1024, cap // 2)))
    return _VMEM_LIMIT


def _cparams(sem):
    return pltpu.CompilerParams(dimension_semantics=sem,
                                vmem_limit_bytes=_vmem_limit_bytes())


def _layernorm(z, g, b, eps):
    mean = jnp.mean(z, axis=-1, keepdims=True)
    c = z - mean
    var = jnp.mean(c * c, axis=-1, keepdims=True)
    return c * lax.rsqrt(var + eps) * g + b


# ---------------------------------------------------------------------------
# Fused multi-head attention block (QKV proj + SDPA + out-proj + add + LN)
# ---------------------------------------------------------------------------
def _mha_kernel(x_ref, mem_ref, wq_ref, wk_ref, wv_ref, wo_ref,
                bq_ref, bk_ref, bv_ref, bo_ref, g_ref, beta_ref, o_ref,
                *, nhead, scale, eps):
    x = x_ref[...]                                           # (Lq, E) bf16
    mem = mem_ref[...]                                       # (Lk, E) bf16

    # Full-width projections (lane-dense, one big MXU op each), f32 results.
    q = jnp.dot(x, wq_ref[...], preferred_element_type=jnp.float32) + bq_ref[...]
    k = jnp.dot(mem, wk_ref[...], preferred_element_type=jnp.float32) + bk_ref[...]
    v = jnp.dot(mem, wv_ref[...], preferred_element_type=jnp.float32) + bv_ref[...]

    dh = q.shape[-1] // nhead
    out = None
    for h in range(nhead):                                   # static unroll
        sl = slice(h * dh, (h + 1) * dh)
        qh = q[:, sl].astype(jnp.bfloat16)                   # (Lq, Dh)
        kh = k[:, sl].astype(jnp.bfloat16)                   # (Lk, Dh)
        vh = v[:, sl].astype(jnp.bfloat16)                   # (Lk, Dh)

        s = jnp.einsum('qd,kd->qk', qh, kh,
                       preferred_element_type=jnp.float32) * scale
        m = jnp.max(s, axis=-1, keepdims=True)
        p = jnp.exp(s - m)
        p = p * pl.reciprocal(jnp.sum(p, axis=-1, keepdims=True), approx=True)

        oh = jnp.dot(p.astype(jnp.bfloat16), vh,
                     preferred_element_type=jnp.float32)      # (Lq, Dh)
        # Out-projection merged per head: wo stored as (H, Dh, E).
        part = jnp.dot(oh.astype(jnp.bfloat16), wo_ref[h],
                       preferred_element_type=jnp.float32)    # (Lq, E)
        out = part if out is None else out + part

    z = x.astype(jnp.float32) + out + bo_ref[...]
    o_ref[...] = _layernorm(z, g_ref[...], beta_ref[...], eps).astype(o_ref.dtype)


def mha_block(x, mem, ap, ln_g, ln_b, nhead, eps=1e-5):
    """x: (N, Lq, E) bf16 query/residual source; mem: (N, Lk, E) bf16 K/V source."""
    N, Lq, E = x.shape
    Lk = mem.shape[1]
    assert E % nhead == 0
    Dh = E // nhead
    scale = 1.0 / math.sqrt(Dh)
    kern = functools.partial(_mha_kernel, nhead=nhead, scale=scale, eps=eps)
    return pl.pallas_call(
        kern,
        out_shape=jax.ShapeDtypeStruct((N, Lq, E), x.dtype),
        grid=(N,),
        in_specs=[
            pl.BlockSpec((None, Lq, E), lambda n: (n, 0, 0)),    # x
            pl.BlockSpec((None, Lk, E), lambda n: (n, 0, 0)),    # mem
            pl.BlockSpec((E, E), lambda n: (0, 0)),              # wq
            pl.BlockSpec((E, E), lambda n: (0, 0)),              # wk
            pl.BlockSpec((E, E), lambda n: (0, 0)),              # wv
            pl.BlockSpec((nhead, Dh, E), lambda n: (0, 0, 0)),   # wo (H, Dh, E)
            pl.BlockSpec((1, E), lambda n: (0, 0)),              # bq
            pl.BlockSpec((1, E), lambda n: (0, 0)),              # bk
            pl.BlockSpec((1, E), lambda n: (0, 0)),              # bv
            pl.BlockSpec((1, E), lambda n: (0, 0)),              # bo
            pl.BlockSpec((1, E), lambda n: (0, 0)),              # ln gamma
            pl.BlockSpec((1, E), lambda n: (0, 0)),              # ln beta
        ],
        out_specs=pl.BlockSpec((None, Lq, E), lambda n: (n, 0, 0)),
        compiler_params=_cparams(("parallel",)),
    )(x, mem, ap["wq"], ap["wk"], ap["wv"], ap["wo"],
      ap["bq"], ap["bk"], ap["bv"], ap["bo"], ln_g, ln_b)


# ---------------------------------------------------------------------------
# Fused FFN block: LayerNorm(x + relu(x@w1+b1)@w2 + b2)
# ---------------------------------------------------------------------------
def _ffn_ln_kernel(x_ref, w1_ref, b1_ref, w2_ref, b2_ref, g_ref, beta_ref,
                   o_ref, *, eps):
    x = x_ref[...]                                            # (tm, E) bf16
    h = jnp.dot(x, w1_ref[...], preferred_element_type=jnp.float32) + b1_ref[...]
    h = jnp.maximum(h, 0.0)
    y = jnp.dot(h.astype(jnp.bfloat16), w2_ref[...],
                preferred_element_type=jnp.float32) + b2_ref[...]
    z = x.astype(jnp.float32) + y
    o_ref[...] = _layernorm(z, g_ref[...], beta_ref[...], eps).astype(o_ref.dtype)


def ffn_add_ln(x2d, w1, b1, w2, b2, gamma, beta, eps=1e-5):
    M, E = x2d.shape
    F = w1.shape[1]
    tm = min(256, _round_up(M, 16))
    Mp = _round_up(M, tm)
    x_p = _pad_to(x2d, (Mp, E))
    out = pl.pallas_call(
        functools.partial(_ffn_ln_kernel, eps=eps),
        out_shape=jax.ShapeDtypeStruct((Mp, E), x2d.dtype),
        grid=(Mp // tm,),
        in_specs=[pl.BlockSpec((tm, E), lambda i: (i, 0)),
                  pl.BlockSpec((E, F), lambda i: (0, 0)),
                  pl.BlockSpec((1, F), lambda i: (0, 0)),
                  pl.BlockSpec((F, E), lambda i: (0, 0)),
                  pl.BlockSpec((1, E), lambda i: (0, 0)),
                  pl.BlockSpec((1, E), lambda i: (0, 0)),
                  pl.BlockSpec((1, E), lambda i: (0, 0))],
        out_specs=pl.BlockSpec((tm, E), lambda i: (i, 0)),
        compiler_params=_cparams(("parallel",)),
    )(x_p, w1, b1, w2, b2, gamma, beta)
    return out[:M] if Mp != M else out


# ---------------------------------------------------------------------------
# Tiled matmul (final vocab projection): bf16 operands, f32 accumulate
# ---------------------------------------------------------------------------
def _linear_kernel(x_ref, w_ref, b_ref, o_ref, acc_ref):
    @pl.when(pl.program_id(2) == 0)
    def _():
        acc_ref[...] = jnp.zeros_like(acc_ref)

    acc_ref[...] += jnp.dot(x_ref[...], w_ref[...],
                            preferred_element_type=jnp.float32)

    @pl.when(pl.program_id(2) == pl.num_programs(2) - 1)
    def _():
        o_ref[...] = (acc_ref[...] + b_ref[...]).astype(o_ref.dtype)


def linear(x2d, w, b, out_dtype=jnp.float32):
    """x2d: (M, K) bf16, w: (K, N) bf16, b: (1, N) f32 -> (M, N) out_dtype."""
    M, K = x2d.shape
    Kw, N = w.shape
    assert K == Kw
    tm = min(256, _round_up(M, 16))
    tk = K if K <= 1024 else 512
    tn = N if N <= 1024 else 512
    Mp, Kp, Np = _round_up(M, tm), _round_up(K, tk), _round_up(N, tn)

    xp = _pad_to(x2d, (Mp, Kp))
    wp = _pad_to(w, (Kp, Np))
    bp = _pad_to(b, (1, Np))

    out = pl.pallas_call(
        _linear_kernel,
        out_shape=jax.ShapeDtypeStruct((Mp, Np), out_dtype),
        grid=(Mp // tm, Np // tn, Kp // tk),
        in_specs=[pl.BlockSpec((tm, tk), lambda i, j, k: (i, k)),
                  pl.BlockSpec((tk, tn), lambda i, j, k: (k, j)),
                  pl.BlockSpec((1, tn), lambda i, j, k: (0, j))],
        out_specs=pl.BlockSpec((tm, tn), lambda i, j, k: (i, j)),
        scratch_shapes=[pltpu.VMEM((tm, tn), jnp.float32)],
        compiler_params=_cparams(("parallel", "parallel", "arbitrary")),
    )(xp, wp, bp)
    if (Mp, Np) != (M, N):
        out = out[:M, :N]
    return out


# ---------------------------------------------------------------------------
# Model (internal batch-major layout)
# ---------------------------------------------------------------------------
def decoder_layer(x, memory, p, nhead):
    """nn.TransformerDecoderLayer, norm_first=False, relu, no masks, eval.
    x: (N, L, E) bf16; memory: (N, Lm, E) bf16."""
    x = mha_block(x, x, p["self_attn"], p["ln1_g"], p["ln1_b"], nhead)
    x = mha_block(x, memory, p["cross_attn"], p["ln2_g"], p["ln2_b"], nhead)
    N, L, E = x.shape
    x2d = ffn_add_ln(x.reshape(N * L, E), p["w1"], p["b1"], p["w2"], p["b2"],
                     p["ln3_g"], p["ln3_b"])
    return x2d.reshape(N, L, E)


def transformer_forward(tgt_ids, memory, params, nhead):
    """tgt_ids: (A0, A1) int32 token ids; memory: (Lm, A1, E) f32.
    Returns (A0, A1, vocab) f32 logits (same convention as the reference)."""
    A0, A1 = tgt_ids.shape
    # Embedding gathered directly into the batch-major internal layout.
    emb = jnp.take(params["embedding"], tgt_ids.T, axis=0)         # (A1, A0, E)
    # Reference adds PE sliced by tgt.size(1) (dim 1 of the id tensor),
    # broadcast over dim 0 — reproduced verbatim in the transposed layout.
    x = emb + params["pos_enc"][0, :A1, None, :]
    x = x.astype(jnp.bfloat16)
    mem = jnp.transpose(memory, (1, 0, 2)).astype(jnp.bfloat16)    # (N, Lm, E)

    for lp in params["layers"]:
        x = decoder_layer(x, mem, lp, nhead)

    N, L, E = x.shape
    out = linear(x.reshape(N * L, E), params["fc_w"], params["fc_b"])
    V = out.shape[-1]
    return jnp.transpose(out.reshape(N, L, V), (1, 0, 2))          # (A0, A1, V)


# ---------------------------------------------------------------------------
# Deterministic parameter construction (weights stored bf16, stats in f32)
# ---------------------------------------------------------------------------
def make_positional_encoding(max_len, d_model):
    pos = jnp.arange(max_len, dtype=jnp.float32)[:, None]
    div = jnp.exp(jnp.arange(0, d_model, 2, dtype=jnp.float32)
                  * (-math.log(10000.0) / d_model))
    pe = jnp.zeros((max_len, d_model), jnp.float32)
    pe = pe.at[:, 0::2].set(jnp.sin(pos * div))
    pe = pe.at[:, 1::2].set(jnp.cos(pos * div))
    return pe[None]                                                # (1, max_len, E)


def make_params(key, vocab_size, d_model, nhead, num_layers, max_len, dim_ff):
    dh = d_model // nhead

    def dense(k, shape, scale=0.02):
        return (scale * jax.random.normal(k, shape, jnp.float32)).astype(jnp.bfloat16)

    def zeros(shape):
        return jnp.zeros(shape, jnp.float32)

    keys = jax.random.split(key, 3 + num_layers)
    params = {
        "embedding": jax.random.normal(keys[0], (vocab_size, d_model), jnp.float32),
        "pos_enc": make_positional_encoding(max_len, d_model),
        "fc_w": dense(keys[1], (d_model, vocab_size)),
        "fc_b": zeros((1, vocab_size)),
        "layers": [],
    }

    def attn_params(k):
        ks = jax.random.split(k, 4)
        return {"wq": dense(ks[0], (d_model, d_model)),
                "wk": dense(ks[1], (d_model, d_model)),
                "wv": dense(ks[2], (d_model, d_model)),
                # out-projection stored pre-reshaped per head: (H, Dh, E)
                "wo": dense(ks[3], (d_model, d_model)).reshape(nhead, dh, d_model),
                "bq": zeros((1, d_model)), "bk": zeros((1, d_model)),
                "bv": zeros((1, d_model)), "bo": zeros((1, d_model))}

    for li in range(num_layers):
        ks = jax.random.split(keys[3 + li], 4)
        params["layers"].append({
            "self_attn": attn_params(ks[0]),
            "cross_attn": attn_params(ks[1]),
            "w1": dense(ks[2], (d_model, dim_ff)),
            "b1": zeros((1, dim_ff)),
            "w2": dense(ks[3], (dim_ff, d_model)),
            "b2": zeros((1, d_model)),
            "ln1_g": jnp.ones((1, d_model), jnp.float32), "ln1_b": zeros((1, d_model)),
            "ln2_g": jnp.ones((1, d_model), jnp.float32), "ln2_b": zeros((1, d_model)),
            "ln3_g": jnp.ones((1, d_model), jnp.float32), "ln3_b": zeros((1, d_model)),
        })
    return params


# ---------------------------------------------------------------------------
if __name__ == "__main__":
    vocab_size = 64
    d_model = 32
    nhead = 4
    num_layers = 2
    max_len = 64
    dim_ff = 64          # (PyTorch default is 2048; scaled down with d_model)

    A0, A1 = 2, 8        # tgt token-id shape (decoder sees L=A0, batch=A1)
    Lm = 4               # memory length

    root = jax.random.PRNGKey(0)
    k_par, k_tgt, k_mem = jax.random.split(root, 3)

    params = make_params(k_par, vocab_size, d_model, nhead,
                         num_layers, max_len, dim_ff)

    tgt = jax.random.randint(k_tgt, (A0, A1), 0, vocab_size, dtype=jnp.int32)
    memory = jax.random.normal(k_mem, (Lm, A1, d_model), jnp.float32)

    fwd = jax.jit(transformer_forward, static_argnames=("nhead",))
    out = fwd(tgt, memory, params, nhead=nhead)
    jax.block_until_ready(out)

    assert out.shape == (A0, A1, vocab_size), out.shape
    assert bool(jnp.all(jnp.isfinite(out)))
    print("KERNEL_OK")
</pallas_src>

<mosaic_0001>
module attributes {stable_mosaic.version = 11 : i64} {
  func.func @_ffn_ln_kernel(%arg0: i32, %arg1: memref<16x32xbf16, #tpu.memory_space<vmem>>, %arg2: memref<32x64xbf16, #tpu.memory_space<vmem>>, %arg3: memref<1x64xf32, #tpu.memory_space<vmem>>, %arg4: memref<64x32xbf16, #tpu.memory_space<vmem>>, %arg5: memref<1x32xf32, #tpu.memory_space<vmem>>, %arg6: memref<1x32xf32, #tpu.memory_space<vmem>>, %arg7: memref<1x32xf32, #tpu.memory_space<vmem>>, %arg8: memref<16x32xbf16, #tpu.memory_space<vmem>>) attributes {dimension_semantics = [#tpu.dimension_semantics<parallel>], iteration_bounds = array<i64: 1>, scalar_prefetch = 0 : i64, scratch_operands = 0 : i64, tpu.core_type = #tpu.core_type<tc>, window_params = [{transform_indices = @transform_0, window_bounds = array<i64: 16, 32>}, {pipeline_mode = #tpu.pipeline_mode<synchronous>, transform_indices = @transform_1, window_bounds = array<i64: 32, 64>}, {pipeline_mode = #tpu.pipeline_mode<synchronous>, transform_indices = @transform_2, window_bounds = array<i64: 1, 64>}, {pipeline_mode = #tpu.pipeline_mode<synchronous>, transform_indices = @transform_3, window_bounds = array<i64: 64, 32>}, {pipeline_mode = #tpu.pipeline_mode<synchronous>, transform_indices = @transform_4, window_bounds = array<i64: 1, 32>}, {pipeline_mode = #tpu.pipeline_mode<synchronous>, transform_indices = @transform_5, window_bounds = array<i64: 1, 32>}, {pipeline_mode = #tpu.pipeline_mode<synchronous>, transform_indices = @transform_6, window_bounds = array<i64: 1, 32>}, {transform_indices = @transform_7, window_bounds = array<i64: 16, 32>}]} {
    %c0 = arith.constant 0 : index
    %c0_0 = arith.constant 0 : index
    %0 = vector.load %arg1[%c0, %c0_0] : memref<16x32xbf16, #tpu.memory_space<vmem>>, vector<16x32xbf16>
    %c0_1 = arith.constant 0 : index
    %c0_2 = arith.constant 0 : index
    %1 = vector.load %arg2[%c0_1, %c0_2] : memref<32x64xbf16, #tpu.memory_space<vmem>>, vector<32x64xbf16>
    %cst = arith.constant dense<0.000000e+00> : vector<16x64xf32>
    %2 = tpu.matmul %0, %1, %cst {dimension_numbers = #tpu.dot_dimension_numbers<[1], [0], [0], [1], [0, 0, 1, 1], [], []>} : vector<16x32xbf16>, vector<32x64xbf16>, vector<16x64xf32> -> vector<16x64xf32>
    %c0_3 = arith.constant 0 : index
    %c0_4 = arith.constant 0 : index
    %3 = vector.load %arg3[%c0_3, %c0_4] : memref<1x64xf32, #tpu.memory_space<vmem>>, vector<1x64xf32>
    %4 = vector.broadcast %3 : vector<1x64xf32> to vector<16x64xf32>
    %5 = arith.addf %2, %4 : vector<16x64xf32>
    %cst_5 = arith.constant 0.000000e+00 : f32
    %6 = vector.broadcast %cst_5 : f32 to vector<16x64xf32>
    %7 = arith.maximumf %5, %6 : vector<16x64xf32>
    %8 = arith.truncf %7 : vector<16x64xf32> to vector<16x64xbf16>
    %c0_6 = arith.constant 0 : index
    %c0_7 = arith.constant 0 : index
    %9 = vector.load %arg4[%c0_6, %c0_7] : memref<64x32xbf16, #tpu.memory_space<vmem>>, vector<64x32xbf16>
    %cst_8 = arith.constant dense<0.000000e+00> : vector<16x32xf32>
    %10 = tpu.matmul %8, %9, %cst_8 {dimension_numbers = #tpu.dot_dimension_numbers<[1], [0], [0], [1], [0, 0, 1, 1], [], []>} : vector<16x64xbf16>, vector<64x32xbf16>, vector<16x32xf32> -> vector<16x32xf32>
    %c0_9 = arith.constant 0 : index
    %c0_10 = arith.constant 0 : index
    %11 = vector.load %arg5[%c0_9, %c0_10] : memref<1x32xf32, #tpu.memory_space<vmem>>, vector<1x32xf32>
    %12 = vector.broadcast %11 : vector<1x32xf32> to vector<16x32xf32>
    %13 = arith.addf %10, %12 : vector<16x32xf32>
    %14 = arith.extf %0 : vector<16x32xbf16> to vector<16x32xf32>
    %15 = arith.addf %14, %13 : vector<16x32xf32>
    %c0_11 = arith.constant 0 : index
    %c0_12 = arith.constant 0 : index
    %16 = vector.load %arg6[%c0_11, %c0_12] : memref<1x32xf32, #tpu.memory_space<vmem>>, vector<1x32xf32>
    %c0_13 = arith.constant 0 : index
    %c0_14 = arith.constant 0 : index
    %17 = vector.load %arg7[%c0_13, %c0_14] : memref<1x32xf32, #tpu.memory_space<vmem>>, vector<1x32xf32>
    %cst_15 = arith.constant dense<0.000000e+00> : vector<16xf32>
    %18 = vector.multi_reduction <add>, %15, %cst_15 [1] : vector<16x32xf32> to vector<16xf32>
    %19 = vector.shape_cast %18 : vector<16xf32> to vector<16x1xf32>
    %cst_16 = arith.constant 3.200000e+01 : f32
    %20 = vector.broadcast %cst_16 : f32 to vector<16x1xf32>
    %21 = arith.divf %19, %20 : vector<16x1xf32>
    %22 = vector.broadcast %21 : vector<16x1xf32> to vector<16x32xf32>
    %23 = arith.subf %15, %22 : vector<16x32xf32>
    %24 = arith.mulf %23, %23 : vector<16x32xf32>
    %cst_17 = arith.constant dense<0.000000e+00> : vector<16xf32>
    %25 = vector.multi_reduction <add>, %24, %cst_17 [1] : vector<16x32xf32> to vector<16xf32>
    %26 = vector.shape_cast %25 : vector<16xf32> to vector<16x1xf32>
    %cst_18 = arith.constant 3.200000e+01 : f32
    %27 = vector.broadcast %cst_18 : f32 to vector<16x1xf32>
    %28 = arith.divf %26, %27 : vector<16x1xf32>
    %cst_19 = arith.constant 9.99999974E-6 : f32
    %29 = vector.broadcast %cst_19 : f32 to vector<16x1xf32>
    %30 = arith.addf %28, %29 : vector<16x1xf32>
    %31 = math.rsqrt %30 : vector<16x1xf32>
    %32 = vector.broadcast %31 : vector<16x1xf32> to vector<16x32xf32>
    %33 = arith.mulf %23, %32 : vector<16x32xf32>
    %34 = vector.broadcast %16 : vector<1x32xf32> to vector<16x32xf32>
    %35 = arith.mulf %33, %34 : vector<16x32xf32>
    %36 = vector.broadcast %17 : vector<1x32xf32> to vector<16x32xf32>
    %37 = arith.addf %35, %36 : vector<16x32xf32>
    %38 = arith.truncf %37 : vector<16x32xf32> to vector<16x32xbf16>
    %c0_20 = arith.constant 0 : index
    %c0_21 = arith.constant 0 : index
    %39 = vector.load %arg8[%c0_20, %c0_21] : memref<16x32xbf16, #tpu.memory_space<vmem>>, vector<16x32xbf16>
    tpu.vector_store %arg8[%c0_20, %c0_21], %38 {strides = array<i32>} : memref<16x32xbf16, #tpu.memory_space<vmem>>, vector<16x32xbf16>,
    return
  }
  func.func @transform_0(%arg0: i32) -> (i32, i32) {
    %c0_i32 = arith.constant 0 : i32
    %c0_i32_0 = arith.constant 0 : i32
    return %arg0, %c0_i32 : i32, i32
  }
  func.func @transform_1(%arg0: i32) -> (i32, i32) {
    %c0_i32 = arith.constant 0 : i32
    %c0_i32_0 = arith.constant 0 : i32
    %c0_i32_1 = arith.constant 0 : i32
    return %c0_i32, %c0_i32_0 : i32, i32
  }
  func.func @transform_2(%arg0: i32) -> (i32, i32) {
    %c0_i32 = arith.constant 0 : i32
    %c0_i32_0 = arith.constant 0 : i32
    %c0_i32_1 = arith.constant 0 : i32
    return %c0_i32, %c0_i32_0 : i32, i32
  }
  func.func @transform_3(%arg0: i32) -> (i32, i32) {
    %c0_i32 = arith.constant 0 : i32
    %c0_i32_0 = arith.constant 0 : i32
    %c0_i32_1 = arith.constant 0 : i32
    return %c0_i32, %c0_i32_0 : i32, i32
  }
  func.func @transform_4(%arg0: i32) -> (i32, i32) {
    %c0_i32 = arith.constant 0 : i32
    %c0_i32_0 = arith.constant 0 : i32
    %c0_i32_1 = arith.constant 0 : i32
    return %c0_i32, %c0_i32_0 : i32, i32
  }
  func.func @transform_5(%arg0: i32) -> (i32, i32) {
    %c0_i32 = arith.constant 0 : i32
    %c0_i32_0 = arith.constant 0 : i32
    %c0_i32_1 = arith.constant 0 : i32
    return %c0_i32, %c0_i32_0 : i32, i32
  }
  func.func @transform_6(%arg0: i32) -> (i32, i32) {
    %c0_i32 = arith.constant 0 : i32
    %c0_i32_0 = arith.constant 0 : i32
    %c0_i32_1 = arith.constant 0 : i32
    return %c0_i32, %c0_i32_0 : i32, i32
  }
  func.func @transform_7(%arg0: i32) -> (i32, i32) {
    %c0_i32 = arith.constant 0 : i32
    %c0_i32_0 = arith.constant 0 : i32
    return %arg0, %c0_i32 : i32, i32
  }
}

module attributes {stable_mosaic.version = 11 : i64} {
  func.func @_mha_kernel(%arg0: i32, %arg1: memref<1x2x32xbf16, #tpu.memory_space<vmem>>, %arg2: memref<1x2x32xbf16, #tpu.memory_space<vmem>>, %arg3: memref<32x32xbf16, #tpu.memory_space<vmem>>, %arg4: memref<32x32xbf16, #tpu.memory_space<vmem>>, %arg5: memref<32x32xbf16, #tpu.memory_space<vmem>>, %arg6: memref<4x8x32xbf16, #tpu.memory_space<vmem>>, %arg7: memref<1x32xf32, #tpu.memory_space<vmem>>, %arg8: memref<1x32xf32, #tpu.memory_space<vmem>>, %arg9: memref<1x32xf32, #tpu.memory_space<vmem>>, %arg10: memref<1x32xf32, #tpu.memory_space<vmem>>, %arg11: memref<1x32xf32, #tpu.memory_space<vmem>>, %arg12: memref<1x32xf32, #tpu.memory_space<vmem>>, %arg13: memref<1x2x32xbf16, #tpu.memory_space<vmem>>) attributes {dimension_semantics = [#tpu.dimension_semantics<parallel>], iteration_bounds = array<i64: 8>, scalar_prefetch = 0 : i64, scratch_operands = 0 : i64, tpu.core_type = #tpu.core_type<tc>, window_params = [{transform_indices = @transform_0, window_bounds = array<i64: 1, 2, 32>}, {transform_indices = @transform_1, window_bounds = array<i64: 1, 2, 32>}, {pipeline_mode = #tpu.pipeline_mode<synchronous>, transform_indices = @transform_2, window_bounds = array<i64: 32, 32>}, {pipeline_mode = #tpu.pipeline_mode<synchronous>, transform_indices = @transform_3, window_bounds = array<i64: 32, 32>}, {pipeline_mode = #tpu.pipeline_mode<synchronous>, transform_indices = @transform_4, window_bounds = array<i64: 32, 32>}, {pipeline_mode = #tpu.pipeline_mode<synchronous>, transform_indices = @transform_5, window_bounds = array<i64: 4, 8, 32>}, {pipeline_mode = #tpu.pipeline_mode<synchronous>, transform_indices = @transform_6, window_bounds = array<i64: 1, 32>}, {pipeline_mode = #tpu.pipeline_mode<synchronous>, transform_indices = @transform_7, window_bounds = array<i64: 1, 32>}, {pipeline_mode = #tpu.pipeline_mode<synchronous>, transform_indices = @transform_8, window_bounds = array<i64: 1, 32>}, {pipeline_mode = #tpu.pipeline_mode<synchronous>, transform_indices = @transform_9, window_bounds = array<i64: 1, 32>}, {pipeline_mode = #tpu.pipeline_mode<synchronous>, transform_indices = @transform_10, window_bounds = array<i64: 1, 32>}, {pipeline_mode = #tpu.pipeline_mode<synchronous>, transform_indices = @transform_11, window_bounds = array<i64: 1, 32>}, {transform_indices = @transform_12, window_bounds = array<i64: 1, 2, 32>}]} {
    %c0 = arith.constant 0 : index
    %c0_0 = arith.constant 0 : index
    %c0_1 = arith.constant 0 : index
    %0 = vector.load %arg1[%c0, %c0_0, %c0_1] : memref<1x2x32xbf16, #tpu.memory_space<vmem>>, vector<1x2x32xbf16>
    %1 = vector.shape_cast %0 : vector<1x2x32xbf16> to vector<2x32xbf16>
    %c0_2 = arith.constant 0 : index
    %c0_3 = arith.constant 0 : index
    %c0_4 = arith.constant 0 : index
    %2 = vector.load %arg2[%c0_2, %c0_3, %c0_4] : memref<1x2x32xbf16, #tpu.memory_space<vmem>>, vector<1x2x32xbf16>
    %3 = vector.shape_cast %2 : vector<1x2x32xbf16> to vector<2x32xbf16>
    %c0_5 = arith.constant 0 : index
    %c0_6 = arith.constant 0 : index
    %4 = vector.load %arg3[%c0_5, %c0_6] : memref<32x32xbf16, #tpu.memory_space<vmem>>, vector<32x32xbf16>
    %cst = arith.constant dense<0.000000e+00> : vector<2x32xf32>
    %5 = tpu.matmul %1, %4, %cst {dimension_numbers = #tpu.dot_dimension_numbers<[1], [0], [0], [1], [0, 0, 1, 1], [], []>} : vector<2x32xbf16>, vector<32x32xbf16>, vector<2x32xf32> -> vector<2x32xf32>
    %c0_7 = arith.constant 0 : index
    %c0_8 = arith.constant 0 : index
    %6 = vector.load %arg7[%c0_7, %c0_8] : memref<1x32xf32, #tpu.memory_space<vmem>>, vector<1x32xf32>
    %7 = vector.broadcast %6 : vector<1x32xf32> to vector<2x32xf32>
    %8 = arith.addf %5, %7 : vector<2x32xf32>
    %c0_9 = arith.constant 0 : index
    %c0_10 = arith.constant 0 : index
    %9 = vector.load %arg4[%c0_9, %c0_10] : memref<32x32xbf16, #tpu.memory_space<vmem>>, vector<32x32xbf16>
    %cst_11 = arith.constant dense<0.000000e+00> : vector<2x32xf32>
    %10 = tpu.matmul %3, %9, %cst_11 {dimension_numbers = #tpu.dot_dimension_numbers<[1], [0], [0], [1], [0, 0, 1, 1], [], []>} : vector<2x32xbf16>, vector<32x32xbf16>, vector<2x32xf32> -> vector<2x32xf32>
    %c0_12 = arith.constant 0 : index
    %c0_13 = arith.constant 0 : index
    %11 = vector.load %arg8[%c0_12, %c0_13] : memref<1x32xf32, #tpu.memory_space<vmem>>, vector<1x32xf32>
    %12 = vector.broadcast %11 : vector<1x32xf32> to vector<2x32xf32>
    %13 = arith.addf %10, %12 : vector<2x32xf32>
    %c0_14 = arith.constant 0 : index
    %c0_15 = arith.constant 0 : index
    %14 = vector.load %arg5[%c0_14, %c0_15] : memref<32x32xbf16, #tpu.memory_space<vmem>>, vector<32x32xbf16>
    %cst_16 = arith.constant dense<0.000000e+00> : vector<2x32xf32>
    %15 = tpu.matmul %3, %14, %cst_16 {dimension_numbers = #tpu.dot_dimension_numbers<[1], [0], [0], [1], [0, 0, 1, 1], [], []>} : vector<2x32xbf16>, vector<32x32xbf16>, vector<2x32xf32> -> vector<2x32xf32>
    %c0_17 = arith.constant 0 : index
    %c0_18 = arith.constant 0 : index
    %16 = vector.load %arg9[%c0_17, %c0_18] : memref<1x32xf32, #tpu.memory_space<vmem>>, vector<1x32xf32>
    %17 = vector.broadcast %16 : vector<1x32xf32> to vector<2x32xf32>
    %18 = arith.addf %15, %17 : vector<2x32xf32>
    %19 = vector.extract_strided_slice %8 {offsets = [0, 0], sizes = [2, 8], strides = [1, 1]} : vector<2x32xf32> to vector<2x8xf32>
    %20 = arith.truncf %19 : vector<2x8xf32> to vector<2x8xbf16>
    %21 = vector.extract_strided_slice %13 {offsets = [0, 0], sizes = [2, 8], strides = [1, 1]} : vector<2x32xf32> to vector<2x8xf32>
    %22 = arith.truncf %21 : vector<2x8xf32> to vector<2x8xbf16>
    %23 = vector.extract_strided_slice %18 {offsets = [0, 0], sizes = [2, 8], strides = [1, 1]} : vector<2x32xf32> to vector<2x8xf32>
    %24 = arith.truncf %23 : vector<2x8xf32> to vector<2x8xbf16>
    "tpu.trace_start"() <{level = 10 : i32, message = "qd,kd->qk"}> : () -> ()
    %cst_19 = arith.constant dense<0.000000e+00> : vector<2x2xf32>
    %25 = tpu.matmul %20, %22, %cst_19 {dimension_numbers = #tpu.dot_dimension_numbers<[1], [1], [0], [0], [0, 0, 1, 0], [], []>} : vector<2x8xbf16>, vector<2x8xbf16>, vector<2x2xf32> -> vector<2x2xf32>
    "tpu.trace_stop"() : () -> ()
    %cst_20 = arith.constant 0.353553385 : f32
    %26 = vector.broadcast %cst_20 : f32 to vector<2x2xf32>
    %27 = arith.mulf %25, %26 : vector<2x2xf32>
    %cst_21 = arith.constant dense<0xFF800000> : vector<2xf32>
    %28 = vector.multi_reduction <maximumf>, %27, %cst_21 [1] : vector<2x2xf32> to vector<2xf32>
    %29 = vector.shape_cast %28 : vector<2xf32> to vector<2x1xf32>
    %30 = vector.broadcast %29 : vector<2x1xf32> to vector<2x2xf32>
    %31 = arith.subf %27, %30 : vector<2x2xf32>
    %32 = math.exp %31 : vector<2x2xf32>
    %cst_22 = arith.constant dense<0.000000e+00> : vector<2xf32>
    %33 = vector.multi_reduction <add>, %32, %cst_22 [1] : vector<2x2xf32> to vector<2xf32>
    %34 = vector.shape_cast %33 : vector<2xf32> to vector<2x1xf32>
    %35 = tpu.reciprocal %34 {approx = true} : vector<2x1xf32> -> vector<2x1xf32>
    %36 = vector.broadcast %35 : vector<2x1xf32> to vector<2x2xf32>
    %37 = arith.mulf %32, %36 : vector<2x2xf32>
    %38 = arith.truncf %37 : vector<2x2xf32> to vector<2x2xbf16>
    %cst_23 = arith.constant dense<0.000000e+00> : vector<2x8xf32>
    %39 = tpu.matmul %38, %24, %cst_23 {dimension_numbers = #tpu.dot_dimension_numbers<[1], [0], [0], [1], [0, 0, 1, 1], [], []>} : vector<2x2xbf16>, vector<2x8xbf16>, vector<2x8xf32> -> vector<2x8xf32>
    %40 = arith.truncf %39 : vector<2x8xf32> to vector<2x8xbf16>
    %c0_24 = arith.constant 0 : index
    %c0_25 = arith.constant 0 : index
    %c0_26 = arith.constant 0 : index
    %41 = vector.load %arg6[%c0_24, %c0_25, %c0_26] : memref<4x8x32xbf16, #tpu.memory_space<vmem>>, vector<1x8x32xbf16>
    %42 = vector.shape_cast %41 : vector<1x8x32xbf16> to vector<8x32xbf16>
    %cst_27 = arith.constant dense<0.000000e+00> : vector<2x32xf32>
    %43 = tpu.matmul %40, %42, %cst_27 {dimension_numbers = #tpu.dot_dimension_numbers<[1], [0], [0], [1], [0, 0, 1, 1], [], []>} : vector<2x8xbf16>, vector<8x32xbf16>, vector<2x32xf32> -> vector<2x32xf32>
    %44 = vector.extract_strided_slice %8 {offsets = [0, 8], sizes = [2, 8], strides = [1, 1]} : vector<2x32xf32> to vector<2x8xf32>
    %45 = arith.truncf %44 : vector<2x8xf32> to vector<2x8xbf16>
    %46 = vector.extract_strided_slice %13 {offsets = [0, 8], sizes = [2, 8], strides = [1, 1]} : vector<2x32xf32> to vector<2x8xf32>
    %47 = arith.truncf %46 : vector<2x8xf32> to vector<2x8xbf16>
    %48 = vector.extract_strided_slice %18 {offsets = [0, 8], sizes = [2, 8], strides = [1, 1]} : vector<2x32xf32> to vector<2x8xf32>
    %49 = arith.truncf %48 : vector<2x8xf32> to vector<2x8xbf16>
    "tpu.trace_start"() <{level = 10 : i32, message = "qd,kd->qk"}> : () -> ()
    %cst_28 = arith.constant dense<0.000000e+00> : vector<2x2xf32>
    %50 = tpu.matmul %45, %47, %cst_28 {dimension_numbers = #tpu.dot_dimension_numbers<[1], [1], [0], [0], [0, 0, 1, 0], [], []>} : vector<2x8xbf16>, vector<2x8xbf16>, vector<2x2xf32> -> vector<2x2xf32>
    "tpu.trace_stop"() : () -> ()
    %cst_29 = arith.constant 0.353553385 : f32
    %51 = vector.broadcast %cst_29 : f32 to vector<2x2xf32>
    %52 = arith.mulf %50, %51 : vector<2x2xf32>
    %cst_30 = arith.constant dense<0xFF800000> : vector<2xf32>
    %53 = vector.multi_reduction <maximumf>, %52, %cst_30 [1] : vector<2x2xf32> to vector<2xf32>
    %54 = vector.shape_cast %53 : vector<2xf32> to vector<2x1xf32>
    %55 = vector.broadcast %54 : vector<2x1xf32> to vector<2x2xf32>
    %56 = arith.subf %52, %55 : vector<2x2xf32>
    %57 = math.exp %56 : vector<2x2xf32>
    %cst_31 = arith.constant dense<0.000000e+00> : vector<2xf32>
    %58 = vector.multi_reduction <add>, %57, %cst_31 [1] : vector<2x2xf32> to vector<2xf32>
    %59 = vector.shape_cast %58 : vector<2xf32> to vector<2x1xf32>
    %60 = tpu.reciprocal %59 {approx = true} : vector<2x1xf32> -> vector<2x1xf32>
    %61 = vector.broadcast %60 : vector<2x1xf32> to vector<2x2xf32>
    %62 = arith.mulf %57, %61 : vector<2x2xf32>
    %63 = arith.truncf %62 : vector<2x2xf32> to vector<2x2xbf16>
    %cst_32 = arith.constant dense<0.000000e+00> : vector<2x8xf32>
    %64 = tpu.matmul %63, %49, %cst_32 {dimension_numbers = #tpu.dot_dimension_numbers<[1], [0], [0], [1], [0, 0, 1, 1], [], []>} : vector<2x2xbf16>, vector<2x8xbf16>, vector<2x8xf32> -> vector<2x8xf32>
    %65 = arith.truncf %64 : vector<2x8xf32> to vector<2x8xbf16>
    %c1 = arith.constant 1 : index
    %c0_33 = arith.constant 0 : index
    %c0_34 = arith.constant 0 : index
    %66 = vector.load %arg6[%c1, %c0_33, %c0_34] : memref<4x8x32xbf16, #tpu.memory_space<vmem>>, vector<1x8x32xbf16>
    %67 = vector.shape_cast %66 : vector<1x8x32xbf16> to vector<8x32xbf16>
    %cst_35 = arith.constant dense<0.000000e+00> : vector<2x32xf32>
    %68 = tpu.matmul %65, %67, %cst_35 {dimension_numbers = #tpu.dot_dimension_numbers<[1], [0], [0], [1], [0, 0, 1, 1], [], []>} : vector<2x8xbf16>, vector<8x32xbf16>, vector<2x32xf32> -> vector<2x32xf32>
    %69 = arith.addf %43, %68 : vector<2x32xf32>
    %70 = vector.extract_strided_slice %8 {offsets = [0, 16], sizes = [2, 8], strides = [1, 1]} : vector<2x32xf32> to vector<2x8xf32>
    %71 = arith.truncf %70 : vector<2x8xf32> to vector<2x8xbf16>
    %72 = vector.extract_strided_slice %13 {offsets = [0, 16], sizes = [2, 8], strides = [1, 1]} : vector<2x32xf32> to vector<2x8xf32>
    %73 = arith.truncf %72 : vector<2x8xf32> to vector<2x8xbf16>
    %74 = vector.extract_strided_slice %18 {offsets = [0, 16], sizes = [2, 8], strides = [1, 1]} : vector<2x32xf32> to vector<2x8xf32>
    %75 = arith.truncf %74 : vector<2x8xf32> to vector<2x8xbf16>
    "tpu.trace_start"() <{level = 10 : i32, message = "qd,kd->qk"}> : () -> ()
    %cst_36 = arith.constant dense<0.000000e+00> : vector<2x2xf32>
    %76 = tpu.matmul %71, %73, %cst_36 {dimension_numbers = #tpu.dot_dimension_numbers<[1], [1], [0], [0], [0, 0, 1, 0], [], []>} : vector<2x8xbf16>, vector<2x8xbf16>, vector<2x2xf32> -> vector<2x2xf32>
    "tpu.trace_stop"() : () -> ()
    %cst_37 = arith.constant 0.353553385 : f32
    %77 = vector.broadcast %cst_37 : f32 to vector<2x2xf32>
    %78 = arith.mulf %76, %77 : vector<2x2xf32>
    %cst_38 = arith.constant dense<0xFF800000> : vector<2xf32>
    %79 = vector.multi_reduction <maximumf>, %78, %cst_38 [1] : vector<2x2xf32> to vector<2xf32>
    %80 = vector.shape_cast %79 : vector<2xf32> to vector<2x1xf32>
    %81 = vector.broadcast %80 : vector<2x1xf32> to vector<2x2xf32>
    %82 = arith.subf %78, %81 : vector<2x2xf32>
    %83 = math.exp %82 : vector<2x2xf32>
    %cst_39 = arith.constant dense<0.000000e+00> : vector<2xf32>
    %84 = vector.multi_reduction <add>, %83, %cst_39 [1] : vector<2x2xf32> to vector<2xf32>
    %85 = vector.shape_cast %84 : vector<2xf32> to vector<2x1xf32>
    %86 = tpu.reciprocal %85 {approx = true} : vector<2x1xf32> -> vector<2x1xf32>
    %87 = vector.broadcast %86 : vector<2x1xf32> to vector<2x2xf32>
    %88 = arith.mulf %83, %87 : vector<2x2xf32>
    %89 = arith.truncf %88 : vector<2x2xf32> to vector<2x2xbf16>
    %cst_40 = arith.constant dense<0.000000e+00> : vector<2x8xf32>
    %90 = tpu.matmul %89, %75, %cst_40 {dimension_numbers = #tpu.dot_dimension_numbers<[1], [0], [0], [1], [0, 0, 1, 1], [], []>} : vector<2x2xbf16>, vector<2x8xbf16>, vector<2x8xf32> -> vector<2x8xf32>
    %91 = arith.truncf %90 : vector<2x8xf32> to vector<2x8xbf16>
    %c2 = arith.constant 2 : index
    %c0_41 = arith.constant 0 : index
    %c0_42 = arith.constant 0 : index
    %92 = vector.load %arg6[%c2, %c0_41, %c0_42] : memref<4x8x32xbf16, #tpu.memory_space<vmem>>, vector<1x8x32xbf16>
    %93 = vector.shape_cast %92 : vector<1x8x32xbf16> to vector<8x32xbf16>
    %cst_43 = arith.constant dense<0.000000e+00> : vector<2x32xf32>
    %94 = tpu.matmul %91, %93, %cst_43 {dimension_numbers = #tpu.dot_dimension_numbers<[1], [0], [0], [1], [0, 0, 1, 1], [], []>} : vector<2x8xbf16>, vector<8x32xbf16>, vector<2x32xf32> -> vector<2x32xf32>
    %95 = arith.addf %69, %94 : vector<2x32xf32>
    %96 = vector.extract_strided_slice %8 {offsets = [0, 24], sizes = [2, 8], strides = [1, 1]} : vector<2x32xf32> to vector<2x8xf32>
    %97 = arith.truncf %96 : vector<2x8xf32> to vector<2x8xbf16>
    %98 = vector.extract_strided_slice %13 {offsets = [0, 24], sizes = [2, 8], strides = [1, 1]} : vector<2x32xf32> to vector<2x8xf32>
    %99 = arith.truncf %98 : vector<2x8xf32> to vector<2x8xbf16>
    %100 = vector.extract_strided_slice %18 {offsets = [0, 24], sizes = [2, 8], strides = [1, 1]} : vector<2x32xf32> to vector<2x8xf32>
    %101 = arith.truncf %100 : vector<2x8xf32> to vector<2x8xbf16>
    "tpu.trace_start"() <{level = 10 : i32, message = "qd,kd->qk"}> : () -> ()
    %cst_44 = arith.constant dense<0.000000e+00> : vector<2x2xf32>
    %102 = tpu.matmul %97, %99, %cst_44 {dimension_numbers = #tpu.dot_dimension_numbers<[1], [1], [0], [0], [0, 0, 1, 0], [], []>} : vector<2x8xbf16>, vector<2x8xbf16>, vector<2x2xf32> -> vector<2x2xf32>
    "tpu.trace_stop"() : () -> ()
    %cst_45 = arith.constant 0.353553385 : f32
    %103 = vector.broadcast %cst_45 : f32 to vector<2x2xf32>
    %104 = arith.mulf %102, %103 : vector<2x2xf32>
    %cst_46 = arith.constant dense<0xFF800000> : vector<2xf32>
    %105 = vector.multi_reduction <maximumf>, %104, %cst_46 [1] : vector<2x2xf32> to vector<2xf32>
    %106 = vector.shape_cast %105 : vector<2xf32> to vector<2x1xf32>
    %107 = vector.broadcast %106 : vector<2x1xf32> to vector<2x2xf32>
    %108 = arith.subf %104, %107 : vector<2x2xf32>
    %109 = math.exp %108 : vector<2x2xf32>
    %cst_47 = arith.constant dense<0.000000e+00> : vector<2xf32>
    %110 = vector.multi_reduction <add>, %109, %cst_47 [1] : vector<2x2xf32> to vector<2xf32>
    %111 = vector.shape_cast %110 : vector<2xf32> to vector<2x1xf32>
    %112 = tpu.reciprocal %111 {approx = true} : vector<2x1xf32> -> vector<2x1xf32>
    %113 = vector.broadcast %112 : vector<2x1xf32> to vector<2x2xf32>
    %114 = arith.mulf %109, %113 : vector<2x2xf32>
    %115 = arith.truncf %114 : vector<2x2xf32> to vector<2x2xbf16>
    %cst_48 = arith.constant dense<0.000000e+00> : vector<2x8xf32>
    %116 = tpu.matmul %115, %101, %cst_48 {dimension_numbers = #tpu.dot_dimension_numbers<[1], [0], [0], [1], [0, 0, 1, 1], [], []>} : vector<2x2xbf16>, vector<2x8xbf16>, vector<2x8xf32> -> vector<2x8xf32>
    %117 = arith.truncf %116 : vector<2x8xf32> to vector<2x8xbf16>
    %c3 = arith.constant 3 : index
    %c0_49 = arith.constant 0 : index
    %c0_50 = arith.constant 0 : index
    %118 = vector.load %arg6[%c3, %c0_49, %c0_50] : memref<4x8x32xbf16, #tpu.memory_space<vmem>>, vector<1x8x32xbf16>
    %119 = vector.shape_cast %118 : vector<1x8x32xbf16> to vector<8x32xbf16>
    %cst_51 = arith.constant dense<0.000000e+00> : vector<2x32xf32>
    %120 = tpu.matmul %117, %119, %cst_51 {dimension_numbers = #tpu.dot_dimension_numbers<[1], [0], [0], [1], [0, 0, 1, 1], [], []>} : vector<2x8xbf16>, vector<8x32xbf16>, vector<2x32xf32> -> vector<2x32xf32>
    %121 = arith.addf %95, %120 : vector<2x32xf32>
    %122 = arith.extf %1 : vector<2x32xbf16> to vector<2x32xf32>
    %123 = arith.addf %122, %121 : vector<2x32xf32>
    %c0_52 = arith.constant 0 : index
    %c0_53 = arith.constant 0 : index
    %124 = vector.load %arg10[%c0_52, %c0_53] : memref<1x32xf32, #tpu.memory_space<vmem>>, vector<1x32xf32>
    %125 = vector.broadcast %124 : vector<1x32xf32> to vector<2x32xf32>
    %126 = arith.addf %123, %125 : vector<2x32xf32>
    %c0_54 = arith.constant 0 : index
    %c0_55 = arith.constant 0 : index
    %127 = vector.load %arg11[%c0_54, %c0_55] : memref<1x32xf32, #tpu.memory_space<vmem>>, vector<1x32xf32>
    %c0_56 = arith.constant 0 : index
    %c0_57 = arith.constant 0 : index
    %128 = vector.load %arg12[%c0_56, %c0_57] : memref<1x32xf32, #tpu.memory_space<vmem>>, vector<1x32xf32>
    %cst_58 = arith.constant dense<0.000000e+00> : vector<2xf32>
    %129 = vector.multi_reduction <add>, %126, %cst_58 [1] : vector<2x32xf32> to vector<2xf32>
    %130 = vector.shape_cast %129 : vector<2xf32> to vector<2x1xf32>
    %cst_59 = arith.constant 3.200000e+01 : f32
    %131 = vector.broadcast %cst_59 : f32 to vector<2x1xf32>
    %132 = arith.divf %130, %131 : vector<2x1xf32>
    %133 = vector.broadcast %132 : vector<2x1xf32> to vector<2x32xf32>
    %134 = arith.subf %126, %133 : vector<2x32xf32>
    %135 = arith.mulf %134, %134 : vector<2x32xf32>
    %cst_60 = arith.constant dense<0.000000e+00> : vector<2xf32>
    %136 = vector.multi_reduction <add>, %135, %cst_60 [1] : vector<2x32xf32> to vector<2xf32>
    %137 = vector.shape_cast %136 : vector<2xf32> to vector<2x1xf32>
    %cst_61 = arith.constant 3.200000e+01 : f32
    %138 = vector.broadcast %cst_61 : f32 to vector<2x1xf32>
    %139 = arith.divf %137, %138 : vector<2x1xf32>
    %cst_62 = arith.constant 9.99999974E-6 : f32
    %140 = vector.broadcast %cst_62 : f32 to vector<2x1xf32>
    %141 = arith.addf %139, %140 : vector<2x1xf32>
    %142 = math.rsqrt %141 : vector<2x1xf32>
    %143 = vector.broadcast %142 : vector<2x1xf32> to vector<2x32xf32>
    %144 = arith.mulf %134, %143 : vector<2x32xf32>
    %145 = vector.broadcast %127 : vector<1x32xf32> to vector<2x32xf32>
    %146 = arith.mulf %144, %145 : vector<2x32xf32>
    %147 = vector.broadcast %128 : vector<1x32xf32> to vector<2x32xf32>
    %148 = arith.addf %146, %147 : vector<2x32xf32>
    %149 = arith.truncf %148 : vector<2x32xf32> to vector<2x32xbf16>
    %c0_63 = arith.constant 0 : index
    %c0_64 = arith.constant 0 : index
    %c0_65 = arith.constant 0 : index
    %150 = vector.load %arg13[%c0_63, %c0_64, %c0_65] : memref<1x2x32xbf16, #tpu.memory_space<vmem>>, vector<1x2x32xbf16>
    %151 = vector.shape_cast %150 : vector<1x2x32xbf16> to vector<2x32xbf16>
    %152 = vector.shape_cast %149 : vector<2x32xbf16> to vector<1x2x32xbf16>
    tpu.vector_store %arg13[%c0_63, %c0_64, %c0_65], %152 {strides = array<i32>} : memref<1x2x32xbf16, #tpu.memory_space<vmem>>, vector<1x2x32xbf16>,
    return
  }
  func.func @transform_0(%arg0: i32) -> (i32, i32, i32) {
    %c0_i32 = arith.constant 0 : i32
    %c0_i32_0 = arith.constant 0 : i32
    %c0_i32_1 = arith.constant 0 : i32
    return %arg0, %c0_i32, %c0_i32_0 : i32, i32, i32
  }
  func.func @transform_1(%arg0: i32) -> (i32, i32, i32) {
    %c0_i32 = arith.constant 0 : i32
    %c0_i32_0 = arith.constant 0 : i32
    %c0_i32_1 = arith.constant 0 : i32
    return %arg0, %c0_i32, %c0_i32_0 : i32, i32, i32
  }
  func.func @transform_2(%arg0: i32) -> (i32, i32) {
    %c0_i32 = arith.constant 0 : i32
    %c0_i32_0 = arith.constant 0 : i32
    %c0_i32_1 = arith.constant 0 : i32
    return %c0_i32, %c0_i32_0 : i32, i32
  }
  func.func @transform_3(%arg0: i32) -> (i32, i32) {
    %c0_i32 = arith.constant 0 : i32
    %c0_i32_0 = arith.constant 0 : i32
    %c0_i32_1 = arith.constant 0 : i32
    return %c0_i32, %c0_i32_0 : i32, i32
  }
  func.func @transform_4(%arg0: i32) -> (i32, i32) {
    %c0_i32 = arith.constant 0 : i32
    %c0_i32_0 = arith.constant 0 : i32
    %c0_i32_1 = arith.constant 0 : i32
    return %c0_i32, %c0_i32_0 : i32, i32
  }
  func.func @transform_5(%arg0: i32) -> (i32, i32, i32) {
    %c0_i32 = arith.constant 0 : i32
    %c0_i32_0 = arith.constant 0 : i32
    %c0_i32_1 = arith.constant 0 : i32
    %c0_i32_2 = arith.constant 0 : i32
    return %c0_i32, %c0_i32_0, %c0_i32_1 : i32, i32, i32
  }
  func.func @transform_6(%arg0: i32) -> (i32, i32) {
    %c0_i32 = arith.constant 0 : i32
    %c0_i32_0 = arith.constant 0 : i32
    %c0_i32_1 = arith.constant 0 : i32
    return %c0_i32, %c0_i32_0 : i32, i32
  }
  func.func @transform_7(%arg0: i32) -> (i32, i32) {
    %c0_i32 = arith.constant 0 : i32
    %c0_i32_0 = arith.constant 0 : i32
    %c0_i32_1 = arith.constant 0 : i32
    return %c0_i32, %c0_i32_0 : i32, i32
  }
  func.func @transform_8(%arg0: i32) -> (i32, i32) {
    %c0_i32 = arith.constant 0 : i32
    %c0_i32_0 = arith.constant 0 : i32
    %c0_i32_1 = arith.constant 0 : i32
    return %c0_i32, %c0_i32_0 : i32, i32
  }
  func.func @transform_9(%arg0: i32) -> (i32, i32) {
    %c0_i32 = arith.constant 0 : i32
    %c0_i32_0 = arith.constant 0 : i32
    %c0_i32_1 = arith.constant 0 : i32
    return %c0_i32, %c0_i32_0 : i32, i32
  }
  func.func @transform_10(%arg0: i32) -> (i32, i32) {
    %c0_i32 = arith.constant 0 : i32
    %c0_i32_0 = arith.constant 0 : i32
    %c0_i32_1 = arith.constant 0 : i32
    return %c0_i32, %c0_i32_0 : i32, i32
  }
  func.func @transform_11(%arg0: i32) -> (i32, i32) {
    %c0_i32 = arith.constant 0 : i32
    %c0_i32_0 = arith.constant 0 : i32
    %c0_i32_1 = arith.constant 0 : i32
    return %c0_i32, %c0_i32_0 : i32, i32
  }
  func.func @transform_12(%arg0: i32) -> (i32, i32, i32) {
    %c0_i32 = arith.constant 0 : i32
    %c0_i32_0 = arith.constant 0 : i32
    %c0_i32_1 = arith.constant 0 : i32
    return %arg0, %c0_i32, %c0_i32_0 : i32, i32, i32
  }
}

module attributes {stable_mosaic.version = 11 : i64} {
  func.func @_mha_kernel(%arg0: i32, %arg1: memref<1x2x32xbf16, #tpu.memory_space<vmem>>, %arg2: memref<1x4x32xbf16, #tpu.memory_space<vmem>>, %arg3: memref<32x32xbf16, #tpu.memory_space<vmem>>, %arg4: memref<32x32xbf16, #tpu.memory_space<vmem>>, %arg5: memref<32x32xbf16, #tpu.memory_space<vmem>>, %arg6: memref<4x8x32xbf16, #tpu.memory_space<vmem>>, %arg7: memref<1x32xf32, #tpu.memory_space<vmem>>, %arg8: memref<1x32xf32, #tpu.memory_space<vmem>>, %arg9: memref<1x32xf32, #tpu.memory_space<vmem>>, %arg10: memref<1x32xf32, #tpu.memory_space<vmem>>, %arg11: memref<1x32xf32, #tpu.memory_space<vmem>>, %arg12: memref<1x32xf32, #tpu.memory_space<vmem>>, %arg13: memref<1x2x32xbf16, #tpu.memory_space<vmem>>) attributes {dimension_semantics = [#tpu.dimension_semantics<parallel>], iteration_bounds = array<i64: 8>, scalar_prefetch = 0 : i64, scratch_operands = 0 : i64, tpu.core_type = #tpu.core_type<tc>, window_params = [{transform_indices = @transform_0, window_bounds = array<i64: 1, 2, 32>}, {transform_indices = @transform_1, window_bounds = array<i64: 1, 4, 32>}, {pipeline_mode = #tpu.pipeline_mode<synchronous>, transform_indices = @transform_2, window_bounds = array<i64: 32, 32>}, {pipeline_mode = #tpu.pipeline_mode<synchronous>, transform_indices = @transform_3, window_bounds = array<i64: 32, 32>}, {pipeline_mode = #tpu.pipeline_mode<synchronous>, transform_indices = @transform_4, window_bounds = array<i64: 32, 32>}, {pipeline_mode = #tpu.pipeline_mode<synchronous>, transform_indices = @transform_5, window_bounds = array<i64: 4, 8, 32>}, {pipeline_mode = #tpu.pipeline_mode<synchronous>, transform_indices = @transform_6, window_bounds = array<i64: 1, 32>}, {pipeline_mode = #tpu.pipeline_mode<synchronous>, transform_indices = @transform_7, window_bounds = array<i64: 1, 32>}, {pipeline_mode = #tpu.pipeline_mode<synchronous>, transform_indices = @transform_8, window_bounds = array<i64: 1, 32>}, {pipeline_mode = #tpu.pipeline_mode<synchronous>, transform_indices = @transform_9, window_bounds = array<i64: 1, 32>}, {pipeline_mode = #tpu.pipeline_mode<synchronous>, transform_indices = @transform_10, window_bounds = array<i64: 1, 32>}, {pipeline_mode = #tpu.pipeline_mode<synchronous>, transform_indices = @transform_11, window_bounds = array<i64: 1, 32>}, {transform_indices = @transform_12, window_bounds = array<i64: 1, 2, 32>}]} {
    %c0 = arith.constant 0 : index
    %c0_0 = arith.constant 0 : index
    %c0_1 = arith.constant 0 : index
    %0 = vector.load %arg1[%c0, %c0_0, %c0_1] : memref<1x2x32xbf16, #tpu.memory_space<vmem>>, vector<1x2x32xbf16>
    %1 = vector.shape_cast %0 : vector<1x2x32xbf16> to vector<2x32xbf16>
    %c0_2 = arith.constant 0 : index
    %c0_3 = arith.constant 0 : index
    %c0_4 = arith.constant 0 : index
    %2 = vector.load %arg2[%c0_2, %c0_3, %c0_4] : memref<1x4x32xbf16, #tpu.memory_space<vmem>>, vector<1x4x32xbf16>
    %3 = vector.shape_cast %2 : vector<1x4x32xbf16> to vector<4x32xbf16>
    %c0_5 = arith.constant 0 : index
    %c0_6 = arith.constant 0 : index
    %4 = vector.load %arg3[%c0_5, %c0_6] : memref<32x32xbf16, #tpu.memory_space<vmem>>, vector<32x32xbf16>
    %cst = arith.constant dense<0.000000e+00> : vector<2x32xf32>
    %5 = tpu.matmul %1, %4, %cst {dimension_numbers = #tpu.dot_dimension_numbers<[1], [0], [0], [1], [0, 0, 1, 1], [], []>} : vector<2x32xbf16>, vector<32x32xbf16>, vector<2x32xf32> -> vector<2x32xf32>
    %c0_7 = arith.constant 0 : index
    %c0_8 = arith.constant 0 : index
    %6 = vector.load %arg7[%c0_7, %c0_8] : memref<1x32xf32, #tpu.memory_space<vmem>>, vector<1x32xf32>
    %7 = vector.broadcast %6 : vector<1x32xf32> to vector<2x32xf32>
    %8 = arith.addf %5, %7 : vector<2x32xf32>
    %c0_9 = arith.constant 0 : index
    %c0_10 = arith.constant 0 : index
    %9 = vector.load %arg4[%c0_9, %c0_10] : memref<32x32xbf16, #tpu.memory_space<vmem>>, vector<32x32xbf16>
    %cst_11 = arith.constant dense<0.000000e+00> : vector<4x32xf32>
    %10 = tpu.matmul %3, %9, %cst_11 {dimension_numbers = #tpu.dot_dimension_numbers<[1], [0], [0], [1], [0, 0, 1, 1], [], []>} : vector<4x32xbf16>, vector<32x32xbf16>, vector<4x32xf32> -> vector<4x32xf32>
    %c0_12 = arith.constant 0 : index
    %c0_13 = arith.constant 0 : index
    %11 = vector.load %arg8[%c0_12, %c0_13] : memref<1x32xf32, #tpu.memory_space<vmem>>, vector<1x32xf32>
    %12 = vector.broadcast %11 : vector<1x32xf32> to vector<4x32xf32>
    %13 = arith.addf %10, %12 : vector<4x32xf32>
    %c0_14 = arith.constant 0 : index
    %c0_15 = arith.constant 0 : index
    %14 = vector.load %arg5[%c0_14, %c0_15] : memref<32x32xbf16, #tpu.memory_space<vmem>>, vector<32x32xbf16>
    %cst_16 = arith.constant dense<0.000000e+00> : vector<4x32xf32>
    %15 = tpu.matmul %3, %14, %cst_16 {dimension_numbers = #tpu.dot_dimension_numbers<[1], [0], [0], [1], [0, 0, 1, 1], [], []>} : vector<4x32xbf16>, vector<32x32xbf16>, vector<4x32xf32> -> vector<4x32xf32>
    %c0_17 = arith.constant 0 : index
    %c0_18 = arith.constant 0 : index
    %16 = vector.load %arg9[%c0_17, %c0_18] : memref<1x32xf32, #tpu.memory_space<vmem>>, vector<1x32xf32>
    %17 = vector.broadcast %16 : vector<1x32xf32> to vector<4x32xf32>
    %18 = arith.addf %15, %17 : vector<4x32xf32>
    %19 = vector.extract_strided_slice %8 {offsets = [0, 0], sizes = [2, 8], strides = [1, 1]} : vector<2x32xf32> to vector<2x8xf32>
    %20 = arith.truncf %19 : vector<2x8xf32> to vector<2x8xbf16>
    %21 = vector.extract_strided_slice %13 {offsets = [0, 0], sizes = [4, 8], strides = [1, 1]} : vector<4x32xf32> to vector<4x8xf32>
    %22 = arith.truncf %21 : vector<4x8xf32> to vector<4x8xbf16>
    %23 = vector.extract_strided_slice %18 {offsets = [0, 0], sizes = [4, 8], strides = [1, 1]} : vector<4x32xf32> to vector<4x8xf32>
    %24 = arith.truncf %23 : vector<4x8xf32> to vector<4x8xbf16>
    "tpu.trace_start"() <{level = 10 : i32, message = "qd,kd->qk"}> : () -> ()
    %cst_19 = arith.constant dense<0.000000e+00> : vector<2x4xf32>
    %25 = tpu.matmul %20, %22, %cst_19 {dimension_numbers = #tpu.dot_dimension_numbers<[1], [1], [0], [0], [0, 0, 1, 0], [], []>} : vector<2x8xbf16>, vector<4x8xbf16>, vector<2x4xf32> -> vector<2x4xf32>
    "tpu.trace_stop"() : () -> ()
    %cst_20 = arith.constant 0.353553385 : f32
    %26 = vector.broadcast %cst_20 : f32 to vector<2x4xf32>
    %27 = arith.mulf %25, %26 : vector<2x4xf32>
    %cst_21 = arith.constant dense<0xFF800000> : vector<2xf32>
    %28 = vector.multi_reduction <maximumf>, %27, %cst_21 [1] : vector<2x4xf32> to vector<2xf32>
    %29 = vector.shape_cast %28 : vector<2xf32> to vector<2x1xf32>
    %30 = vector.broadcast %29 : vector<2x1xf32> to vector<2x4xf32>
    %31 = arith.subf %27, %30 : vector<2x4xf32>
    %32 = math.exp %31 : vector<2x4xf32>
    %cst_22 = arith.constant dense<0.000000e+00> : vector<2xf32>
    %33 = vector.multi_reduction <add>, %32, %cst_22 [1] : vector<2x4xf32> to vector<2xf32>
    %34 = vector.shape_cast %33 : vector<2xf32> to vector<2x1xf32>
    %35 = tpu.reciprocal %34 {approx = true} : vector<2x1xf32> -> vector<2x1xf32>
    %36 = vector.broadcast %35 : vector<2x1xf32> to vector<2x4xf32>
    %37 = arith.mulf %32, %36 : vector<2x4xf32>
    %38 = arith.truncf %37 : vector<2x4xf32> to vector<2x4xbf16>
    %cst_23 = arith.constant dense<0.000000e+00> : vector<2x8xf32>
    %39 = tpu.matmul %38, %24, %cst_23 {dimension_numbers = #tpu.dot_dimension_numbers<[1], [0], [0], [1], [0, 0, 1, 1], [], []>} : vector<2x4xbf16>, vector<4x8xbf16>, vector<2x8xf32> -> vector<2x8xf32>
    %40 = arith.truncf %39 : vector<2x8xf32> to vector<2x8xbf16>
    %c0_24 = arith.constant 0 : index
    %c0_25 = arith.constant 0 : index
    %c0_26 = arith.constant 0 : index
    %41 = vector.load %arg6[%c0_24, %c0_25, %c0_26] : memref<4x8x32xbf16, #tpu.memory_space<vmem>>, vector<1x8x32xbf16>
    %42 = vector.shape_cast %41 : vector<1x8x32xbf16> to vector<8x32xbf16>
    %cst_27 = arith.constant dense<0.000000e+00> : vector<2x32xf32>
    %43 = tpu.matmul %40, %42, %cst_27 {dimension_numbers = #tpu.dot_dimension_numbers<[1], [0], [0], [1], [0, 0, 1, 1], [], []>} : vector<2x8xbf16>, vector<8x32xbf16>, vector<2x32xf32> -> vector<2x32xf32>
    %44 = vector.extract_strided_slice %8 {offsets = [0, 8], sizes = [2, 8], strides = [1, 1]} : vector<2x32xf32> to vector<2x8xf32>
    %45 = arith.truncf %44 : vector<2x8xf32> to vector<2x8xbf16>
    %46 = vector.extract_strided_slice %13 {offsets = [0, 8], sizes = [4, 8], strides = [1, 1]} : vector<4x32xf32> to vector<4x8xf32>
    %47 = arith.truncf %46 : vector<4x8xf32> to vector<4x8xbf16>
    %48 = vector.extract_strided_slice %18 {offsets = [0, 8], sizes = [4, 8], strides = [1, 1]} : vector<4x32xf32> to vector<4x8xf32>
    %49 = arith.truncf %48 : vector<4x8xf32> to vector<4x8xbf16>
    "tpu.trace_start"() <{level = 10 : i32, message = "qd,kd->qk"}> : () -> ()
    %cst_28 = arith.constant dense<0.000000e+00> : vector<2x4xf32>
    %50 = tpu.matmul %45, %47, %cst_28 {dimension_numbers = #tpu.dot_dimension_numbers<[1], [1], [0], [0], [0, 0, 1, 0], [], []>} : vector<2x8xbf16>, vector<4x8xbf16>, vector<2x4xf32> -> vector<2x4xf32>
    "tpu.trace_stop"() : () -> ()
    %cst_29 = arith.constant 0.353553385 : f32
    %51 = vector.broadcast %cst_29 : f32 to vector<2x4xf32>
    %52 = arith.mulf %50, %51 : vector<2x4xf32>
    %cst_30 = arith.constant dense<0xFF800000> : vector<2xf32>
    %53 = vector.multi_reduction <maximumf>, %52, %cst_30 [1] : vector<2x4xf32> to vector<2xf32>
    %54 = vector.shape_cast %53 : vector<2xf32> to vector<2x1xf32>
    %55 = vector.broadcast %54 : vector<2x1xf32> to vector<2x4xf32>
    %56 = arith.subf %52, %55 : vector<2x4xf32>
    %57 = math.exp %56 : vector<2x4xf32>
    %cst_31 = arith.constant dense<0.000000e+00> : vector<2xf32>
    %58 = vector.multi_reduction <add>, %57, %cst_31 [1] : vector<2x4xf32> to vector<2xf32>
    %59 = vector.shape_cast %58 : vector<2xf32> to vector<2x1xf32>
    %60 = tpu.reciprocal %59 {approx = true} : vector<2x1xf32> -> vector<2x1xf32>
    %61 = vector.broadcast %60 : vector<2x1xf32> to vector<2x4xf32>
    %62 = arith.mulf %57, %61 : vector<2x4xf32>
    %63 = arith.truncf %62 : vector<2x4xf32> to vector<2x4xbf16>
    %cst_32 = arith.constant dense<0.000000e+00> : vector<2x8xf32>
    %64 = tpu.matmul %63, %49, %cst_32 {dimension_numbers = #tpu.dot_dimension_numbers<[1], [0], [0], [1], [0, 0, 1, 1], [], []>} : vector<2x4xbf16>, vector<4x8xbf16>, vector<2x8xf32> -> vector<2x8xf32>
    %65 = arith.truncf %64 : vector<2x8xf32> to vector<2x8xbf16>
    %c1 = arith.constant 1 : index
    %c0_33 = arith.constant 0 : index
    %c0_34 = arith.constant 0 : index
    %66 = vector.load %arg6[%c1, %c0_33, %c0_34] : memref<4x8x32xbf16, #tpu.memory_space<vmem>>, vector<1x8x32xbf16>
    %67 = vector.shape_cast %66 : vector<1x8x32xbf16> to vector<8x32xbf16>
    %cst_35 = arith.constant dense<0.000000e+00> : vector<2x32xf32>
    %68 = tpu.matmul %65, %67, %cst_35 {dimension_numbers = #tpu.dot_dimension_numbers<[1], [0], [0], [1], [0, 0, 1, 1], [], []>} : vector<2x8xbf16>, vector<8x32xbf16>, vector<2x32xf32> -> vector<2x32xf32>
    %69 = arith.addf %43, %68 : vector<2x32xf32>
    %70 = vector.extract_strided_slice %8 {offsets = [0, 16], sizes = [2, 8], strides = [1, 1]} : vector<2x32xf32> to vector<2x8xf32>
    %71 = arith.truncf %70 : vector<2x8xf32> to vector<2x8xbf16>
    %72 = vector.extract_strided_slice %13 {offsets = [0, 16], sizes = [4, 8], strides = [1, 1]} : vector<4x32xf32> to vector<4x8xf32>
    %73 = arith.truncf %72 : vector<4x8xf32> to vector<4x8xbf16>
    %74 = vector.extract_strided_slice %18 {offsets = [0, 16], sizes = [4, 8], strides = [1, 1]} : vector<4x32xf32> to vector<4x8xf32>
    %75 = arith.truncf %74 : vector<4x8xf32> to vector<4x8xbf16>
    "tpu.trace_start"() <{level = 10 : i32, message = "qd,kd->qk"}> : () -> ()
    %cst_36 = arith.constant dense<0.000000e+00> : vector<2x4xf32>
    %76 = tpu.matmul %71, %73, %cst_36 {dimension_numbers = #tpu.dot_dimension_numbers<[1], [1], [0], [0], [0, 0, 1, 0], [], []>} : vector<2x8xbf16>, vector<4x8xbf16>, vector<2x4xf32> -> vector<2x4xf32>
    "tpu.trace_stop"() : () -> ()
    %cst_37 = arith.constant 0.353553385 : f32
    %77 = vector.broadcast %cst_37 : f32 to vector<2x4xf32>
    %78 = arith.mulf %76, %77 : vector<2x4xf32>
    %cst_38 = arith.constant dense<0xFF800000> : vector<2xf32>
    %79 = vector.multi_reduction <maximumf>, %78, %cst_38 [1] : vector<2x4xf32> to vector<2xf32>
    %80 = vector.shape_cast %79 : vector<2xf32> to vector<2x1xf32>
    %81 = vector.broadcast %80 : vector<2x1xf32> to vector<2x4xf32>
    %82 = arith.subf %78, %81 : vector<2x4xf32>
    %83 = math.exp %82 : vector<2x4xf32>
    %cst_39 = arith.constant dense<0.000000e+00> : vector<2xf32>
    %84 = vector.multi_reduction <add>, %83, %cst_39 [1] : vector<2x4xf32> to vector<2xf32>
    %85 = vector.shape_cast %84 : vector<2xf32> to vector<2x1xf32>
    %86 = tpu.reciprocal %85 {approx = true} : vector<2x1xf32> -> vector<2x1xf32>
    %87 = vector.broadcast %86 : vector<2x1xf32> to vector<2x4xf32>
    %88 = arith.mulf %83, %87 : vector<2x4xf32>
    %89 = arith.truncf %88 : vector<2x4xf32> to vector<2x4xbf16>
    %cst_40 = arith.constant dense<0.000000e+00> : vector<2x8xf32>
    %90 = tpu.matmul %89, %75, %cst_40 {dimension_numbers = #tpu.dot_dimension_numbers<[1], [0], [0], [1], [0, 0, 1, 1], [], []>} : vector<2x4xbf16>, vector<4x8xbf16>, vector<2x8xf32> -> vector<2x8xf32>
    %91 = arith.truncf %90 : vector<2x8xf32> to vector<2x8xbf16>
    %c2 = arith.constant 2 : index
    %c0_41 = arith.constant 0 : index
    %c0_42 = arith.constant 0 : index
    %92 = vector.load %arg6[%c2, %c0_41, %c0_42] : memref<4x8x32xbf16, #tpu.memory_space<vmem>>, vector<1x8x32xbf16>
    %93 = vector.shape_cast %92 : vector<1x8x32xbf16> to vector<8x32xbf16>
    %cst_43 = arith.constant dense<0.000000e+00> : vector<2x32xf32>
    %94 = tpu.matmul %91, %93, %cst_43 {dimension_numbers = #tpu.dot_dimension_numbers<[1], [0], [0], [1], [0, 0, 1, 1], [], []>} : vector<2x8xbf16>, vector<8x32xbf16>, vector<2x32xf32> -> vector<2x32xf32>
    %95 = arith.addf %69, %94 : vector<2x32xf32>
    %96 = vector.extract_strided_slice %8 {offsets = [0, 24], sizes = [2, 8], strides = [1, 1]} : vector<2x32xf32> to vector<2x8xf32>
    %97 = arith.truncf %96 : vector<2x8xf32> to vector<2x8xbf16>
    %98 = vector.extract_strided_slice %13 {offsets = [0, 24], sizes = [4, 8], strides = [1, 1]} : vector<4x32xf32> to vector<4x8xf32>
    %99 = arith.truncf %98 : vector<4x8xf32> to vector<4x8xbf16>
    %100 = vector.extract_strided_slice %18 {offsets = [0, 24], sizes = [4, 8], strides = [1, 1]} : vector<4x32xf32> to vector<4x8xf32>
    %101 = arith.truncf %100 : vector<4x8xf32> to vector<4x8xbf16>
    "tpu.trace_start"() <{level = 10 : i32, message = "qd,kd->qk"}> : () -> ()
    %cst_44 = arith.constant dense<0.000000e+00> : vector<2x4xf32>
    %102 = tpu.matmul %97, %99, %cst_44 {dimension_numbers = #tpu.dot_dimension_numbers<[1], [1], [0], [0], [0, 0, 1, 0], [], []>} : vector<2x8xbf16>, vector<4x8xbf16>, vector<2x4xf32> -> vector<2x4xf32>
    "tpu.trace_stop"() : () -> ()
    %cst_45 = arith.constant 0.353553385 : f32
    %103 = vector.broadcast %cst_45 : f32 to vector<2x4xf32>
    %104 = arith.mulf %102, %103 : vector<2x4xf32>
    %cst_46 = arith.constant dense<0xFF800000> : vector<2xf32>
    %105 = vector.multi_reduction <maximumf>, %104, %cst_46 [1] : vector<2x4xf32> to vector<2xf32>
    %106 = vector.shape_cast %105 : vector<2xf32> to vector<2x1xf32>
    %107 = vector.broadcast %106 : vector<2x1xf32> to vector<2x4xf32>
    %108 = arith.subf %104, %107 : vector<2x4xf32>
    %109 = math.exp %108 : vector<2x4xf32>
    %cst_47 = arith.constant dense<0.000000e+00> : vector<2xf32>
    %110 = vector.multi_reduction <add>, %109, %cst_47 [1] : vector<2x4xf32> to vector<2xf32>
    %111 = vector.shape_cast %110 : vector<2xf32> to vector<2x1xf32>
    %112 = tpu.reciprocal %111 {approx = true} : vector<2x1xf32> -> vector<2x1xf32>
    %113 = vector.broadcast %112 : vector<2x1xf32> to vector<2x4xf32>
    %114 = arith.mulf %109, %113 : vector<2x4xf32>
    %115 = arith.truncf %114 : vector<2x4xf32> to vector<2x4xbf16>
    %cst_48 = arith.constant dense<0.000000e+00> : vector<2x8xf32>
    %116 = tpu.matmul %115, %101, %cst_48 {dimension_numbers = #tpu.dot_dimension_numbers<[1], [0], [0], [1], [0, 0, 1, 1], [], []>} : vector<2x4xbf16>, vector<4x8xbf16>, vector<2x8xf32> -> vector<2x8xf32>
    %117 = arith.truncf %116 : vector<2x8xf32> to vector<2x8xbf16>
    %c3 = arith.constant 3 : index
    %c0_49 = arith.constant 0 : index
    %c0_50 = arith.constant 0 : index
    %118 = vector.load %arg6[%c3, %c0_49, %c0_50] : memref<4x8x32xbf16, #tpu.memory_space<vmem>>, vector<1x8x32xbf16>
    %119 = vector.shape_cast %118 : vector<1x8x32xbf16> to vector<8x32xbf16>
    %cst_51 = arith.constant dense<0.000000e+00> : vector<2x32xf32>
    %120 = tpu.matmul %117, %119, %cst_51 {dimension_numbers = #tpu.dot_dimension_numbers<[1], [0], [0], [1], [0, 0, 1, 1], [], []>} : vector<2x8xbf16>, vector<8x32xbf16>, vector<2x32xf32> -> vector<2x32xf32>
    %121 = arith.addf %95, %120 : vector<2x32xf32>
    %122 = arith.extf %1 : vector<2x32xbf16> to vector<2x32xf32>
    %123 = arith.addf %122, %121 : vector<2x32xf32>
    %c0_52 = arith.constant 0 : index
    %c0_53 = arith.constant 0 : index
    %124 = vector.load %arg10[%c0_52, %c0_53] : memref<1x32xf32, #tpu.memory_space<vmem>>, vector<1x32xf32>
    %125 = vector.broadcast %124 : vector<1x32xf32> to vector<2x32xf32>
    %126 = arith.addf %123, %125 : vector<2x32xf32>
    %c0_54 = arith.constant 0 : index
    %c0_55 = arith.constant 0 : index
    %127 = vector.load %arg11[%c0_54, %c0_55] : memref<1x32xf32, #tpu.memory_space<vmem>>, vector<1x32xf32>
    %c0_56 = arith.constant 0 : index
    %c0_57 = arith.constant 0 : index
    %128 = vector.load %arg12[%c0_56, %c0_57] : memref<1x32xf32, #tpu.memory_space<vmem>>, vector<1x32xf32>
    %cst_58 = arith.constant dense<0.000000e+00> : vector<2xf32>
    %129 = vector.multi_reduction <add>, %126, %cst_58 [1] : vector<2x32xf32> to vector<2xf32>
    %130 = vector.shape_cast %129 : vector<2xf32> to vector<2x1xf32>
    %cst_59 = arith.constant 3.200000e+01 : f32
    %131 = vector.broadcast %cst_59 : f32 to vector<2x1xf32>
    %132 = arith.divf %130, %131 : vector<2x1xf32>
    %133 = vector.broadcast %132 : vector<2x1xf32> to vector<2x32xf32>
    %134 = arith.subf %126, %133 : vector<2x32xf32>
    %135 = arith.mulf %134, %134 : vector<2x32xf32>
    %cst_60 = arith.constant dense<0.000000e+00> : vector<2xf32>
    %136 = vector.multi_reduction <add>, %135, %cst_60 [1] : vector<2x32xf32> to vector<2xf32>
    %137 = vector.shape_cast %136 : vector<2xf32> to vector<2x1xf32>
    %cst_61 = arith.constant 3.200000e+01 : f32
    %138 = vector.broadcast %cst_61 : f32 to vector<2x1xf32>
    %139 = arith.divf %137, %138 : vector<2x1xf32>
    %cst_62 = arith.constant 9.99999974E-6 : f32
    %140 = vector.broadcast %cst_62 : f32 to vector<2x1xf32>
    %141 = arith.addf %139, %140 : vector<2x1xf32>
    %142 = math.rsqrt %141 : vector<2x1xf32>
    %143 = vector.broadcast %142 : vector<2x1xf32> to vector<2x32xf32>
    %144 = arith.mulf %134, %143 : vector<2x32xf32>
    %145 = vector.broadcast %127 : vector<1x32xf32> to vector<2x32xf32>
    %146 = arith.mulf %144, %145 : vector<2x32xf32>
    %147 = vector.broadcast %128 : vector<1x32xf32> to vector<2x32xf32>
    %148 = arith.addf %146, %147 : vector<2x32xf32>
    %149 = arith.truncf %148 : vector<2x32xf32> to vector<2x32xbf16>
    %c0_63 = arith.constant 0 : index
    %c0_64 = arith.constant 0 : index
    %c0_65 = arith.constant 0 : index
    %150 = vector.load %arg13[%c0_63, %c0_64, %c0_65] : memref<1x2x32xbf16, #tpu.memory_space<vmem>>, vector<1x2x32xbf16>
    %151 = vector.shape_cast %150 : vector<1x2x32xbf16> to vector<2x32xbf16>
    %152 = vector.shape_cast %149 : vector<2x32xbf16> to vector<1x2x32xbf16>
    tpu.vector_store %arg13[%c0_63, %c0_64, %c0_65], %152 {strides = array<i32>} : memref<1x2x32xbf16, #tpu.memory_space<vmem>>, vector<1x2x32xbf16>,
    return
  }
  func.func @transform_0(%arg0: i32) -> (i32, i32, i32) {
    %c0_i32 = arith.constant 0 : i32
    %c0_i32_0 = arith.constant 0 : i32
    %c0_i32_1 = arith.constant 0 : i32
    return %arg0, %c0_i32, %c0_i32_0 : i32, i32, i32
  }
  func.func @transform_1(%arg0: i32) -> (i32, i32, i32) {
    %c0_i32 = arith.constant 0 : i32
    %c0_i32_0 = arith.constant 0 : i32
    %c0_i32_1 = arith.constant 0 : i32
    return %arg0, %c0_i32, %c0_i32_0 : i32, i32, i32
  }
  func.func @transform_2(%arg0: i32) -> (i32, i32) {
    %c0_i32 = arith.constant 0 : i32
    %c0_i32_0 = arith.constant 0 : i32
    %c0_i32_1 = arith.constant 0 : i32
    return %c0_i32, %c0_i32_0 : i32, i32
  }
  func.func @transform_3(%arg0: i32) -> (i32, i32) {
    %c0_i32 = arith.constant 0 : i32
    %c0_i32_0 = arith.constant 0 : i32
    %c0_i32_1 = arith.constant 0 : i32
    return %c0_i32, %c0_i32_0 : i32, i32
  }
  func.func @transform_4(%arg0: i32) -> (i32, i32) {
    %c0_i32 = arith.constant 0 : i32
    %c0_i32_0 = arith.constant 0 : i32
    %c0_i32_1 = arith.constant 0 : i32
    return %c0_i32, %c0_i32_0 : i32, i32
  }
  func.func @transform_5(%arg0: i32) -> (i32, i32, i32) {
    %c0_i32 = arith.constant 0 : i32
    %c0_i32_0 = arith.constant 0 : i32
    %c0_i32_1 = arith.constant 0 : i32
    %c0_i32_2 = arith.constant 0 : i32
    return %c0_i32, %c0_i32_0, %c0_i32_1 : i32, i32, i32
  }
  func.func @transform_6(%arg0: i32) -> (i32, i32) {
    %c0_i32 = arith.constant 0 : i32
    %c0_i32_0 = arith.constant 0 : i32
    %c0_i32_1 = arith.constant 0 : i32
    return %c0_i32, %c0_i32_0 : i32, i32
  }
  func.func @transform_7(%arg0: i32) -> (i32, i32) {
    %c0_i32 = arith.constant 0 : i32
    %c0_i32_0 = arith.constant 0 : i32
    %c0_i32_1 = arith.constant 0 : i32
    return %c0_i32, %c0_i32_0 : i32, i32
  }
  func.func @transform_8(%arg0: i32) -> (i32, i32) {
    %c0_i32 = arith.constant 0 : i32
    %c0_i32_0 = arith.constant 0 : i32
    %c0_i32_1 = arith.constant 0 : i32
    return %c0_i32, %c0_i32_0 : i32, i32
  }
  func.func @transform_9(%arg0: i32) -> (i32, i32) {
    %c0_i32 = arith.constant 0 : i32
    %c0_i32_0 = arith.constant 0 : i32
    %c0_i32_1 = arith.constant 0 : i32
    return %c0_i32, %c0_i32_0 : i32, i32
  }
  func.func @transform_10(%arg0: i32) -> (i32, i32) {
    %c0_i32 = arith.constant 0 : i32
    %c0_i32_0 = arith.constant 0 : i32
    %c0_i32_1 = arith.constant 0 : i32
    return %c0_i32, %c0_i32_0 : i32, i32
  }
  func.func @transform_11(%arg0: i32) -> (i32, i32) {
    %c0_i32 = arith.constant 0 : i32
    %c0_i32_0 = arith.constant 0 : i32
    %c0_i32_1 = arith.constant 0 : i32
    return %c0_i32, %c0_i32_0 : i32, i32
  }
  func.func @transform_12(%arg0: i32) -> (i32, i32, i32) {
    %c0_i32 = arith.constant 0 : i32
    %c0_i32_0 = arith.constant 0 : i32
    %c0_i32_1 = arith.constant 0 : i32
    return %arg0, %c0_i32, %c0_i32_0 : i32, i32, i32
  }
}

module attributes {stable_mosaic.version = 11 : i64} {
  func.func @_mha_kernel(%arg0: i32, %arg1: memref<1x2x32xbf16, #tpu.memory_space<vmem>>, %arg2: memref<1x2x32xbf16, #tpu.memory_space<vmem>>, %arg3: memref<32x32xbf16, #tpu.memory_space<vmem>>, %arg4: memref<32x32xbf16, #tpu.memory_space<vmem>>, %arg5: memref<32x32xbf16, #tpu.memory_space<vmem>>, %arg6: memref<4x8x32xbf16, #tpu.memory_space<vmem>>, %arg7: memref<1x32xf32, #tpu.memory_space<vmem>>, %arg8: memref<1x32xf32, #tpu.memory_space<vmem>>, %arg9: memref<1x32xf32, #tpu.memory_space<vmem>>, %arg10: memref<1x32xf32, #tpu.memory_space<vmem>>, %arg11: memref<1x32xf32, #tpu.memory_space<vmem>>, %arg12: memref<1x32xf32, #tpu.memory_space<vmem>>, %arg13: memref<1x2x32xbf16, #tpu.memory_space<vmem>>) attributes {dimension_semantics = [#tpu.dimension_semantics<parallel>], iteration_bounds = array<i64: 8>, scalar_prefetch = 0 : i64, scratch_operands = 0 : i64, tpu.core_type = #tpu.core_type<tc>, window_params = [{transform_indices = @transform_0, window_bounds = array<i64: 1, 2, 32>}, {transform_indices = @transform_1, window_bounds = array<i64: 1, 2, 32>}, {pipeline_mode = #tpu.pipeline_mode<synchronous>, transform_indices = @transform_2, window_bounds = array<i64: 32, 32>}, {pipeline_mode = #tpu.pipeline_mode<synchronous>, transform_indices = @transform_3, window_bounds = array<i64: 32, 32>}, {pipeline_mode = #tpu.pipeline_mode<synchronous>, transform_indices = @transform_4, window_bounds = array<i64: 32, 32>}, {pipeline_mode = #tpu.pipeline_mode<synchronous>, transform_indices = @transform_5, window_bounds = array<i64: 4, 8, 32>}, {pipeline_mode = #tpu.pipeline_mode<synchronous>, transform_indices = @transform_6, window_bounds = array<i64: 1, 32>}, {pipeline_mode = #tpu.pipeline_mode<synchronous>, transform_indices = @transform_7, window_bounds = array<i64: 1, 32>}, {pipeline_mode = #tpu.pipeline_mode<synchronous>, transform_indices = @transform_8, window_bounds = array<i64: 1, 32>}, {pipeline_mode = #tpu.pipeline_mode<synchronous>, transform_indices = @transform_9, window_bounds = array<i64: 1, 32>}, {pipeline_mode = #tpu.pipeline_mode<synchronous>, transform_indices = @transform_10, window_bounds = array<i64: 1, 32>}, {pipeline_mode = #tpu.pipeline_mode<synchronous>, transform_indices = @transform_11, window_bounds = array<i64: 1, 32>}, {transform_indices = @transform_12, window_bounds = array<i64: 1, 2, 32>}]} {
    %c0 = arith.constant 0 : index
    %c0_0 = arith.constant 0 : index
    %c0_1 = arith.constant 0 : index
    %0 = vector.load %arg1[%c0, %c0_0, %c0_1] : memref<1x2x32xbf16, #tpu.memory_space<vmem>>, vector<1x2x32xbf16>
    %1 = vector.shape_cast %0 : vector<1x2x32xbf16> to vector<2x32xbf16>
    %c0_2 = arith.constant 0 : index
    %c0_3 = arith.constant 0 : index
    %c0_4 = arith.constant 0 : index
    %2 = vector.load %arg2[%c0_2, %c0_3, %c0_4] : memref<1x2x32xbf16, #tpu.memory_space<vmem>>, vector<1x2x32xbf16>
    %3 = vector.shape_cast %2 : vector<1x2x32xbf16> to vector<2x32xbf16>
    %c0_5 = arith.constant 0 : index
    %c0_6 = arith.constant 0 : index
    %4 = vector.load %arg3[%c0_5, %c0_6] : memref<32x32xbf16, #tpu.memory_space<vmem>>, vector<32x32xbf16>
    %cst = arith.constant dense<0.000000e+00> : vector<2x32xf32>
    %5 = tpu.matmul %1, %4, %cst {dimension_numbers = #tpu.dot_dimension_numbers<[1], [0], [0], [1], [0, 0, 1, 1], [], []>} : vector<2x32xbf16>, vector<32x32xbf16>, vector<2x32xf32> -> vector<2x32xf32>
    %c0_7 = arith.constant 0 : index
    %c0_8 = arith.constant 0 : index
    %6 = vector.load %arg7[%c0_7, %c0_8] : memref<1x32xf32, #tpu.memory_space<vmem>>, vector<1x32xf32>
    %7 = vector.broadcast %6 : vector<1x32xf32> to vector<2x32xf32>
    %8 = arith.addf %5, %7 : vector<2x32xf32>
    %c0_9 = arith.constant 0 : index
    %c0_10 = arith.constant 0 : index
    %9 = vector.load %arg4[%c0_9, %c0_10] : memref<32x32xbf16, #tpu.memory_space<vmem>>, vector<32x32xbf16>
    %cst_11 = arith.constant dense<0.000000e+00> : vector<2x32xf32>
    %10 = tpu.matmul %3, %9, %cst_11 {dimension_numbers = #tpu.dot_dimension_numbers<[1], [0], [0], [1], [0, 0, 1, 1], [], []>} : vector<2x32xbf16>, vector<32x32xbf16>, vector<2x32xf32> -> vector<2x32xf32>
    %c0_12 = arith.constant 0 : index
    %c0_13 = arith.constant 0 : index
    %11 = vector.load %arg8[%c0_12, %c0_13] : memref<1x32xf32, #tpu.memory_space<vmem>>, vector<1x32xf32>
    %12 = vector.broadcast %11 : vector<1x32xf32> to vector<2x32xf32>
    %13 = arith.addf %10, %12 : vector<2x32xf32>
    %c0_14 = arith.constant 0 : index
    %c0_15 = arith.constant 0 : index
    %14 = vector.load %arg5[%c0_14, %c0_15] : memref<32x32xbf16, #tpu.memory_space<vmem>>, vector<32x32xbf16>
    %cst_16 = arith.constant dense<0.000000e+00> : vector<2x32xf32>
    %15 = tpu.matmul %3, %14, %cst_16 {dimension_numbers = #tpu.dot_dimension_numbers<[1], [0], [0], [1], [0, 0, 1, 1], [], []>} : vector<2x32xbf16>, vector<32x32xbf16>, vector<2x32xf32> -> vector<2x32xf32>
    %c0_17 = arith.constant 0 : index
    %c0_18 = arith.constant 0 : index
    %16 = vector.load %arg9[%c0_17, %c0_18] : memref<1x32xf32, #tpu.memory_space<vmem>>, vector<1x32xf32>
    %17 = vector.broadcast %16 : vector<1x32xf32> to vector<2x32xf32>
    %18 = arith.addf %15, %17 : vector<2x32xf32>
    %19 = vector.extract_strided_slice %8 {offsets = [0, 0], sizes = [2, 8], strides = [1, 1]} : vector<2x32xf32> to vector<2x8xf32>
    %20 = arith.truncf %19 : vector<2x8xf32> to vector<2x8xbf16>
    %21 = vector.extract_strided_slice %13 {offsets = [0, 0], sizes = [2, 8], strides = [1, 1]} : vector<2x32xf32> to vector<2x8xf32>
    %22 = arith.truncf %21 : vector<2x8xf32> to vector<2x8xbf16>
    %23 = vector.extract_strided_slice %18 {offsets = [0, 0], sizes = [2, 8], strides = [1, 1]} : vector<2x32xf32> to vector<2x8xf32>
    %24 = arith.truncf %23 : vector<2x8xf32> to vector<2x8xbf16>
    "tpu.trace_start"() <{level = 10 : i32, message = "qd,kd->qk"}> : () -> ()
    %cst_19 = arith.constant dense<0.000000e+00> : vector<2x2xf32>
    %25 = tpu.matmul %20, %22, %cst_19 {dimension_numbers = #tpu.dot_dimension_numbers<[1], [1], [0], [0], [0, 0, 1, 0], [], []>} : vector<2x8xbf16>, vector<2x8xbf16>, vector<2x2xf32> -> vector<2x2xf32>
    "tpu.trace_stop"() : () -> ()
    %cst_20 = arith.constant 0.353553385 : f32
    %26 = vector.broadcast %cst_20 : f32 to vector<2x2xf32>
    %27 = arith.mulf %25, %26 : vector<2x2xf32>
    %cst_21 = arith.constant dense<0xFF800000> : vector<2xf32>
    %28 = vector.multi_reduction <maximumf>, %27, %cst_21 [1] : vector<2x2xf32> to vector<2xf32>
    %29 = vector.shape_cast %28 : vector<2xf32> to vector<2x1xf32>
    %30 = vector.broadcast %29 : vector<2x1xf32> to vector<2x2xf32>
    %31 = arith.subf %27, %30 : vector<2x2xf32>
    %32 = math.exp %31 : vector<2x2xf32>
    %cst_22 = arith.constant dense<0.000000e+00> : vector<2xf32>
    %33 = vector.multi_reduction <add>, %32, %cst_22 [1] : vector<2x2xf32> to vector<2xf32>
    %34 = vector.shape_cast %33 : vector<2xf32> to vector<2x1xf32>
    %35 = tpu.reciprocal %34 {approx = true} : vector<2x1xf32> -> vector<2x1xf32>
    %36 = vector.broadcast %35 : vector<2x1xf32> to vector<2x2xf32>
    %37 = arith.mulf %32, %36 : vector<2x2xf32>
    %38 = arith.truncf %37 : vector<2x2xf32> to vector<2x2xbf16>
    %cst_23 = arith.constant dense<0.000000e+00> : vector<2x8xf32>
    %39 = tpu.matmul %38, %24, %cst_23 {dimension_numbers = #tpu.dot_dimension_numbers<[1], [0], [0], [1], [0, 0, 1, 1], [], []>} : vector<2x2xbf16>, vector<2x8xbf16>, vector<2x8xf32> -> vector<2x8xf32>
    %40 = arith.truncf %39 : vector<2x8xf32> to vector<2x8xbf16>
    %c0_24 = arith.constant 0 : index
    %c0_25 = arith.constant 0 : index
    %c0_26 = arith.constant 0 : index
    %41 = vector.load %arg6[%c0_24, %c0_25, %c0_26] : memref<4x8x32xbf16, #tpu.memory_space<vmem>>, vector<1x8x32xbf16>
    %42 = vector.shape_cast %41 : vector<1x8x32xbf16> to vector<8x32xbf16>
    %cst_27 = arith.constant dense<0.000000e+00> : vector<2x32xf32>
    %43 = tpu.matmul %40, %42, %cst_27 {dimension_numbers = #tpu.dot_dimension_numbers<[1], [0], [0], [1], [0, 0, 1, 1], [], []>} : vector<2x8xbf16>, vector<8x32xbf16>, vector<2x32xf32> -> vector<2x32xf32>
    %44 = vector.extract_strided_slice %8 {offsets = [0, 8], sizes = [2, 8], strides = [1, 1]} : vector<2x32xf32> to vector<2x8xf32>
    %45 = arith.truncf %44 : vector<2x8xf32> to vector<2x8xbf16>
    %46 = vector.extract_strided_slice %13 {offsets = [0, 8], sizes = [2, 8], strides = [1, 1]} : vector<2x32xf32> to vector<2x8xf32>
    %47 = arith.truncf %46 : vector<2x8xf32> to vector<2x8xbf16>
    %48 = vector.extract_strided_slice %18 {offsets = [0, 8], sizes = [2, 8], strides = [1, 1]} : vector<2x32xf32> to vector<2x8xf32>
    %49 = arith.truncf %48 : vector<2x8xf32> to vector<2x8xbf16>
    "tpu.trace_start"() <{level = 10 : i32, message = "qd,kd->qk"}> : () -> ()
    %cst_28 = arith.constant dense<0.000000e+00> : vector<2x2xf32>
    %50 = tpu.matmul %45, %47, %cst_28 {dimension_numbers = #tpu.dot_dimension_numbers<[1], [1], [0], [0], [0, 0, 1, 0], [], []>} : vector<2x8xbf16>, vector<2x8xbf16>, vector<2x2xf32> -> vector<2x2xf32>
    "tpu.trace_stop"() : () -> ()
    %cst_29 = arith.constant 0.353553385 : f32
    %51 = vector.broadcast %cst_29 : f32 to vector<2x2xf32>
    %52 = arith.mulf %50, %51 : vector<2x2xf32>
    %cst_30 = arith.constant dense<0xFF800000> : vector<2xf32>
    %53 = vector.multi_reduction <maximumf>, %52, %cst_30 [1] : vector<2x2xf32> to vector<2xf32>
    %54 = vector.shape_cast %53 : vector<2xf32> to vector<2x1xf32>
    %55 = vector.broadcast %54 : vector<2x1xf32> to vector<2x2xf32>
    %56 = arith.subf %52, %55 : vector<2x2xf32>
    %57 = math.exp %56 : vector<2x2xf32>
    %cst_31 = arith.constant dense<0.000000e+00> : vector<2xf32>
    %58 = vector.multi_reduction <add>, %57, %cst_31 [1] : vector<2x2xf32> to vector<2xf32>
    %59 = vector.shape_cast %58 : vector<2xf32> to vector<2x1xf32>
    %60 = tpu.reciprocal %59 {approx = true} : vector<2x1xf32> -> vector<2x1xf32>
    %61 = vector.broadcast %60 : vector<2x1xf32> to vector<2x2xf32>
    %62 = arith.mulf %57, %61 : vector<2x2xf32>
    %63 = arith.truncf %62 : vector<2x2xf32> to vector<2x2xbf16>
    %cst_32 = arith.constant dense<0.000000e+00> : vector<2x8xf32>
    %64 = tpu.matmul %63, %49, %cst_32 {dimension_numbers = #tpu.dot_dimension_numbers<[1], [0], [0], [1], [0, 0, 1, 1], [], []>} : vector<2x2xbf16>, vector<2x8xbf16>, vector<2x8xf32> -> vector<2x8xf32>
    %65 = arith.truncf %64 : vector<2x8xf32> to vector<2x8xbf16>
    %c1 = arith.constant 1 : index
    %c0_33 = arith.constant 0 : index
    %c0_34 = arith.constant 0 : index
    %66 = vector.load %arg6[%c1, %c0_33, %c0_34] : memref<4x8x32xbf16, #tpu.memory_space<vmem>>, vector<1x8x32xbf16>
    %67 = vector.shape_cast %66 : vector<1x8x32xbf16> to vector<8x32xbf16>
    %cst_35 = arith.constant dense<0.000000e+00> : vector<2x32xf32>
    %68 = tpu.matmul %65, %67, %cst_35 {dimension_numbers = #tpu.dot_dimension_numbers<[1], [0], [0], [1], [0, 0, 1, 1], [], []>} : vector<2x8xbf16>, vector<8x32xbf16>, vector<2x32xf32> -> vector<2x32xf32>
    %69 = arith.addf %43, %68 : vector<2x32xf32>
    %70 = vector.extract_strided_slice %8 {offsets = [0, 16], sizes = [2, 8], strides = [1, 1]} : vector<2x32xf32> to vector<2x8xf32>
    %71 = arith.truncf %70 : vector<2x8xf32> to vector<2x8xbf16>
    %72 = vector.extract_strided_slice %13 {offsets = [0, 16], sizes = [2, 8], strides = [1, 1]} : vector<2x32xf32> to vector<2x8xf32>
    %73 = arith.truncf %72 : vector<2x8xf32> to vector<2x8xbf16>
    %74 = vector.extract_strided_slice %18 {offsets = [0, 16], sizes = [2, 8], strides = [1, 1]} : vector<2x32xf32> to vector<2x8xf32>
    %75 = arith.truncf %74 : vector<2x8xf32> to vector<2x8xbf16>
    "tpu.trace_start"() <{level = 10 : i32, message = "qd,kd->qk"}> : () -> ()
    %cst_36 = arith.constant dense<0.000000e+00> : vector<2x2xf32>
    %76 = tpu.matmul %71, %73, %cst_36 {dimension_numbers = #tpu.dot_dimension_numbers<[1], [1], [0], [0], [0, 0, 1, 0], [], []>} : vector<2x8xbf16>, vector<2x8xbf16>, vector<2x2xf32> -> vector<2x2xf32>
    "tpu.trace_stop"() : () -> ()
    %cst_37 = arith.constant 0.353553385 : f32
    %77 = vector.broadcast %cst_37 : f32 to vector<2x2xf32>
    %78 = arith.mulf %76, %77 : vector<2x2xf32>
    %cst_38 = arith.constant dense<0xFF800000> : vector<2xf32>
    %79 = vector.multi_reduction <maximumf>, %78, %cst_38 [1] : vector<2x2xf32> to vector<2xf32>
    %80 = vector.shape_cast %79 : vector<2xf32> to vector<2x1xf32>
    %81 = vector.broadcast %80 : vector<2x1xf32> to vector<2x2xf32>
    %82 = arith.subf %78, %81 : vector<2x2xf32>
    %83 = math.exp %82 : vector<2x2xf32>
    %cst_39 = arith.constant dense<0.000000e+00> : vector<2xf32>
    %84 = vector.multi_reduction <add>, %83, %cst_39 [1] : vector<2x2xf32> to vector<2xf32>
    %85 = vector.shape_cast %84 : vector<2xf32> to vector<2x1xf32>
    %86 = tpu.reciprocal %85 {approx = true} : vector<2x1xf32> -> vector<2x1xf32>
    %87 = vector.broadcast %86 : vector<2x1xf32> to vector<2x2xf32>
    %88 = arith.mulf %83, %87 : vector<2x2xf32>
    %89 = arith.truncf %88 : vector<2x2xf32> to vector<2x2xbf16>
    %cst_40 = arith.constant dense<0.000000e+00> : vector<2x8xf32>
    %90 = tpu.matmul %89, %75, %cst_40 {dimension_numbers = #tpu.dot_dimension_numbers<[1], [0], [0], [1], [0, 0, 1, 1], [], []>} : vector<2x2xbf16>, vector<2x8xbf16>, vector<2x8xf32> -> vector<2x8xf32>
    %91 = arith.truncf %90 : vector<2x8xf32> to vector<2x8xbf16>
    %c2 = arith.constant 2 : index
    %c0_41 = arith.constant 0 : index
    %c0_42 = arith.constant 0 : index
    %92 = vector.load %arg6[%c2, %c0_41, %c0_42] : memref<4x8x32xbf16, #tpu.memory_space<vmem>>, vector<1x8x32xbf16>
    %93 = vector.shape_cast %92 : vector<1x8x32xbf16> to vector<8x32xbf16>
    %cst_43 = arith.constant dense<0.000000e+00> : vector<2x32xf32>
    %94 = tpu.matmul %91, %93, %cst_43 {dimension_numbers = #tpu.dot_dimension_numbers<[1], [0], [0], [1], [0, 0, 1, 1], [], []>} : vector<2x8xbf16>, vector<8x32xbf16>, vector<2x32xf32> -> vector<2x32xf32>
    %95 = arith.addf %69, %94 : vector<2x32xf32>
    %96 = vector.extract_strided_slice %8 {offsets = [0, 24], sizes = [2, 8], strides = [1, 1]} : vector<2x32xf32> to vector<2x8xf32>
    %97 = arith.truncf %96 : vector<2x8xf32> to vector<2x8xbf16>
    %98 = vector.extract_strided_slice %13 {offsets = [0, 24], sizes = [2, 8], strides = [1, 1]} : vector<2x32xf32> to vector<2x8xf32>
    %99 = arith.truncf %98 : vector<2x8xf32> to vector<2x8xbf16>
    %100 = vector.extract_strided_slice %18 {offsets = [0, 24], sizes = [2, 8], strides = [1, 1]} : vector<2x32xf32> to vector<2x8xf32>
    %101 = arith.truncf %100 : vector<2x8xf32> to vector<2x8xbf16>
    "tpu.trace_start"() <{level = 10 : i32, message = "qd,kd->qk"}> : () -> ()
    %cst_44 = arith.constant dense<0.000000e+00> : vector<2x2xf32>
    %102 = tpu.matmul %97, %99, %cst_44 {dimension_numbers = #tpu.dot_dimension_numbers<[1], [1], [0], [0], [0, 0, 1, 0], [], []>} : vector<2x8xbf16>, vector<2x8xbf16>, vector<2x2xf32> -> vector<2x2xf32>
    "tpu.trace_stop"() : () -> ()
    %cst_45 = arith.constant 0.353553385 : f32
    %103 = vector.broadcast %cst_45 : f32 to vector<2x2xf32>
    %104 = arith.mulf %102, %103 : vector<2x2xf32>
    %cst_46 = arith.constant dense<0xFF800000> : vector<2xf32>
    %105 = vector.multi_reduction <maximumf>, %104, %cst_46 [1] : vector<2x2xf32> to vector<2xf32>
    %106 = vector.shape_cast %105 : vector<2xf32> to vector<2x1xf32>
    %107 = vector.broadcast %106 : vector<2x1xf32> to vector<2x2xf32>
    %108 = arith.subf %104, %107 : vector<2x2xf32>
    %109 = math.exp %108 : vector<2x2xf32>
    %cst_47 = arith.constant dense<0.000000e+00> : vector<2xf32>
    %110 = vector.multi_reduction <add>, %109, %cst_47 [1] : vector<2x2xf32> to vector<2xf32>
    %111 = vector.shape_cast %110 : vector<2xf32> to vector<2x1xf32>
    %112 = tpu.reciprocal %111 {approx = true} : vector<2x1xf32> -> vector<2x1xf32>
    %113 = vector.broadcast %112 : vector<2x1xf32> to vector<2x2xf32>
    %114 = arith.mulf %109, %113 : vector<2x2xf32>
    %115 = arith.truncf %114 : vector<2x2xf32> to vector<2x2xbf16>
    %cst_48 = arith.constant dense<0.000000e+00> : vector<2x8xf32>
    %116 = tpu.matmul %115, %101, %cst_48 {dimension_numbers = #tpu.dot_dimension_numbers<[1], [0], [0], [1], [0, 0, 1, 1], [], []>} : vector<2x2xbf16>, vector<2x8xbf16>, vector<2x8xf32> -> vector<2x8xf32>
    %117 = arith.truncf %116 : vector<2x8xf32> to vector<2x8xbf16>
    %c3 = arith.constant 3 : index
    %c0_49 = arith.constant 0 : index
    %c0_50 = arith.constant 0 : index
    %118 = vector.load %arg6[%c3, %c0_49, %c0_50] : memref<4x8x32xbf16, #tpu.memory_space<vmem>>, vector<1x8x32xbf16>
    %119 = vector.shape_cast %118 : vector<1x8x32xbf16> to vector<8x32xbf16>
    %cst_51 = arith.constant dense<0.000000e+00> : vector<2x32xf32>
    %120 = tpu.matmul %117, %119, %cst_51 {dimension_numbers = #tpu.dot_dimension_numbers<[1], [0], [0], [1], [0, 0, 1, 1], [], []>} : vector<2x8xbf16>, vector<8x32xbf16>, vector<2x32xf32> -> vector<2x32xf32>
    %121 = arith.addf %95, %120 : vector<2x32xf32>
    %122 = arith.extf %1 : vector<2x32xbf16> to vector<2x32xf32>
    %123 = arith.addf %122, %121 : vector<2x32xf32>
    %c0_52 = arith.constant 0 : index
    %c0_53 = arith.constant 0 : index
    %124 = vector.load %arg10[%c0_52, %c0_53] : memref<1x32xf32, #tpu.memory_space<vmem>>, vector<1x32xf32>
    %125 = vector.broadcast %124 : vector<1x32xf32> to vector<2x32xf32>
    %126 = arith.addf %123, %125 : vector<2x32xf32>
    %c0_54 = arith.constant 0 : index
    %c0_55 = arith.constant 0 : index
    %127 = vector.load %arg11[%c0_54, %c0_55] : memref<1x32xf32, #tpu.memory_space<vmem>>, vector<1x32xf32>
    %c0_56 = arith.constant 0 : index
    %c0_57 = arith.constant 0 : index
    %128 = vector.load %arg12[%c0_56, %c0_57] : memref<1x32xf32, #tpu.memory_space<vmem>>, vector<1x32xf32>
    %cst_58 = arith.constant dense<0.000000e+00> : vector<2xf32>
    %129 = vector.multi_reduction <add>, %126, %cst_58 [1] : vector<2x32xf32> to vector<2xf32>
    %130 = vector.shape_cast %129 : vector<2xf32> to vector<2x1xf32>
    %cst_59 = arith.constant 3.200000e+01 : f32
    %131 = vector.broadcast %cst_59 : f32 to vector<2x1xf32>
    %132 = arith.divf %130, %131 : vector<2x1xf32>
    %133 = vector.broadcast %132 : vector<2x1xf32> to vector<2x32xf32>
    %134 = arith.subf %126, %133 : vector<2x32xf32>
    %135 = arith.mulf %134, %134 : vector<2x32xf32>
    %cst_60 = arith.constant dense<0.000000e+00> : vector<2xf32>
    %136 = vector.multi_reduction <add>, %135, %cst_60 [1] : vector<2x32xf32> to vector<2xf32>
    %137 = vector.shape_cast %136 : vector<2xf32> to vector<2x1xf32>
    %cst_61 = arith.constant 3.200000e+01 : f32
    %138 = vector.broadcast %cst_61 : f32 to vector<2x1xf32>
    %139 = arith.divf %137, %138 : vector<2x1xf32>
    %cst_62 = arith.constant 9.99999974E-6 : f32
    %140 = vector.broadcast %cst_62 : f32 to vector<2x1xf32>
    %141 = arith.addf %139, %140 : vector<2x1xf32>
    %142 = math.rsqrt %141 : vector<2x1xf32>
    %143 = vector.broadcast %142 : vector<2x1xf32> to vector<2x32xf32>
    %144 = arith.mulf %134, %143 : vector<2x32xf32>
    %145 = vector.broadcast %127 : vector<1x32xf32> to vector<2x32xf32>
    %146 = arith.mulf %144, %145 : vector<2x32xf32>
    %147 = vector.broadcast %128 : vector<1x32xf32> to vector<2x32xf32>
    %148 = arith.addf %146, %147 : vector<2x32xf32>
    %149 = arith.truncf %148 : vector<2x32xf32> to vector<2x32xbf16>
    %c0_63 = arith.constant 0 : index
    %c0_64 = arith.constant 0 : index
    %c0_65 = arith.constant 0 : index
    %150 = vector.load %arg13[%c0_63, %c0_64, %c0_65] : memref<1x2x32xbf16, #tpu.memory_space<vmem>>, vector<1x2x32xbf16>
    %151 = vector.shape_cast %150 : vector<1x2x32xbf16> to vector<2x32xbf16>
    %152 = vector.shape_cast %149 : vector<2x32xbf16> to vector<1x2x32xbf16>
    tpu.vector_store %arg13[%c0_63, %c0_64, %c0_65], %152 {strides = array<i32>} : memref<1x2x32xbf16, #tpu.memory_space<vmem>>, vector<1x2x32xbf16>,
    return
  }
  func.func @transform_0(%arg0: i32) -> (i32, i32, i32) {
    %c0_i32 = arith.constant 0 : i32
    %c0_i32_0 = arith.constant 0 : i32
    %c0_i32_1 = arith.constant 0 : i32
    return %arg0, %c0_i32, %c0_i32_0 : i32, i32, i32
  }
  func.func @transform_1(%arg0: i32) -> (i32, i32, i32) {
    %c0_i32 = arith.constant 0 : i32
    %c0_i32_0 = arith.constant 0 : i32
    %c0_i32_1 = arith.constant 0 : i32
    return %arg0, %c0_i32, %c0_i32_0 : i32, i32, i32
  }
  func.func @transform_2(%arg0: i32) -> (i32, i32) {
    %c0_i32 = arith.constant 0 : i32
    %c0_i32_0 = arith.constant 0 : i32
    %c0_i32_1 = arith.constant 0 : i32
    return %c0_i32, %c0_i32_0 : i32, i32
  }
  func.func @transform_3(%arg0: i32) -> (i32, i32) {
    %c0_i32 = arith.constant 0 : i32
    %c0_i32_0 = arith.constant 0 : i32
    %c0_i32_1 = arith.constant 0 : i32
    return %c0_i32, %c0_i32_0 : i32, i32
  }
  func.func @transform_4(%arg0: i32) -> (i32, i32) {
    %c0_i32 = arith.constant 0 : i32
    %c0_i32_0 = arith.constant 0 : i32
    %c0_i32_1 = arith.constant 0 : i32
    return %c0_i32, %c0_i32_0 : i32, i32
  }
  func.func @transform_5(%arg0: i32) -> (i32, i32, i32) {
    %c0_i32 = arith.constant 0 : i32
    %c0_i32_0 = arith.constant 0 : i32
    %c0_i32_1 = arith.constant 0 : i32
    %c0_i32_2 = arith.constant 0 : i32
    return %c0_i32, %c0_i32_0, %c0_i32_1 : i32, i32, i32
  }
  func.func @transform_6(%arg0: i32) -> (i32, i32) {
    %c0_i32 = arith.constant 0 : i32
    %c0_i32_0 = arith.constant 0 : i32
    %c0_i32_1 = arith.constant 0 : i32
    return %c0_i32, %c0_i32_0 : i32, i32
  }
  func.func @transform_7(%arg0: i32) -> (i32, i32) {
    %c0_i32 = arith.constant 0 : i32
    %c0_i32_0 = arith.constant 0 : i32
    %c0_i32_1 = arith.constant 0 : i32
    return %c0_i32, %c0_i32_0 : i32, i32
  }
  func.func @transform_8(%arg0: i32) -> (i32, i32) {
    %c0_i32 = arith.constant 0 : i32
    %c0_i32_0 = arith.constant 0 : i32
    %c0_i32_1 = arith.constant 0 : i32
    return %c0_i32, %c0_i32_0 : i32, i32
  }
  func.func @transform_9(%arg0: i32) -> (i32, i32) {
    %c0_i32 = arith.constant 0 : i32
    %c0_i32_0 = arith.constant 0 : i32
    %c0_i32_1 = arith.constant 0 : i32
    return %c0_i32, %c0_i32_0 : i32, i32
  }
  func.func @transform_10(%arg0: i32) -> (i32, i32) {
    %c0_i32 = arith.constant 0 : i32
    %c0_i32_0 = arith.constant 0 : i32
    %c0_i32_1 = arith.constant 0 : i32
    return %c0_i32, %c0_i32_0 : i32, i32
  }
  func.func @transform_11(%arg0: i32) -> (i32, i32) {
    %c0_i32 = arith.constant 0 : i32
    %c0_i32_0 = arith.constant 0 : i32
    %c0_i32_1 = arith.constant 0 : i32
    return %c0_i32, %c0_i32_0 : i32, i32
  }
  func.func @transform_12(%arg0: i32) -> (i32, i32, i32) {
    %c0_i32 = arith.constant 0 : i32
    %c0_i32_0 = arith.constant 0 : i32
    %c0_i32_1 = arith.constant 0 : i32
    return %arg0, %c0_i32, %c0_i32_0 : i32, i32, i32
  }
}

module attributes {stable_mosaic.version = 11 : i64} {
  func.func @_linear_kernel(%arg0: i32, %arg1: i32, %arg2: i32, %arg3: memref<16x32xbf16, #tpu.memory_space<vmem>>, %arg4: memref<32x64xbf16, #tpu.memory_space<vmem>>, %arg5: memref<1x64xf32, #tpu.memory_space<vmem>>, %arg6: memref<16x64xf32, #tpu.memory_space<vmem>>, %arg7: memref<16x64xf32, #tpu.memory_space<vmem>>) attributes {dimension_semantics = [#tpu.dimension_semantics<parallel>, #tpu.dimension_semantics<parallel>, #tpu.dimension_semantics<arbitrary>], iteration_bounds = array<i64: 1, 1, 1>, scalar_prefetch = 0 : i64, scratch_operands = 1 : i64, tpu.core_type = #tpu.core_type<tc>, window_params = [{transform_indices = @transform_0, window_bounds = array<i64: 16, 32>}, {transform_indices = @transform_1, window_bounds = array<i64: 32, 64>}, {transform_indices = @transform_2, window_bounds = array<i64: 1, 64>}, {transform_indices = @transform_3, window_bounds = array<i64: 16, 64>}]} {
    %c0_i32 = arith.constant 0 : i32
    %0 = arith.cmpi eq, %arg2, %c0_i32 : i32
    %1 = arith.extui %0 : i1 to i32
    %c0_i32_0 = arith.constant 0 : i32
    %2 = arith.cmpi ne, %1, %c0_i32_0 : i32
    scf.if %2 {
      %cst_10 = arith.constant 0.000000e+00 : f32
      %12 = vector.broadcast %cst_10 : f32 to vector<16x64xf32>
      %c0_11 = arith.constant 0 : index
      %c0_12 = arith.constant 0 : index
      %13 = vector.load %arg7[%c0_11, %c0_12] : memref<16x64xf32, #tpu.memory_space<vmem>>, vector<16x64xf32>
      tpu.vector_store %arg7[%c0_11, %c0_12], %12 {strides = array<i32>} : memref<16x64xf32, #tpu.memory_space<vmem>>, vector<16x64xf32>,
    } else {
    }
    %c0 = arith.constant 0 : index
    %c0_1 = arith.constant 0 : index
    %3 = vector.load %arg7[%c0, %c0_1] : memref<16x64xf32, #tpu.memory_space<vmem>>, vector<16x64xf32>
    %c0_2 = arith.constant 0 : index
    %c0_3 = arith.constant 0 : index
    %4 = vector.load %arg3[%c0_2, %c0_3] : memref<16x32xbf16, #tpu.memory_space<vmem>>, vector<16x32xbf16>
    %c0_4 = arith.constant 0 : index
    %c0_5 = arith.constant 0 : index
    %5 = vector.load %arg4[%c0_4, %c0_5] : memref<32x64xbf16, #tpu.memory_space<vmem>>, vector<32x64xbf16>
    %cst = arith.constant dense<0.000000e+00> : vector<16x64xf32>
    %6 = tpu.matmul %4, %5, %cst {dimension_numbers = #tpu.dot_dimension_numbers<[1], [0], [0], [1], [0, 0, 1, 1], [], []>} : vector<16x32xbf16>, vector<32x64xbf16>, vector<16x64xf32> -> vector<16x64xf32>
    %7 = arith.addf %3, %6 : vector<16x64xf32>
    %c0_6 = arith.constant 0 : index
    %c0_7 = arith.constant 0 : index
    %8 = vector.load %arg7[%c0_6, %c0_7] : memref<16x64xf32, #tpu.memory_space<vmem>>, vector<16x64xf32>
    tpu.vector_store %arg7[%c0_6, %c0_7], %7 {strides = array<i32>} : memref<16x64xf32, #tpu.memory_space<vmem>>, vector<16x64xf32>,
    %c0_i32_8 = arith.constant 0 : i32
    %9 = arith.cmpi eq, %arg2, %c0_i32_8 : i32
    %10 = arith.extui %9 : i1 to i32
    %c0_i32_9 = arith.constant 0 : i32
    %11 = arith.cmpi ne, %10, %c0_i32_9 : i32
    scf.if %11 {
      %c0_10 = arith.constant 0 : index
      %c0_11 = arith.constant 0 : index
      %12 = vector.load %arg7[%c0_10, %c0_11] : memref<16x64xf32, #tpu.memory_space<vmem>>, vector<16x64xf32>
      %c0_12 = arith.constant 0 : index
      %c0_13 = arith.constant 0 : index
      %13 = vector.load %arg5[%c0_12, %c0_13] : memref<1x64xf32, #tpu.memory_space<vmem>>, vector<1x64xf32>
      %14 = vector.broadcast %13 : vector<1x64xf32> to vector<16x64xf32>
      %15 = arith.addf %12, %14 : vector<16x64xf32>
      %c0_14 = arith.constant 0 : index
      %c0_15 = arith.constant 0 : index
      %16 = vector.load %arg6[%c0_14, %c0_15] : memref<16x64xf32, #tpu.memory_space<vmem>>, vector<16x64xf32>
      tpu.vector_store %arg6[%c0_14, %c0_15], %15 {strides = array<i32>} : memref<16x64xf32, #tpu.memory_space<vmem>>, vector<16x64xf32>,
    } else {
    }
    return
  }
  func.func @transform_0(%arg0: i32, %arg1: i32, %arg2: i32) -> (i32, i32) {
    %c0_i32 = arith.constant 0 : i32
    return %arg0, %arg2 : i32, i32
  }
  func.func @transform_1(%arg0: i32, %arg1: i32, %arg2: i32) -> (i32, i32) {
    %c0_i32 = arith.constant 0 : i32
    return %arg2, %arg1 : i32, i32
  }
  func.func @transform_2(%arg0: i32, %arg1: i32, %arg2: i32) -> (i32, i32) {
    %c0_i32 = arith.constant 0 : i32
    %c0_i32_0 = arith.constant 0 : i32
    return %c0_i32, %arg1 : i32, i32
  }
  func.func @transform_3(%arg0: i32, %arg1: i32, %arg2: i32) -> (i32, i32) {
    %c0_i32 = arith.constant 0 : i32
    return %arg0, %arg1 : i32, i32
  }
}

module attributes {stable_mosaic.version = 11 : i64} {
  func.func @_mha_kernel(%arg0: i32, %arg1: memref<1x2x32xbf16, #tpu.memory_space<vmem>>, %arg2: memref<1x4x32xbf16, #tpu.memory_space<vmem>>, %arg3: memref<32x32xbf16, #tpu.memory_space<vmem>>, %arg4: memref<32x32xbf16, #tpu.memory_space<vmem>>, %arg5: memref<32x32xbf16, #tpu.memory_space<vmem>>, %arg6: memref<4x8x32xbf16, #tpu.memory_space<vmem>>, %arg7: memref<1x32xf32, #tpu.memory_space<vmem>>, %arg8: memref<1x32xf32, #tpu.memory_space<vmem>>, %arg9: memref<1x32xf32, #tpu.memory_space<vmem>>, %arg10: memref<1x32xf32, #tpu.memory_space<vmem>>, %arg11: memref<1x32xf32, #tpu.memory_space<vmem>>, %arg12: memref<1x32xf32, #tpu.memory_space<vmem>>, %arg13: memref<1x2x32xbf16, #tpu.memory_space<vmem>>) attributes {dimension_semantics = [#tpu.dimension_semantics<parallel>], iteration_bounds = array<i64: 8>, scalar_prefetch = 0 : i64, scratch_operands = 0 : i64, tpu.core_type = #tpu.core_type<tc>, window_params = [{transform_indices = @transform_0, window_bounds = array<i64: 1, 2, 32>}, {transform_indices = @transform_1, window_bounds = array<i64: 1, 4, 32>}, {pipeline_mode = #tpu.pipeline_mode<synchronous>, transform_indices = @transform_2, window_bounds = array<i64: 32, 32>}, {pipeline_mode = #tpu.pipeline_mode<synchronous>, transform_indices = @transform_3, window_bounds = array<i64: 32, 32>}, {pipeline_mode = #tpu.pipeline_mode<synchronous>, transform_indices = @transform_4, window_bounds = array<i64: 32, 32>}, {pipeline_mode = #tpu.pipeline_mode<synchronous>, transform_indices = @transform_5, window_bounds = array<i64: 4, 8, 32>}, {pipeline_mode = #tpu.pipeline_mode<synchronous>, transform_indices = @transform_6, window_bounds = array<i64: 1, 32>}, {pipeline_mode = #tpu.pipeline_mode<synchronous>, transform_indices = @transform_7, window_bounds = array<i64: 1, 32>}, {pipeline_mode = #tpu.pipeline_mode<synchronous>, transform_indices = @transform_8, window_bounds = array<i64: 1, 32>}, {pipeline_mode = #tpu.pipeline_mode<synchronous>, transform_indices = @transform_9, window_bounds = array<i64: 1, 32>}, {pipeline_mode = #tpu.pipeline_mode<synchronous>, transform_indices = @transform_10, window_bounds = array<i64: 1, 32>}, {pipeline_mode = #tpu.pipeline_mode<synchronous>, transform_indices = @transform_11, window_bounds = array<i64: 1, 32>}, {transform_indices = @transform_12, window_bounds = array<i64: 1, 2, 32>}]} {
    %c0 = arith.constant 0 : index
    %c0_0 = arith.constant 0 : index
    %c0_1 = arith.constant 0 : index
    %0 = vector.load %arg1[%c0, %c0_0, %c0_1] : memref<1x2x32xbf16, #tpu.memory_space<vmem>>, vector<1x2x32xbf16>
    %1 = vector.shape_cast %0 : vector<1x2x32xbf16> to vector<2x32xbf16>
    %c0_2 = arith.constant 0 : index
    %c0_3 = arith.constant 0 : index
    %c0_4 = arith.constant 0 : index
    %2 = vector.load %arg2[%c0_2, %c0_3, %c0_4] : memref<1x4x32xbf16, #tpu.memory_space<vmem>>, vector<1x4x32xbf16>
    %3 = vector.shape_cast %2 : vector<1x4x32xbf16> to vector<4x32xbf16>
    %c0_5 = arith.constant 0 : index
    %c0_6 = arith.constant 0 : index
    %4 = vector.load %arg3[%c0_5, %c0_6] : memref<32x32xbf16, #tpu.memory_space<vmem>>, vector<32x32xbf16>
    %cst = arith.constant dense<0.000000e+00> : vector<2x32xf32>
    %5 = tpu.matmul %1, %4, %cst {dimension_numbers = #tpu.dot_dimension_numbers<[1], [0], [0], [1], [0, 0, 1, 1], [], []>} : vector<2x32xbf16>, vector<32x32xbf16>, vector<2x32xf32> -> vector<2x32xf32>
    %c0_7 = arith.constant 0 : index
    %c0_8 = arith.constant 0 : index
    %6 = vector.load %arg7[%c0_7, %c0_8] : memref<1x32xf32, #tpu.memory_space<vmem>>, vector<1x32xf32>
    %7 = vector.broadcast %6 : vector<1x32xf32> to vector<2x32xf32>
    %8 = arith.addf %5, %7 : vector<2x32xf32>
    %c0_9 = arith.constant 0 : index
    %c0_10 = arith.constant 0 : index
    %9 = vector.load %arg4[%c0_9, %c0_10] : memref<32x32xbf16, #tpu.memory_space<vmem>>, vector<32x32xbf16>
    %cst_11 = arith.constant dense<0.000000e+00> : vector<4x32xf32>
    %10 = tpu.matmul %3, %9, %cst_11 {dimension_numbers = #tpu.dot_dimension_numbers<[1], [0], [0], [1], [0, 0, 1, 1], [], []>} : vector<4x32xbf16>, vector<32x32xbf16>, vector<4x32xf32> -> vector<4x32xf32>
    %c0_12 = arith.constant 0 : index
    %c0_13 = arith.constant 0 : index
    %11 = vector.load %arg8[%c0_12, %c0_13] : memref<1x32xf32, #tpu.memory_space<vmem>>, vector<1x32xf32>
    %12 = vector.broadcast %11 : vector<1x32xf32> to vector<4x32xf32>
    %13 = arith.addf %10, %12 : vector<4x32xf32>
    %c0_14 = arith.constant 0 : index
    %c0_15 = arith.constant 0 : index
    %14 = vector.load %arg5[%c0_14, %c0_15] : memref<32x32xbf16, #tpu.memory_space<vmem>>, vector<32x32xbf16>
    %cst_16 = arith.constant dense<0.000000e+00> : vector<4x32xf32>
    %15 = tpu.matmul %3, %14, %cst_16 {dimension_numbers = #tpu.dot_dimension_numbers<[1], [0], [0], [1], [0, 0, 1, 1], [], []>} : vector<4x32xbf16>, vector<32x32xbf16>, vector<4x32xf32> -> vector<4x32xf32>
    %c0_17 = arith.constant 0 : index
    %c0_18 = arith.constant 0 : index
    %16 = vector.load %arg9[%c0_17, %c0_18] : memref<1x32xf32, #tpu.memory_space<vmem>>, vector<1x32xf32>
    %17 = vector.broadcast %16 : vector<1x32xf32> to vector<4x32xf32>
    %18 = arith.addf %15, %17 : vector<4x32xf32>
    %19 = vector.extract_strided_slice %8 {offsets = [0, 0], sizes = [2, 8], strides = [1, 1]} : vector<2x32xf32> to vector<2x8xf32>
    %20 = arith.truncf %19 : vector<2x8xf32> to vector<2x8xbf16>
    %21 = vector.extract_strided_slice %13 {offsets = [0, 0], sizes = [4, 8], strides = [1, 1]} : vector<4x32xf32> to vector<4x8xf32>
    %22 = arith.truncf %21 : vector<4x8xf32> to vector<4x8xbf16>
    %23 = vector.extract_strided_slice %18 {offsets = [0, 0], sizes = [4, 8], strides = [1, 1]} : vector<4x32xf32> to vector<4x8xf32>
    %24 = arith.truncf %23 : vector<4x8xf32> to vector<4x8xbf16>
    "tpu.trace_start"() <{level = 10 : i32, message = "qd,kd->qk"}> : () -> ()
    %cst_19 = arith.constant dense<0.000000e+00> : vector<2x4xf32>
    %25 = tpu.matmul %20, %22, %cst_19 {dimension_numbers = #tpu.dot_dimension_numbers<[1], [1], [0], [0], [0, 0, 1, 0], [], []>} : vector<2x8xbf16>, vector<4x8xbf16>, vector<2x4xf32> -> vector<2x4xf32>
    "tpu.trace_stop"() : () -> ()
    %cst_20 = arith.constant 0.353553385 : f32
    %26 = vector.broadcast %cst_20 : f32 to vector<2x4xf32>
    %27 = arith.mulf %25, %26 : vector<2x4xf32>
    %cst_21 = arith.constant dense<0xFF800000> : vector<2xf32>
    %28 = vector.multi_reduction <maximumf>, %27, %cst_21 [1] : vector<2x4xf32> to vector<2xf32>
    %29 = vector.shape_cast %28 : vector<2xf32> to vector<2x1xf32>
    %30 = vector.broadcast %29 : vector<2x1xf32> to vector<2x4xf32>
    %31 = arith.subf %27, %30 : vector<2x4xf32>
    %32 = math.exp %31 : vector<2x4xf32>
    %cst_22 = arith.constant dense<0.000000e+00> : vector<2xf32>
    %33 = vector.multi_reduction <add>, %32, %cst_22 [1] : vector<2x4xf32> to vector<2xf32>
    %34 = vector.shape_cast %33 : vector<2xf32> to vector<2x1xf32>
    %35 = tpu.reciprocal %34 {approx = true} : vector<2x1xf32> -> vector<2x1xf32>
    %36 = vector.broadcast %35 : vector<2x1xf32> to vector<2x4xf32>
    %37 = arith.mulf %32, %36 : vector<2x4xf32>
    %38 = arith.truncf %37 : vector<2x4xf32> to vector<2x4xbf16>
    %cst_23 = arith.constant dense<0.000000e+00> : vector<2x8xf32>
    %39 = tpu.matmul %38, %24, %cst_23 {dimension_numbers = #tpu.dot_dimension_numbers<[1], [0], [0], [1], [0, 0, 1, 1], [], []>} : vector<2x4xbf16>, vector<4x8xbf16>, vector<2x8xf32> -> vector<2x8xf32>
    %40 = arith.truncf %39 : vector<2x8xf32> to vector<2x8xbf16>
    %c0_24 = arith.constant 0 : index
    %c0_25 = arith.constant 0 : index
    %c0_26 = arith.constant 0 : index
    %41 = vector.load %arg6[%c0_24, %c0_25, %c0_26] : memref<4x8x32xbf16, #tpu.memory_space<vmem>>, vector<1x8x32xbf16>
    %42 = vector.shape_cast %41 : vector<1x8x32xbf16> to vector<8x32xbf16>
    %cst_27 = arith.constant dense<0.000000e+00> : vector<2x32xf32>
    %43 = tpu.matmul %40, %42, %cst_27 {dimension_numbers = #tpu.dot_dimension_numbers<[1], [0], [0], [1], [0, 0, 1, 1], [], []>} : vector<2x8xbf16>, vector<8x32xbf16>, vector<2x32xf32> -> vector<2x32xf32>
    %44 = vector.extract_strided_slice %8 {offsets = [0, 8], sizes = [2, 8], strides = [1, 1]} : vector<2x32xf32> to vector<2x8xf32>
    %45 = arith.truncf %44 : vector<2x8xf32> to vector<2x8xbf16>
    %46 = vector.extract_strided_slice %13 {offsets = [0, 8], sizes = [4, 8], strides = [1, 1]} : vector<4x32xf32> to vector<4x8xf32>
    %47 = arith.truncf %46 : vector<4x8xf32> to vector<4x8xbf16>
    %48 = vector.extract_strided_slice %18 {offsets = [0, 8], sizes = [4, 8], strides = [1, 1]} : vector<4x32xf32> to vector<4x8xf32>
    %49 = arith.truncf %48 : vector<4x8xf32> to vector<4x8xbf16>
    "tpu.trace_start"() <{level = 10 : i32, message = "qd,kd->qk"}> : () -> ()
    %cst_28 = arith.constant dense<0.000000e+00> : vector<2x4xf32>
    %50 = tpu.matmul %45, %47, %cst_28 {dimension_numbers = #tpu.dot_dimension_numbers<[1], [1], [0], [0], [0, 0, 1, 0], [], []>} : vector<2x8xbf16>, vector<4x8xbf16>, vector<2x4xf32> -> vector<2x4xf32>
    "tpu.trace_stop"() : () -> ()
    %cst_29 = arith.constant 0.353553385 : f32
    %51 = vector.broadcast %cst_29 : f32 to vector<2x4xf32>
    %52 = arith.mulf %50, %51 : vector<2x4xf32>
    %cst_30 = arith.constant dense<0xFF800000> : vector<2xf32>
    %53 = vector.multi_reduction <maximumf>, %52, %cst_30 [1] : vector<2x4xf32> to vector<2xf32>
    %54 = vector.shape_cast %53 : vector<2xf32> to vector<2x1xf32>
    %55 = vector.broadcast %54 : vector<2x1xf32> to vector<2x4xf32>
    %56 = arith.subf %52, %55 : vector<2x4xf32>
    %57 = math.exp %56 : vector<2x4xf32>
    %cst_31 = arith.constant dense<0.000000e+00> : vector<2xf32>
    %58 = vector.multi_reduction <add>, %57, %cst_31 [1] : vector<2x4xf32> to vector<2xf32>
    %59 = vector.shape_cast %58 : vector<2xf32> to vector<2x1xf32>
    %60 = tpu.reciprocal %59 {approx = true} : vector<2x1xf32> -> vector<2x1xf32>
    %61 = vector.broadcast %60 : vector<2x1xf32> to vector<2x4xf32>
    %62 = arith.mulf %57, %61 : vector<2x4xf32>
    %63 = arith.truncf %62 : vector<2x4xf32> to vector<2x4xbf16>
    %cst_32 = arith.constant dense<0.000000e+00> : vector<2x8xf32>
    %64 = tpu.matmul %63, %49, %cst_32 {dimension_numbers = #tpu.dot_dimension_numbers<[1], [0], [0], [1], [0, 0, 1, 1], [], []>} : vector<2x4xbf16>, vector<4x8xbf16>, vector<2x8xf32> -> vector<2x8xf32>
    %65 = arith.truncf %64 : vector<2x8xf32> to vector<2x8xbf16>
    %c1 = arith.constant 1 : index
    %c0_33 = arith.constant 0 : index
    %c0_34 = arith.constant 0 : index
    %66 = vector.load %arg6[%c1, %c0_33, %c0_34] : memref<4x8x32xbf16, #tpu.memory_space<vmem>>, vector<1x8x32xbf16>
    %67 = vector.shape_cast %66 : vector<1x8x32xbf16> to vector<8x32xbf16>
    %cst_35 = arith.constant dense<0.000000e+00> : vector<2x32xf32>
    %68 = tpu.matmul %65, %67, %cst_35 {dimension_numbers = #tpu.dot_dimension_numbers<[1], [0], [0], [1], [0, 0, 1, 1], [], []>} : vector<2x8xbf16>, vector<8x32xbf16>, vector<2x32xf32> -> vector<2x32xf32>
    %69 = arith.addf %43, %68 : vector<2x32xf32>
    %70 = vector.extract_strided_slice %8 {offsets = [0, 16], sizes = [2, 8], strides = [1, 1]} : vector<2x32xf32> to vector<2x8xf32>
    %71 = arith.truncf %70 : vector<2x8xf32> to vector<2x8xbf16>
    %72 = vector.extract_strided_slice %13 {offsets = [0, 16], sizes = [4, 8], strides = [1, 1]} : vector<4x32xf32> to vector<4x8xf32>
    %73 = arith.truncf %72 : vector<4x8xf32> to vector<4x8xbf16>
    %74 = vector.extract_strided_slice %18 {offsets = [0, 16], sizes = [4, 8], strides = [1, 1]} : vector<4x32xf32> to vector<4x8xf32>
    %75 = arith.truncf %74 : vector<4x8xf32> to vector<4x8xbf16>
    "tpu.trace_start"() <{level = 10 : i32, message = "qd,kd->qk"}> : () -> ()
    %cst_36 = arith.constant dense<0.000000e+00> : vector<2x4xf32>
    %76 = tpu.matmul %71, %73, %cst_36 {dimension_numbers = #tpu.dot_dimension_numbers<[1], [1], [0], [0], [0, 0, 1, 0], [], []>} : vector<2x8xbf16>, vector<4x8xbf16>, vector<2x4xf32> -> vector<2x4xf32>
    "tpu.trace_stop"() : () -> ()
    %cst_37 = arith.constant 0.353553385 : f32
    %77 = vector.broadcast %cst_37 : f32 to vector<2x4xf32>
    %78 = arith.mulf %76, %77 : vector<2x4xf32>
    %cst_38 = arith.constant dense<0xFF800000> : vector<2xf32>
    %79 = vector.multi_reduction <maximumf>, %78, %cst_38 [1] : vector<2x4xf32> to vector<2xf32>
    %80 = vector.shape_cast %79 : vector<2xf32> to vector<2x1xf32>
    %81 = vector.broadcast %80 : vector<2x1xf32> to vector<2x4xf32>
    %82 = arith.subf %78, %81 : vector<2x4xf32>
    %83 = math.exp %82 : vector<2x4xf32>
    %cst_39 = arith.constant dense<0.000000e+00> : vector<2xf32>
    %84 = vector.multi_reduction <add>, %83, %cst_39 [1] : vector<2x4xf32> to vector<2xf32>
    %85 = vector.shape_cast %84 : vector<2xf32> to vector<2x1xf32>
    %86 = tpu.reciprocal %85 {approx = true} : vector<2x1xf32> -> vector<2x1xf32>
    %87 = vector.broadcast %86 : vector<2x1xf32> to vector<2x4xf32>
    %88 = arith.mulf %83, %87 : vector<2x4xf32>
    %89 = arith.truncf %88 : vector<2x4xf32> to vector<2x4xbf16>
    %cst_40 = arith.constant dense<0.000000e+00> : vector<2x8xf32>
    %90 = tpu.matmul %89, %75, %cst_40 {dimension_numbers = #tpu.dot_dimension_numbers<[1], [0], [0], [1], [0, 0, 1, 1], [], []>} : vector<2x4xbf16>, vector<4x8xbf16>, vector<2x8xf32> -> vector<2x8xf32>
    %91 = arith.truncf %90 : vector<2x8xf32> to vector<2x8xbf16>
    %c2 = arith.constant 2 : index
    %c0_41 = arith.constant 0 : index
    %c0_42 = arith.constant 0 : index
    %92 = vector.load %arg6[%c2, %c0_41, %c0_42] : memref<4x8x32xbf16, #tpu.memory_space<vmem>>, vector<1x8x32xbf16>
    %93 = vector.shape_cast %92 : vector<1x8x32xbf16> to vector<8x32xbf16>
    %cst_43 = arith.constant dense<0.000000e+00> : vector<2x32xf32>
    %94 = tpu.matmul %91, %93, %cst_43 {dimension_numbers = #tpu.dot_dimension_numbers<[1], [0], [0], [1], [0, 0, 1, 1], [], []>} : vector<2x8xbf16>, vector<8x32xbf16>, vector<2x32xf32> -> vector<2x32xf32>
    %95 = arith.addf %69, %94 : vector<2x32xf32>
    %96 = vector.extract_strided_slice %8 {offsets = [0, 24], sizes = [2, 8], strides = [1, 1]} : vector<2x32xf32> to vector<2x8xf32>
    %97 = arith.truncf %96 : vector<2x8xf32> to vector<2x8xbf16>
    %98 = vector.extract_strided_slice %13 {offsets = [0, 24], sizes = [4, 8], strides = [1, 1]} : vector<4x32xf32> to vector<4x8xf32>
    %99 = arith.truncf %98 : vector<4x8xf32> to vector<4x8xbf16>
    %100 = vector.extract_strided_slice %18 {offsets = [0, 24], sizes = [4, 8], strides = [1, 1]} : vector<4x32xf32> to vector<4x8xf32>
    %101 = arith.truncf %100 : vector<4x8xf32> to vector<4x8xbf16>
    "tpu.trace_start"() <{level = 10 : i32, message = "qd,kd->qk"}> : () -> ()
    %cst_44 = arith.constant dense<0.000000e+00> : vector<2x4xf32>
    %102 = tpu.matmul %97, %99, %cst_44 {dimension_numbers = #tpu.dot_dimension_numbers<[1], [1], [0], [0], [0, 0, 1, 0], [], []>} : vector<2x8xbf16>, vector<4x8xbf16>, vector<2x4xf32> -> vector<2x4xf32>
    "tpu.trace_stop"() : () -> ()
    %cst_45 = arith.constant 0.353553385 : f32
    %103 = vector.broadcast %cst_45 : f32 to vector<2x4xf32>
    %104 = arith.mulf %102, %103 : vector<2x4xf32>
    %cst_46 = arith.constant dense<0xFF800000> : vector<2xf32>
    %105 = vector.multi_reduction <maximumf>, %104, %cst_46 [1] : vector<2x4xf32> to vector<2xf32>
    %106 = vector.shape_cast %105 : vector<2xf32> to vector<2x1xf32>
    %107 = vector.broadcast %106 : vector<2x1xf32> to vector<2x4xf32>
    %108 = arith.subf %104, %107 : vector<2x4xf32>
    %109 = math.exp %108 : vector<2x4xf32>
    %cst_47 = arith.constant dense<0.000000e+00> : vector<2xf32>
    %110 = vector.multi_reduction <add>, %109, %cst_47 [1] : vector<2x4xf32> to vector<2xf32>
    %111 = vector.shape_cast %110 : vector<2xf32> to vector<2x1xf32>
    %112 = tpu.reciprocal %111 {approx = true} : vector<2x1xf32> -> vector<2x1xf32>
    %113 = vector.broadcast %112 : vector<2x1xf32> to vector<2x4xf32>
    %114 = arith.mulf %109, %113 : vector<2x4xf32>
    %115 = arith.truncf %114 : vector<2x4xf32> to vector<2x4xbf16>
    %cst_48 = arith.constant dense<0.000000e+00> : vector<2x8xf32>
    %116 = tpu.matmul %115, %101, %cst_48 {dimension_numbers = #tpu.dot_dimension_numbers<[1], [0], [0], [1], [0, 0, 1, 1], [], []>} : vector<2x4xbf16>, vector<4x8xbf16>, vector<2x8xf32> -> vector<2x8xf32>
    %117 = arith.truncf %116 : vector<2x8xf32> to vector<2x8xbf16>
    %c3 = arith.constant 3 : index
    %c0_49 = arith.constant 0 : index
    %c0_50 = arith.constant 0 : index
    %118 = vector.load %arg6[%c3, %c0_49, %c0_50] : memref<4x8x32xbf16, #tpu.memory_space<vmem>>, vector<1x8x32xbf16>
    %119 = vector.shape_cast %118 : vector<1x8x32xbf16> to vector<8x32xbf16>
    %cst_51 = arith.constant dense<0.000000e+00> : vector<2x32xf32>
    %120 = tpu.matmul %117, %119, %cst_51 {dimension_numbers = #tpu.dot_dimension_numbers<[1], [0], [0], [1], [0, 0, 1, 1], [], []>} : vector<2x8xbf16>, vector<8x32xbf16>, vector<2x32xf32> -> vector<2x32xf32>
    %121 = arith.addf %95, %120 : vector<2x32xf32>
    %122 = arith.extf %1 : vector<2x32xbf16> to vector<2x32xf32>
    %123 = arith.addf %122, %121 : vector<2x32xf32>
    %c0_52 = arith.constant 0 : index
    %c0_53 = arith.constant 0 : index
    %124 = vector.load %arg10[%c0_52, %c0_53] : memref<1x32xf32, #tpu.memory_space<vmem>>, vector<1x32xf32>
    %125 = vector.broadcast %124 : vector<1x32xf32> to vector<2x32xf32>
    %126 = arith.addf %123, %125 : vector<2x32xf32>
    %c0_54 = arith.constant 0 : index
    %c0_55 = arith.constant 0 : index
    %127 = vector.load %arg11[%c0_54, %c0_55] : memref<1x32xf32, #tpu.memory_space<vmem>>, vector<1x32xf32>
    %c0_56 = arith.constant 0 : index
    %c0_57 = arith.constant 0 : index
    %128 = vector.load %arg12[%c0_56, %c0_57] : memref<1x32xf32, #tpu.memory_space<vmem>>, vector<1x32xf32>
    %cst_58 = arith.constant dense<0.000000e+00> : vector<2xf32>
    %129 = vector.multi_reduction <add>, %126, %cst_58 [1] : vector<2x32xf32> to vector<2xf32>
    %130 = vector.shape_cast %129 : vector<2xf32> to vector<2x1xf32>
    %cst_59 = arith.constant 3.200000e+01 : f32
    %131 = vector.broadcast %cst_59 : f32 to vector<2x1xf32>
    %132 = arith.divf %130, %131 : vector<2x1xf32>
    %133 = vector.broadcast %132 : vector<2x1xf32> to vector<2x32xf32>
    %134 = arith.subf %126, %133 : vector<2x32xf32>
    %135 = arith.mulf %134, %134 : vector<2x32xf32>
    %cst_60 = arith.constant dense<0.000000e+00> : vector<2xf32>
    %136 = vector.multi_reduction <add>, %135, %cst_60 [1] : vector<2x32xf32> to vector<2xf32>
    %137 = vector.shape_cast %136 : vector<2xf32> to vector<2x1xf32>
    %cst_61 = arith.constant 3.200000e+01 : f32
    %138 = vector.broadcast %cst_61 : f32 to vector<2x1xf32>
    %139 = arith.divf %137, %138 : vector<2x1xf32>
    %cst_62 = arith.constant 9.99999974E-6 : f32
    %140 = vector.broadcast %cst_62 : f32 to vector<2x1xf32>
    %141 = arith.addf %139, %140 : vector<2x1xf32>
    %142 = math.rsqrt %141 : vector<2x1xf32>
    %143 = vector.broadcast %142 : vector<2x1xf32> to vector<2x32xf32>
    %144 = arith.mulf %134, %143 : vector<2x32xf32>
    %145 = vector.broadcast %127 : vector<1x32xf32> to vector<2x32xf32>
    %146 = arith.mulf %144, %145 : vector<2x32xf32>
    %147 = vector.broadcast %128 : vector<1x32xf32> to vector<2x32xf32>
    %148 = arith.addf %146, %147 : vector<2x32xf32>
    %149 = arith.truncf %148 : vector<2x32xf32> to vector<2x32xbf16>
    %c0_63 = arith.constant 0 : index
    %c0_64 = arith.constant 0 : index
    %c0_65 = arith.constant 0 : index
    %150 = vector.load %arg13[%c0_63, %c0_64, %c0_65] : memref<1x2x32xbf16, #tpu.memory_space<vmem>>, vector<1x2x32xbf16>
    %151 = vector.shape_cast %150 : vector<1x2x32xbf16> to vector<2x32xbf16>
    %152 = vector.shape_cast %149 : vector<2x32xbf16> to vector<1x2x32xbf16>
    tpu.vector_store %arg13[%c0_63, %c0_64, %c0_65], %152 {strides = array<i32>} : memref<1x2x32xbf16, #tpu.memory_space<vmem>>, vector<1x2x32xbf16>,
    return
  }
  func.func @transform_0(%arg0: i32) -> (i32, i32, i32) {
    %c0_i32 = arith.constant 0 : i32
    %c0_i32_0 = arith.constant 0 : i32
    %c0_i32_1 = arith.constant 0 : i32
    return %arg0, %c0_i32, %c0_i32_0 : i32, i32, i32
  }
  func.func @transform_1(%arg0: i32) -> (i32, i32, i32) {
    %c0_i32 = arith.constant 0 : i32
    %c0_i32_0 = arith.constant 0 : i32
    %c0_i32_1 = arith.constant 0 : i32
    return %arg0, %c0_i32, %c0_i32_0 : i32, i32, i32
  }
  func.func @transform_2(%arg0: i32) -> (i32, i32) {
    %c0_i32 = arith.constant 0 : i32
    %c0_i32_0 = arith.constant 0 : i32
    %c0_i32_1 = arith.constant 0 : i32
    return %c0_i32, %c0_i32_0 : i32, i32
  }
  func.func @transform_3(%arg0: i32) -> (i32, i32) {
    %c0_i32 = arith.constant 0 : i32
    %c0_i32_0 = arith.constant 0 : i32
    %c0_i32_1 = arith.constant 0 : i32
    return %c0_i32, %c0_i32_0 : i32, i32
  }
  func.func @transform_4(%arg0: i32) -> (i32, i32) {
    %c0_i32 = arith.constant 0 : i32
    %c0_i32_0 = arith.constant 0 : i32
    %c0_i32_1 = arith.constant 0 : i32
    return %c0_i32, %c0_i32_0 : i32, i32
  }
  func.func @transform_5(%arg0: i32) -> (i32, i32, i32) {
    %c0_i32 = arith.constant 0 : i32
    %c0_i32_0 = arith.constant 0 : i32
    %c0_i32_1 = arith.constant 0 : i32
    %c0_i32_2 = arith.constant 0 : i32
    return %c0_i32, %c0_i32_0, %c0_i32_1 : i32, i32, i32
  }
  func.func @transform_6(%arg0: i32) -> (i32, i32) {
    %c0_i32 = arith.constant 0 : i32
    %c0_i32_0 = arith.constant 0 : i32
    %c0_i32_1 = arith.constant 0 : i32
    return %c0_i32, %c0_i32_0 : i32, i32
  }
  func.func @transform_7(%arg0: i32) -> (i32, i32) {
    %c0_i32 = arith.constant 0 : i32
    %c0_i32_0 = arith.constant 0 : i32
    %c0_i32_1 = arith.constant 0 : i32
    return %c0_i32, %c0_i32_0 : i32, i32
  }
  func.func @transform_8(%arg0: i32) -> (i32, i32) {
    %c0_i32 = arith.constant 0 : i32
    %c0_i32_0 = arith.constant 0 : i32
    %c0_i32_1 = arith.constant 0 : i32
    return %c0_i32, %c0_i32_0 : i32, i32
  }
  func.func @transform_9(%arg0: i32) -> (i32, i32) {
    %c0_i32 = arith.constant 0 : i32
    %c0_i32_0 = arith.constant 0 : i32
    %c0_i32_1 = arith.constant 0 : i32
    return %c0_i32, %c0_i32_0 : i32, i32
  }
  func.func @transform_10(%arg0: i32) -> (i32, i32) {
    %c0_i32 = arith.constant 0 : i32
    %c0_i32_0 = arith.constant 0 : i32
    %c0_i32_1 = arith.constant 0 : i32
    return %c0_i32, %c0_i32_0 : i32, i32
  }
  func.func @transform_11(%arg0: i32) -> (i32, i32) {
    %c0_i32 = arith.constant 0 : i32
    %c0_i32_0 = arith.constant 0 : i32
    %c0_i32_1 = arith.constant 0 : i32
    return %c0_i32, %c0_i32_0 : i32, i32
  }
  func.func @transform_12(%arg0: i32) -> (i32, i32, i32) {
    %c0_i32 = arith.constant 0 : i32
    %c0_i32_0 = arith.constant 0 : i32
    %c0_i32_1 = arith.constant 0 : i32
    return %arg0, %c0_i32, %c0_i32_0 : i32, i32, i32
  }
}

</mosaic_0001>

<bundles_post_ra>
// kernel: transformer_forward.9
= control target key start
LH: loop header
LB: loop body
LE: loop exit
PB: predicated region body
PF: predicated region fallthrough
CT: control target
= control target key end

     0   :  { %vm54_vm0 = vcmask 261120   ;;  %vm111_vm1 = vcmask 523264   ;;  %v253_v27 = vmov 32.0   ;;  %vm198_vm7 = vcmask 257024   ;;  %s341_s1 = inlined_call_operand.vmem [shape: bf16[32,64], index: 1, kind: input, shape index: {}]   ;;  %s342_s2 = inlined_call_operand.vmem [shape: f32[1,64], index: 2, kind: input, shape index: {}]   ;;  %s343_s0 = inlined_call_operand.vmem [shape: bf16[16,32], index: 0, kind: input, shape index: {}]   ;;  %s344_s4 = inlined_call_operand.vmem [shape: f32[1,32], index: 4, kind: input, shape index: {}]   ;;  %s345_s3 = inlined_call_operand.vmem [shape: bf16[64,32], index: 3, kind: input, shape index: {}]   ;;  %s346_s5 = inlined_call_operand.vmem [shape: f32[1,32], index: 5, kind: input, shape index: {}]   ;;  %s347_s6 = inlined_call_operand.vmem [shape: f32[1,32], index: 6, kind: input, shape index: {}]   ;;  %s348_s7 = inlined_call_operand.vmem [shape: bf16[16,32], index: 7, kind: output, shape index: {}]  }
   0x1   :  { %v237_v0 = vld [vmem:[%s341_s1 + $0x8] sm:$0xff]  ;;  %v236_v1 = vld [vmem:[%s341_s1] sm:$0xff]  ;;  %v241_v3 = vld [vmem:[%s345_s3 + $0x18] sm:$0xff]  ;;  %247 = vrcp.f32 %v253_v27 }
   0x2   :  { %64 = vmatpush.bf16.msra.mxu0 %v237_v0  ;;  %v235_v2 = vld [vmem:[%s343_s0] sm:$0xff]  ;;  %119 = vmatpush.bf16.msra.mxu1 %v241_v3  ;;  %v240_v4 = vld [vmem:[%s345_s3 + $0x10] sm:$0xff]  ;;  %v239_v5 = vld [vmem:[%s345_s3 + $0x8] sm:$0xff] }
   0x3   :  { %v238_v6 = vld [vmem:[%s345_s3] sm:$0xff] }
   0x4   :  { %v243_v8 = vld [vmem:[%s342_s2] ss:$0 sm:$0xff] }
   0x5   :  { %v27_v15 = vld [vmem:[%s343_s0] sm:$0xff]  }
   0x6   :  { %65 = vmatpush.bf16.msra.mxu0 %v236_v1  ;;  %120 = vmatpush.bf16.msra.mxu1 %v240_v4  ;;  %v244_v16 = vld [vmem:[%s344_s4] ss:$0 sm:$0xff]  ;;  %v129_v17 = vunpack.c.l.bf16 %v27_v15  ;;  %v130_v22 = vunpack.c.h.bf16 %v27_v15 }
   0x7   :  { %v248_v28 = vpop.eup %247  ;;  %v245_v58 = vld [vmem:[%s346_s5] ss:$0 sm:$0xff] }
   0x8   :  { %v142_v29 = vmul.f32 32.0, %v248_v28  ;;  %vm146_vm2 = vweird.f32 %v248_v28  ;;  %v246_v61 = vld [vmem:[%s347_s6] ss:$0 sm:$0xff] }
   0x9   :  { %217 = vmatmul.msk.bf16.vlgmr.msra.gmra.mxu0 %vm54_vm0, %v235_v2 }
   0xa   :  { %121 = vmatpush.bf16.msra.mxu1 %v239_v5  ;;  %v143_v30 = vsub.f32 1.0, %v142_v29 }
   0xc   :  { %v144_v31 = vmul.f32 %v248_v28, %v143_v30 }
   0xe   :  { %122 = vmatpush.bf16.msra.mxu1 %v238_v6  ;;  %v145_v32 = vadd.f32 %v248_v28, %v144_v31 }
  0x10   :  { %v147_v33 = vsel %vm146_vm2, %v248_v28, %v145_v32 }
  0x86   :  { %v67_v7 = vpop.f32.mrf.mxu0 }
  0x87   :  { %v68_v9 = vadd.f32 %v243_v8, %v67_v7 }
  0x89   :  { %v72_v12 = vmax.f32 %v68_v9, 0.0 }
  0x8e   :  { %v69_v10 = vpop.f32.mrf.mxu0 }
  0x8f   :  { %v70_v11 = vadd.f32 %v243_v8, %v69_v10 }
  0x91   :  { %v73_v13 = vmax.f32 %v70_v11, 0.0 }
  0x93   :  { %v74_v14 = vpack.c.bf16 %v73_v13, %v72_v12 }
  0x95   :  { %234 = vmatmul.msk.bf16.vlgmr.msra.gmra.mxu1 %vm111_vm1, %v74_v14 }
 0x112   :  { %v124_v18 = vpop.f32.mrf.mxu1 }
 0x113   :  { %v125_v19 = vadd.f32 %v244_v16, %v124_v18 }
 0x115   :  { %v131_v20 = vadd.f32 %v129_v17, %v125_v19 }
 0x117   :  { %v135_v21 = vsel %vm54_vm0, %v131_v20, 0.0 }
 0x118   :  { %136 = vadd.xlane.f32.xlu0 %v135_v21 }
 0x11a   :  { %v126_v23 = vpop.f32.mrf.mxu1 }
 0x11b   :  { %v127_v24 = vadd.f32 %v244_v16, %v126_v23 }
 0x11d   :  { %v132_v25 = vadd.f32 %v130_v22, %v127_v24 }
 0x11f   :  { %v138_v26 = vsel %vm54_vm0, %v132_v25, 0.0 }
 0x120   :  { %139 = vadd.xlane.f32.xlu0 %v138_v26 }
 0x18b   :  { %v137_v34 = vpop.xlane.xlu0 %136 }
 0x18c   :  { %v148_v35 = vmul.f32 %v147_v33, %v137_v34 }
 0x18e   :  { %v150_v36 = vsub.f32 %v131_v20, %v148_v35 }
 0x190   :  { %v152_v37 = vmul.f32 %v150_v36, %v150_v36 }
 0x192   :  { %v154_v38 = vsel %vm54_vm0, %v152_v37, 0.0 }
 0x193   :  { %155 = vadd.xlane.f32.xlu1 %v154_v38  ;;  %v140_v39 = vpop.xlane.xlu0 %139 }
 0x194   :  { %v149_v40 = vmul.f32 %v147_v33, %v140_v39 }
 0x196   :  { %v151_v41 = vsub.f32 %v132_v25, %v149_v40 }
 0x198   :  { %v153_v42 = vmul.f32 %v151_v41, %v151_v41 }
 0x19a   :  { %v157_v43 = vsel %vm54_vm0, %v153_v42, 0.0 }
 0x19b   :  { %158 = vadd.xlane.f32.xlu1 %v157_v43 }
 0x206   :  { %v156_v44 = vpop.xlane.xlu1 %155 }
 0x207   :  { %v160_v45 = vmul.f32 %v156_v44, %v147_v33 }
 0x209   :  { %v162_v46 = vadd.f32 1e-05, %v160_v45 }
 0x20b   :  { %249 = vrsqrt.f32 %v162_v46  ;;  %vm170_vm4 = vweird.f32 %v162_v46 }
 0x20e   :  { %v159_v47 = vpop.xlane.xlu1 %158 }
 0x20f   :  { %v161_v48 = vmul.f32 %v159_v47, %v147_v33 }
 0x211   :  { %v250_v49 = vpop.eup %249  ;;  %v163_v50 = vadd.f32 1e-05, %v161_v48 }
 0x212   :  { %v165_v51 = vmul.f32 %v250_v49, %v162_v46  ;;  %vm171_vm3 = vweird.f32 %v250_v49 }
 0x213   :  { %251 = vrsqrt.f32 %v163_v50  ;;  %vm172_vm5 = vmor %vm170_vm4, %vm171_vm3  ;;  %vm180_vm8 = vweird.f32 %v163_v50 }
 0x214   :  { %v166_v52 = vmul.f32 %v250_v49, %v165_v51 }
 0x216   :  { %v167_v53 = vmul.f32 0.5, %v166_v52 }
 0x218   :  { %v168_v54 = vsub.f32 1.5, %v167_v53 }
 0x219   :  { %v252_v55 = vpop.eup %251 }
 0x21a   :  { %v169_v56 = vmul.f32 %v250_v49, %v168_v54  ;;  %v175_v57 = vmul.f32 %v252_v55, %v163_v50  ;;  %vm181_vm6 = vweird.f32 %v252_v55 }
 0x21b   :  { %vm182_vm9 = vmor %vm180_vm8, %vm181_vm6 }
 0x21c   :  { %v173_v59 = vsel %vm172_vm5, %v250_v49, %v169_v56  ;;  %v176_v60 = vmul.f32 %v252_v55, %v175_v57 }
 0x21d   :  { %v184_v62 = vmul.f32 %v173_v59, %v150_v36 }
 0x21e   :  { %v177_v63 = vmul.f32 0.5, %v176_v60 }
 0x21f   :  { %v189_v0 = vmul.f32 %v245_v58, %v184_v62 }
 0x220   :  { %v178_v1 = vsub.f32 1.5, %v177_v63 }
 0x221   :  { %v194_v2 = vadd.f32 %v246_v61, %v189_v0 }
 0x222   :  { %v179_v3 = vmul.f32 %v252_v55, %v178_v1 }
 0x223   :  { %v196_v4 = vpack.c.bf16 %v194_v2, %v194_v2 }
 0x224   :  { %v183_v5 = vsel %vm182_vm9, %v252_v55, %v179_v3 }
 0x225   :  { %199 = vst.msk [vmem:[%s348_s7] sm:$0xf] %vm198_vm7, %v196_v4  ;;  %v185_v6 = vmul.f32 %v183_v5, %v151_v41 }
 0x227   :  { %v190_v7 = vmul.f32 %v245_v58, %v185_v6 }
 0x229   :  { %v195_v8 = vadd.f32 %v246_v61, %v190_v7 }
 0x22b   :  { %v197_v9 = vpack.c.bf16 %v195_v8, %v195_v8 }
 0x22d   :  { %200 = vst.msk [vmem:[%s348_s7 + $0x4] sm:$0xf] %vm198_vm7, %v197_v9 }

// kernel: transformer_forward.7
= control target key start
LH: loop header
LB: loop body
LE: loop exit
PB: predicated region body
PF: predicated region fallthrough
CT: control target
= control target key end

     0   :  { %s1122_s21 = smov 0   ;;  %s1251_s0 = inlined_call_operand.vmem [shape: bf16[8,2,32], index: 0, kind: input, shape index: {}, may-alias: {0,1}]   ;;  %s1252_s1 = inlined_call_operand.vmem [shape: bf16[8,2,32], index: 1, kind: input, shape index: {}, may-alias: {0,1}]   ;;  %s1253_s2 = inlined_call_operand.vmem [shape: bf16[32,32], index: 2, kind: input, shape index: {}]   ;;  %s1254_s3 = inlined_call_operand.vmem [shape: bf16[32,32], index: 3, kind: input, shape index: {}]   ;;  %s1255_s4 = inlined_call_operand.vmem [shape: bf16[32,32], index: 4, kind: input, shape index: {}]   ;;  %s1256_s5 = inlined_call_operand.vmem [shape: bf16[4,8,32], index: 5, kind: input, shape index: {}]   ;;  %s1257_s6 = inlined_call_operand.vmem [shape: f32[1,32], index: 6, kind: input, shape index: {}]   ;;  %s1258_s7 = inlined_call_operand.vmem [shape: f32[1,32], index: 7, kind: input, shape index: {}]   ;;  %s1259_s8 = inlined_call_operand.vmem [shape: f32[1,32], index: 8, kind: input, shape index: {}]   ;;  %s1260_s9 = inlined_call_operand.vmem [shape: f32[1,32], index: 9, kind: input, shape index: {}]   ;;  %s1261_s10 = inlined_call_operand.vmem [shape: f32[1,32], index: 10, kind: input, shape index: {}]   ;;  %s1262_s11 = inlined_call_operand.vmem [shape: f32[1,32], index: 11, kind: input, shape index: {}]   ;;  %s1263_s12 = inlined_call_operand.vmem [shape: bf16[8,2,32], index: 12, kind: output, shape index: {}]  }
   0x1 LB: > { %s952_s22 = sadd.s32 4294967295, %s1051_s21   ;;  %p956_p0 = scmp.ge.s32.totalorder %s1051_s21, 1  ;;  %s1051_s21 = sphi %s1122_s21, %s22_s21  }
   0x2   : > { %p368_p1 = scmp.lt.s32.totalorder %s1051_s21, 9 }
   0x4   : > { %p369_p2 = pnand %p956_p0, %p368_p1 }
   0x5   : > { %p409_p3 = scmp.lt.s32.totalorder (!%p369_p2), %s952_s22, 7  ;;  %s1053_s25 = smov (!%p369_p2), 112  }
   0x6   : > { %372 = sbr.rel (%p369_p2) target bundleno = 1627 (0x65b), region = 68  ;;  %s1054_s26 = smov (!%p369_p2), 120  }
   0x7   : > { %s1055_s27 = smov (!%p369_p2), 104  }
   0xb   : > { %v1002_v0 = vld [vmem:[%s1253_s2 + $0x8] sm:$0xff]  ;;  %v1001_v2 = vld [vmem:[%s1253_s2] sm:$0xff]  ;;  %s1265_s22 = smov (!%p409_p3, %s952_s22), 7  ;;  %vm441_vm0 = vcmask 261120   ;;  %vm530_vm1 = vcmask 64512   ;;  %vm551_vm2 = vcmask 9216  }
   0xc   : > { %v1004_v1 = vld [vmem:[%s1254_s3 + $0x8] sm:$0xff]  ;;  %451 = vmatpush.bf16.msra.mxu0 %v1002_v0  ;;  %v1003_v3 = vld [vmem:[%s1254_s3] sm:$0xff]  ;;  %s411_s15 = scalar_lea.vmem %s1251_s0, %s1265_s22  ;;  %s414_s18 = scalar_lea.vmem %s1252_s1, %s1265_s22  ;;  %vm568_vm3 = vcmask 1040384   ;;  %vm653_vm4 = vcmask 1043456   ;;  %vm564_vm5 = vcmask 15360   ;;  %vm858_vm6 = vcmask 254976  }
   0xd   : > { %487 = vmatpush.bf16.msra.mxu1 %v1004_v1  ;;  %v1152_v4 = vld [vmem:[%s411_s15] sm:$0x1]  ;;  %v1006_v21 = vld [vmem:[%s1255_s4 + $0x8] sm:$0xff]  ;;  %s417_s16 = scalar_lea.vmem %s1263_s12, %s1265_s22  ;;  %vm897_vm11 = vcmask 253952  }
   0xe   : > { %v420_v5 = vld [vmem:[%s414_s18] sm:$0x1]  ;;  %520 = vmatpush.bf16.msra.mxu2 %v1006_v21 }
   0xf   : > { %v1020_v6 = vld [vmem:[%s1258_s7] ss:$0 sm:$0xff] }
  0x10   : > { %452 = vmatpush.bf16.msra.mxu0 %v1001_v2  ;;  %v1019_v9 = vld [vmem:[%s1257_s6] ss:$0 sm:$0xff] }
  0x11   : > { %488 = vmatpush.bf16.msra.mxu1 %v1003_v3  ;;  %v1005_v22 = vld [vmem:[%s1255_s4] sm:$0xff] }
  0x12   : > { %521 = vmatpush.bf16.msra.mxu2 %v1005_v22  ;;  %v1021_v43 = vld [vmem:[%s1259_s8] ss:$0 sm:$0xff]  ;;  %v993_v22 = vld [vmem:[%s1256_s5 + $0x8] sm:$0xf] }
  0x13   : > { %965 = vmatmul.msk.bf16.vlgmr.msra.gmra.mxu0 %vm441_vm0, %v1152_v4  ;;  %v586_v51 = vld [vmem:[%s1256_s5] sm:$0xf] }
  0x14   : > { %974 = vmatmul.msk.bf16.vlgmr.msra.gmra.mxu1 %vm441_vm0, %v420_v5  ;;  %v674_v53 = vsel %vm653_vm4, %v586_v51, 0 }
  0x15   : > { %983 = vmatmul.msk.bf16.vlgmr.msra.gmra.mxu2 %vm441_vm0, %v420_v5 }
  0x90   : > { %v454_v7 = vpop.f32.mrf.mxu0 }
  0x91   : > { %v490_v8 = vpop.f32.mrf.mxu1  ;;  %v455_v12 = vadd.f32 %v1019_v9, %v454_v7 }
  0x92   : > { %v491_v10 = vadd.f32 %v1020_v6, %v490_v8 }
  0x93   : > { %v527_v16 = vpack.c.bf16 %v455_v12, %v455_v12 }
  0x94   : > { %v528_v11 = vpack.c.bf16 %v491_v10, %v491_v10 }
  0x96   : > { %691 = vrot.lane.b32.xlu2 %v528_v11, %s1053_s25  ;;  %591 = vrot.lane.b32.xlu1 %v528_v11, %s1054_s26  ;;  %v535_v13 = vsel %vm530_vm1, %v528_v11, 0 }
  0x97   : > { %544 = vmatpush.bf16.xpose.msra.mxu3 %v535_v13 }
  0x98   : > { %v456_v14 = vpop.f32.mrf.mxu0  ;;  %v523_v42 = vpop.f32.mrf.mxu2 }
  0x99   : > { %v492_v15 = vpop.f32.mrf.mxu1  ;;  %v524_v44 = vadd.f32 %v1021_v43, %v523_v42 }
  0x9b   : > { %v1189_v46 = vpack.c.bf16 %v524_v44, %v524_v44 }
  0x9d   : > { %v570_v47 = vsel %vm568_vm3, %v1189_v46, 0 }
  0x9e   : > { %689 = vrot.lane.b32.xlu2 %v527_v16, %s1053_s25  ;;  %588 = vrot.lane.b32.xlu1 %v527_v16, %s1054_s26 }
  0x9f   : > { %984 = vmatmul.msk.bf16.vlgmr.msra.gmra.mxu3 %vm530_vm1, %v527_v16  ;;  %579 = vmatpush.bf16.msrb.mxu0 %v570_v47 }
  0xa0   : > { %v525_v45 = vpop.f32.mrf.mxu2 }
  0xa3   : > { %683 = vmatpush.bf16.msra.mxu0 %v674_v53  ;;  %v997_v53 = vld [vmem:[%s1256_s5 + $0xc] sm:$0xf] }
  0xa6   : > { %769 = vrot.lane.b32.xlu1 %v527_v16, %s1055_s27 }
  0xf0   : > { %v692_v17 = vpop.permute.xlu2 %691 }
  0xf1   : > { %v697_v20 = vsel %vm530_vm1, %v692_v17, 0 }
  0xf8   : > { %v690_v24 = vpop.permute.xlu2 %689 }
 0x108   : > { %v592_v18 = vpop.permute.xlu1 %591 }
 0x109   : > { %v597_v19 = vsel %vm530_vm1, %v592_v18, 0 }
 0x10a   : > { %606 = vmatpush.bf16.xpose.msrb.mxu1 %v597_v19  ;;  %v988_v19 = vld [vmem:[%s1256_s5 + $0x4] sm:$0xf] }
 0x110   : > { %v589_v23 = vpop.permute.xlu1 %588 }
 0x111   : > { %986 = vmatmul.msk.bf16.vlgmr.msrb.gmra.mxu1 %vm530_vm1, %v589_v23 }
 0x112   : > { %706 = vmatpush.bf16.xpose.msra.mxu1 %v697_v20  ;;  %v655_v20 = vsel %vm653_vm4, %v988_v19, 0 }
 0x113   : > { %664 = vmatpush.bf16.msrb.mxu3 %v655_v20 }
 0x118   : > { %v770_v52 = vpop.permute.xlu1 %769 }
 0x121   : > { %991 = vmatmul.msk.bf16.vlgmr.msra.gmra.mxu1 %vm530_vm1, %v690_v24  ;;  %v753_v24 = vsel %vm653_vm4, %v993_v22, 0  ;;  %v1023_v22 = vld [vmem:[%s1261_s10] ss:$0 sm:$0xff] }
 0x122   : > { %v546_v25 = vpop.f32.mrf.mxu3  ;;  %762 = vmatpush.bf16.msra.mxu3 %v753_v24  ;;  %v1024_v24 = vld [vmem:[%s1262_s11] ss:$0 sm:$0xff] }
 0x123   : > { %v550_v26 = vmul.f32 0.35355338, %v546_v25 }
 0x125   : > { %v552_v27 = vsel %vm551_vm2, %v550_v26, -inf }
 0x126   : > { %553 = vmax.xlane.f32.xlu0 %v552_v27 }
 0x12a   : > { %v548_v28 = vpop.f32.mrf.mxu3 }
 0x18e   : > { %v608_v29 = vpop.f32.mrf.mxu1 }
 0x18f   : > { %v612_v30 = vmul.f32 0.35355338, %v608_v29 }
 0x191   : > { %v613_v31 = vsel %vm551_vm2, %v612_v30, -inf }
 0x192   : > { %614 = vmax.xlane.f32.xlu2 %v613_v31 }
 0x196   : > { %v610_v32 = vpop.f32.mrf.mxu1 }
 0x199   : > { %v554_v33 = vpop.xlane.xlu0 %553 }
 0x19a   : > { %v555_v34 = vsub.f32 %v550_v26, %v554_v33 }
 0x19c   : > { %v556_v35 = vmul.f32 1.442695, %v555_v34 }
 0x19e   : > { %1025 = vpow2.f32 %v556_v35  ;;  %v708_v36 = vpop.f32.mrf.mxu1 }
 0x19f   : > { %v712_v37 = vmul.f32 0.35355338, %v708_v36 }
 0x1a1   : > { %v713_v38 = vsel %vm551_vm2, %v712_v37, -inf }
 0x1a2   : > { %714 = vmax.xlane.f32.xlu1 %v713_v38 }
 0x1a4   : > { %v1026_v39 = vpop.eup %1025 }
 0x1a5   : > { %v558_v40 = vsel %vm551_vm2, %v1026_v39, 0.0 }
 0x1a6   : > { %559 = vadd.xlane.f32.xlu0 %v558_v40  ;;  %v710_v41 = vpop.f32.mrf.mxu1 }
 0x1ba   : > { %771 = vrot.lane.b32.xlu0 %v528_v11, %s1055_s27 }
 0x205   : > { %v615_v48 = vpop.xlane.xlu2 %614 }
 0x206   : > { %v616_v49 = vsub.f32 %v612_v30, %v615_v48 }
 0x208   : > { %v617_v50 = vmul.f32 1.442695, %v616_v49 }
 0x20a   : > { %1027 = vpow2.f32 %v617_v50 }
 0x210   : > { %v1028_v54 = vpop.eup %1027 }
 0x211   : > { %v619_v55 = vsel %vm551_vm2, %v1028_v54, 0.0 }
 0x212   : > { %620 = vadd.xlane.f32.xlu2 %v619_v55 }
 0x215   : > { %v715_v56 = vpop.xlane.xlu1 %714 }
 0x216   : > { %v716_v57 = vsub.f32 %v712_v37, %v715_v56 }
 0x218   : > { %v717_v58 = vmul.f32 1.442695, %v716_v57  ;;  %v849_v57 = vunpack.c.l.bf16 %v1152_v4 }
 0x219   : > { %v560_v59 = vpop.xlane.xlu0 %559 }
 0x21a   : > { %1029 = vpow2.f32 %v717_v58 }
 0x21b   : > { %1031 = vrcp.f32 %v560_v59 }
 0x220   : > { %v1030_v60 = vpop.eup %1029 }
 0x221   : > { %v1032_v61 = vpop.eup %1031  ;;  %v719_v62 = vsel %vm551_vm2, %v1030_v60, 0.0 }
 0x222   : > { %v562_v63 = vmul.f32 %v1032_v61, %v1026_v39  ;;  %720 = vadd.xlane.f32.xlu1 %v719_v62 }
 0x224   : > { %v563_v0 = vpack.c.bf16 %v562_v63, %v562_v63 }
 0x226   : > { %985 = vmatmul.msk.bf16.vlgmr.msrb.gmra.mxu0 %vm564_vm5, %v563_v0 }
 0x22a   : > { %626 = vrot.lane.b32.xlu2 %v1189_v46, %s1054_s26 }
 0x22c   : > { %v772_v1 = vpop.permute.xlu0 %771 }
 0x22d   : > { %v777_v2 = vsel %vm530_vm1, %v772_v1, 0  ;;  %v1056_v1 = vmov 32.0  }
 0x22e   : > { %786 = vmatpush.bf16.xpose.msrb.mxu0 %v777_v2 }
 0x23b   : > { %725 = vrot.lane.b32.xlu1 %v1189_v46, %s1053_s25 }
 0x285   : > { %v621_v3 = vpop.xlane.xlu2 %620 }
 0x286   : > { %1033 = vrcp.f32 %v621_v3 }
 0x28c   : > { %v1034_v5 = vpop.eup %1033 }
 0x28d   : > { %v623_v6 = vmul.f32 %v1034_v5, %v1028_v54  ;;  %v627_v7 = vpop.permute.xlu2 %626  ;;  %v833_v54 = vsel %vm653_vm4, %v997_v53, 0 }
 0x28e   : > { %v632_v8 = vsel %vm568_vm3, %v627_v7, 0 }
 0x28f   : > { %641 = vmatpush.bf16.msrb.mxu2 %v632_v8  ;;  %v624_v9 = vpack.c.bf16 %v623_v6, %v623_v6 }
 0x292   : > { %987 = vmatmul.msk.bf16.vlgmr.msrb.gmra.mxu2 %vm564_vm5, %v624_v9 }
 0x295   : > { %v721_v10 = vpop.xlane.xlu1 %720 }
 0x296   : > { %1035 = vrcp.f32 %v721_v10 }
 0x29c   : > { %v1036_v13 = vpop.eup %1035 }
 0x29d   : > { %v723_v15 = vmul.f32 %v1036_v13, %v1030_v60  ;;  %v1022_v60 = vld [vmem:[%s1260_s9] ss:$0 sm:$0xff] }
 0x29f   : > { %v724_v18 = vpack.c.bf16 %v723_v15, %v723_v15 }
 0x2a3   : > { %v581_v11 = vpop.f32.mrf.mxu0 }
 0x2a4   : > { %v585_v12 = vpack.c.bf16 %v581_v11, %v581_v11 }
 0x2a6   : > { %990 = vmatmul.msk.bf16.vlgmr.msra.gmra.mxu0 %vm530_vm1, %v585_v12 }
 0x2ab   : > { %v583_v14 = vpop.f32.mrf.mxu0 }
 0x2ad   : > { %v726_v16 = vpop.permute.xlu1 %725 }
 0x2ae   : > { %v731_v17 = vsel %vm568_vm3, %v726_v16, 0 }
 0x2af   : > { %740 = vmatpush.bf16.msra.mxu2 %v731_v17 }
 0x2b2   : > { %992 = vmatmul.msk.bf16.vlgmr.msra.gmra.mxu2 %vm564_vm5, %v724_v18 }
 0x2b3   : > { %842 = vmatpush.bf16.msrb.mxu2 %v833_v54 }
 0x2b6   : > { %995 = vmatmul.msk.bf16.vlgmr.msrb.gmra.mxu0 %vm530_vm1, %v770_v52 }
 0x315   : > { %v643_v21 = vpop.f32.mrf.mxu2 }
 0x316   : > { %v647_v23 = vpack.c.bf16 %v643_v21, %v643_v21 }
 0x318   : > { %989 = vmatmul.msk.bf16.vlgmr.msrb.gmra.mxu3 %vm530_vm1, %v647_v23 }
 0x31d   : > { %v645_v25 = vpop.f32.mrf.mxu2 }
 0x323   : > { %v685_v26 = vpop.f32.mrf.mxu0 }
 0x32b   : > { %v687_v27 = vpop.f32.mrf.mxu0 }
 0x333   : > { %v788_v28 = vpop.f32.mrf.mxu0 }
 0x334   : > { %v792_v29 = vmul.f32 0.35355338, %v788_v28 }
 0x335   : > { %v742_v30 = vpop.f32.mrf.mxu2 }
 0x336   : > { %v746_v31 = vpack.c.bf16 %v742_v30, %v742_v30  ;;  %v793_v32 = vsel %vm551_vm2, %v792_v29, -inf }
 0x337   : > { %794 = vmax.xlane.f32.xlu0 %v793_v32 }
 0x338   : > { %994 = vmatmul.msk.bf16.vlgmr.msra.gmra.mxu3 %vm530_vm1, %v746_v31 }
 0x33b   : > { %v790_v33 = vpop.f32.mrf.mxu0 }
 0x33d   : > { %v744_v34 = vpop.f32.mrf.mxu2 }
 0x39b   : > { %v666_v35 = vpop.f32.mrf.mxu3 }
 0x39c   : > { %v686_v42 = vadd.f32 %v685_v26, %v666_v35 }
 0x3a3   : > { %v668_v36 = vpop.f32.mrf.mxu3 }
 0x3aa   : > { %v795_v37 = vpop.xlane.xlu0 %794 }
 0x3ab   : > { %v796_v38 = vsub.f32 %v792_v29, %v795_v37 }
 0x3ad   : > { %v797_v39 = vmul.f32 1.442695, %v796_v38 }
 0x3af   : > { %1037 = vpow2.f32 %v797_v39 }
 0x3b5   : > { %v1038_v40 = vpop.eup %1037 }
 0x3b6   : > { %v799_v41 = vsel %vm551_vm2, %v1038_v40, 0.0 }
 0x3b7   : > { %800 = vadd.xlane.f32.xlu0 %v799_v41 }
 0x3bb   : > { %v764_v43 = vpop.f32.mrf.mxu3 }
 0x3bc   : > { %v768_v44 = vadd.f32 %v764_v43, %v686_v42 }
 0x3c3   : > { %v766_v45 = vpop.f32.mrf.mxu3 }
 0x3cb   : > { %805 = vrot.lane.b32.xlu0 %v1189_v46, %s1055_s27 }
 0x42a   : > { %v801_v47 = vpop.xlane.xlu0 %800 }
 0x42b   : > { %1039 = vrcp.f32 %v801_v47 }
 0x42c   : > { %1041 = vrcp.f32 %v1056_v1 }
 0x431   : > { %v1040_v48 = vpop.eup %1039 }
 0x432   : > { %v803_v49 = vmul.f32 %v1040_v48, %v1038_v40  ;;  %v1042_v2 = vpop.eup %1041 }
 0x433   : > { %v863_v3 = vmul.f32 32.0, %v1042_v2  ;;  %vm867_vm7 = vweird.f32 %v1042_v2 }
 0x434   : > { %v804_v52 = vpack.c.bf16 %v803_v49, %v803_v49 }
 0x435   : > { %v864_v5 = vsub.f32 1.0, %v863_v3 }
 0x437   : > { %v865_v6 = vmul.f32 %v1042_v2, %v864_v5 }
 0x439   : > { %v866_v4 = vadd.f32 %v1042_v2, %v865_v6 }
 0x43b   : > { %v868_v7 = vsel %vm867_vm7, %v1042_v2, %v866_v4 }
 0x43d   : > { %v806_v50 = vpop.permute.xlu0 %805 }
 0x43e   : > { %v811_v51 = vsel %vm568_vm3, %v806_v50, 0 }
 0x43f   : > { %820 = vmatpush.bf16.msrb.mxu1 %v811_v51 }
 0x442   : > { %996 = vmatmul.msk.bf16.vlgmr.msrb.gmra.mxu1 %vm564_vm5, %v804_v52 }
 0x4bf   : > { %v822_v55 = vpop.f32.mrf.mxu1 }
 0x4c0   : > { %v826_v46 = vpack.c.bf16 %v822_v55, %v822_v55 }
 0x4c2   : > { %998 = vmatmul.msk.bf16.vlgmr.msrb.gmra.mxu2 %vm530_vm1, %v826_v46 }
 0x4c7   : > { %v824_v56 = vpop.f32.mrf.mxu1 }
 0x545   : > { %v844_v58 = vpop.f32.mrf.mxu2 }
 0x546   : > { %v848_v59 = vadd.f32 %v844_v58, %v768_v44 }
 0x548   : > { %v850_v61 = vadd.f32 %v849_v57, %v848_v59 }
 0x54a   : > { %v855_v62 = vadd.f32 %v1022_v60, %v850_v61 }
 0x54c   : > { %v859_v63 = vsel %vm858_vm6, %v855_v62, 0.0 }
 0x54d   : > { %v846_v0 = vpop.f32.mrf.mxu2  ;;  %860 = vadd.xlane.f32.xlu2 %v859_v63 }
 0x5c0   : > { %v861_v8 = vpop.xlane.xlu2 %860 }
 0x5c1   : > { %v869_v9 = vmul.f32 %v868_v7, %v861_v8 }
 0x5c3   : > { %v870_v10 = vsub.f32 %v855_v62, %v869_v9 }
 0x5c5   : > { %v871_v11 = vmul.f32 %v870_v10, %v870_v10 }
 0x5c7   : > { %v872_v12 = vsel %vm858_vm6, %v871_v11, 0.0 }
 0x5c8   : > { %873 = vadd.xlane.f32.xlu1 %v872_v12 }
 0x63b   : > { %v874_v13 = vpop.xlane.xlu1 %873 }
 0x63c   : > { %v875_v14 = vmul.f32 %v874_v13, %v868_v7 }
 0x63e   : > { %v876_v15 = vadd.f32 1e-05, %v875_v14 }
 0x640   : > { %1043 = vrsqrt.f32 %v876_v15  ;;  %vm883_vm9 = vweird.f32 %v876_v15 }
 0x646   : > { %v1044_v16 = vpop.eup %1043 }
 0x647   : > { %v878_v17 = vmul.f32 %v1044_v16, %v876_v15  ;;  %vm884_vm8 = vweird.f32 %v1044_v16 }
 0x648   : > { %vm885_vm10 = vmor %vm883_vm9, %vm884_vm8 }
 0x649   : > { %v879_v18 = vmul.f32 %v1044_v16, %v878_v17 }
 0x64b   : > { %v880_v19 = vmul.f32 0.5, %v879_v18 }
 0x64d   : > { %v881_v20 = vsub.f32 1.5, %v880_v19 }
 0x64f   : > { %v882_v21 = vmul.f32 %v1044_v16, %v881_v20 }
 0x651   : > { %v886_v23 = vsel %vm885_vm10, %v1044_v16, %v882_v21 }
 0x652   : > { %v887_v25 = vmul.f32 %v886_v23, %v870_v10 }
 0x654   : > { %v891_v26 = vmul.f32 %v1023_v22, %v887_v25 }
 0x656   : > { %v895_v27 = vadd.f32 %v1024_v24, %v891_v26 }
 0x658   : > { %v896_v28 = vpack.c.bf16 %v895_v27, %v895_v27 }
 0x65a   : > { %898 = vst.msk [vmem:[%s417_s16] sm:$0x1] %vm897_vm11, %v896_v28 }
 0x65b PF: > { %s22_s21 = sadd.s32 1, %s1051_s21  }
 0x65c   : > { %p19_p4 = scmp.ge.s32.totalorder %s22_s21, 10  }
 0x65e   :  { %21 = sbr.rel (!%p19_p4) target bundleno = 1 (0x1), region = 104 }

// kernel: transformer_forward.8
= control target key start
LH: loop header
LB: loop body
LE: loop exit
PB: predicated region body
PF: predicated region fallthrough
CT: control target
= control target key end

     0   :  { %s1129_s21 = smov 0   ;;  %s1258_s0 = inlined_call_operand.vmem [shape: bf16[8,2,32], index: 0, kind: input, shape index: {}]   ;;  %s1259_s1 = inlined_call_operand.vmem [shape: bf16[8,4,32], index: 1, kind: input, shape index: {}]   ;;  %s1260_s2 = inlined_call_operand.vmem [shape: bf16[32,32], index: 2, kind: input, shape index: {}]   ;;  %s1261_s3 = inlined_call_operand.vmem [shape: bf16[32,32], index: 3, kind: input, shape index: {}]   ;;  %s1262_s4 = inlined_call_operand.vmem [shape: bf16[32,32], index: 4, kind: input, shape index: {}]   ;;  %s1263_s5 = inlined_call_operand.vmem [shape: bf16[4,8,32], index: 5, kind: input, shape index: {}]   ;;  %s1264_s6 = inlined_call_operand.vmem [shape: f32[1,32], index: 6, kind: input, shape index: {}]   ;;  %s1265_s7 = inlined_call_operand.vmem [shape: f32[1,32], index: 7, kind: input, shape index: {}]   ;;  %s1266_s8 = inlined_call_operand.vmem [shape: f32[1,32], index: 8, kind: input, shape index: {}]   ;;  %s1267_s9 = inlined_call_operand.vmem [shape: f32[1,32], index: 9, kind: input, shape index: {}]   ;;  %s1268_s10 = inlined_call_operand.vmem [shape: f32[1,32], index: 10, kind: input, shape index: {}]   ;;  %s1269_s11 = inlined_call_operand.vmem [shape: f32[1,32], index: 11, kind: input, shape index: {}]   ;;  %s1270_s12 = inlined_call_operand.vmem [shape: bf16[8,2,32], index: 12, kind: output, shape index: {}]  }
   0x1 LB: > { %s958_s22 = sadd.s32 4294967295, %s1058_s21   ;;  %p962_p0 = scmp.ge.s32.totalorder %s1058_s21, 1  ;;  %s1058_s21 = sphi %s1129_s21, %s22_s21  }
   0x2   : > { %p369_p1 = scmp.lt.s32.totalorder %s1058_s21, 9 }
   0x4   : > { %p370_p2 = pnand %p962_p0, %p369_p1 }
   0x5   : > { %p411_p3 = scmp.lt.s32.totalorder (!%p370_p2), %s958_s22, 7  ;;  %s1060_s26 = smov (!%p370_p2), 112  }
   0x6   : > { %373 = sbr.rel (%p370_p2) target bundleno = 1627 (0x65b), region = 68  ;;  %s1061_s27 = smov (!%p370_p2), 120  }
   0x7   : > { %s1062_s28 = smov (!%p370_p2), 104  }
   0xb   : > { %v1009_v0 = vld [vmem:[%s1260_s2 + $0x8] sm:$0xff]  ;;  %v1008_v2 = vld [vmem:[%s1260_s2] sm:$0xff]  ;;  %s1272_s22 = smov (!%p411_p3, %s958_s22), 7  ;;  %vm444_vm0 = vcmask 261120   ;;  %vm533_vm1 = vcmask 64512   ;;  %vm554_vm2 = vcmask 25600  }
   0xc   : > { %v1011_v1 = vld [vmem:[%s1261_s3 + $0x8] sm:$0xff]  ;;  %454 = vmatpush.bf16.msra.mxu0 %v1009_v0  ;;  %v1010_v3 = vld [vmem:[%s1261_s3] sm:$0xff]  ;;  %s413_s15 = scalar_lea.vmem %s1258_s0, %s1272_s22  ;;  %s963_s16 = sshll.u32 %s1272_s22, 1  ;;  %vm571_vm3 = vcmask 1041408   ;;  %vm656_vm4 = vcmask 1043456   ;;  %vm567_vm5 = vcmask 31744  }
   0xd   : > { %490 = vmatpush.bf16.msra.mxu1 %v1011_v1  ;;  %v1156_v4 = vld [vmem:[%s413_s15] sm:$0x1]  ;;  %s417_s19 = scalar_lea.vmem %s1259_s1, %s963_s16  ;;  %v1013_v21 = vld [vmem:[%s1262_s4 + $0x8] sm:$0xff]  ;;  %vm861_vm6 = vcmask 254976   ;;  %s420_s17 = scalar_lea.vmem %s1270_s12, %s1272_s22  ;;  %vm900_vm11 = vcmask 253952  }
   0xe   : > { %v423_v5 = vld [vmem:[%s417_s19] sm:$0x3]  ;;  %523 = vmatpush.bf16.msra.mxu2 %v1013_v21 }
   0xf   : > { %v1027_v6 = vld [vmem:[%s1265_s7] ss:$0 sm:$0xff] }
  0x10   : > { %455 = vmatpush.bf16.msra.mxu0 %v1008_v2  ;;  %v1026_v9 = vld [vmem:[%s1264_s6] ss:$0 sm:$0xff] }
  0x11   : > { %491 = vmatpush.bf16.msra.mxu1 %v1010_v3  ;;  %v1012_v22 = vld [vmem:[%s1262_s4] sm:$0xff] }
  0x12   : > { %524 = vmatpush.bf16.msra.mxu2 %v1012_v22  ;;  %v1028_v43 = vld [vmem:[%s1266_s8] ss:$0 sm:$0xff]  ;;  %v1000_v22 = vld [vmem:[%s1263_s5 + $0x8] sm:$0xf] }
  0x13   : > { %972 = vmatmul.msk.bf16.vlgmr.msra.gmra.mxu0 %vm444_vm0, %v1156_v4  ;;  %v589_v51 = vld [vmem:[%s1263_s5] sm:$0xf] }
  0x14   : > { %981 = vmatmul.msk.bf16.vlgmr.msra.gmra.mxu1 %vm444_vm0, %v423_v5  ;;  %v677_v53 = vsel %vm656_vm4, %v589_v51, 0 }
  0x15   : > { %990 = vmatmul.msk.bf16.vlgmr.msra.gmra.mxu2 %vm444_vm0, %v423_v5 }
  0x90   : > { %v457_v7 = vpop.f32.mrf.mxu0 }
  0x91   : > { %v493_v8 = vpop.f32.mrf.mxu1  ;;  %v458_v12 = vadd.f32 %v1026_v9, %v457_v7 }
  0x92   : > { %v494_v10 = vadd.f32 %v1027_v6, %v493_v8 }
  0x93   : > { %v530_v16 = vpack.c.bf16 %v458_v12, %v458_v12 }
  0x94   : > { %v531_v11 = vpack.c.bf16 %v494_v10, %v494_v10 }
  0x96   : > { %694 = vrot.lane.b32.xlu2 %v531_v11, %s1060_s26  ;;  %594 = vrot.lane.b32.xlu1 %v531_v11, %s1061_s27  ;;  %v538_v13 = vsel %vm533_vm1, %v531_v11, 0 }
  0x97   : > { %547 = vmatpush.bf16.xpose.msra.mxu3 %v538_v13 }
  0x98   : > { %v459_v14 = vpop.f32.mrf.mxu0  ;;  %v526_v42 = vpop.f32.mrf.mxu2 }
  0x99   : > { %v495_v15 = vpop.f32.mrf.mxu1  ;;  %v527_v44 = vadd.f32 %v1028_v43, %v526_v42 }
  0x9b   : > { %v1196_v46 = vpack.c.bf16 %v527_v44, %v527_v44 }
  0x9d   : > { %v573_v47 = vsel %vm571_vm3, %v1196_v46, 0 }
  0x9e   : > { %692 = vrot.lane.b32.xlu2 %v530_v16, %s1060_s26  ;;  %591 = vrot.lane.b32.xlu1 %v530_v16, %s1061_s27 }
  0x9f   : > { %991 = vmatmul.msk.bf16.vlgmr.msra.gmra.mxu3 %vm533_vm1, %v530_v16  ;;  %582 = vmatpush.bf16.msrb.mxu0 %v573_v47 }
  0xa0   : > { %v528_v45 = vpop.f32.mrf.mxu2 }
  0xa3   : > { %686 = vmatpush.bf16.msra.mxu0 %v677_v53  ;;  %v1004_v53 = vld [vmem:[%s1263_s5 + $0xc] sm:$0xf] }
  0xa6   : > { %772 = vrot.lane.b32.xlu1 %v530_v16, %s1062_s28 }
  0xf0   : > { %v695_v17 = vpop.permute.xlu2 %694 }
  0xf1   : > { %v700_v20 = vsel %vm533_vm1, %v695_v17, 0 }
  0xf8   : > { %v693_v24 = vpop.permute.xlu2 %692 }
 0x108   : > { %v595_v18 = vpop.permute.xlu1 %594 }
 0x109   : > { %v600_v19 = vsel %vm533_vm1, %v595_v18, 0 }
 0x10a   : > { %609 = vmatpush.bf16.xpose.msrb.mxu1 %v600_v19  ;;  %v995_v19 = vld [vmem:[%s1263_s5 + $0x4] sm:$0xf] }
 0x110   : > { %v592_v23 = vpop.permute.xlu1 %591 }
 0x111   : > { %993 = vmatmul.msk.bf16.vlgmr.msrb.gmra.mxu1 %vm533_vm1, %v592_v23 }
 0x112   : > { %709 = vmatpush.bf16.xpose.msra.mxu1 %v700_v20  ;;  %v658_v20 = vsel %vm656_vm4, %v995_v19, 0 }
 0x113   : > { %667 = vmatpush.bf16.msrb.mxu3 %v658_v20 }
 0x118   : > { %v773_v52 = vpop.permute.xlu1 %772 }
 0x121   : > { %998 = vmatmul.msk.bf16.vlgmr.msra.gmra.mxu1 %vm533_vm1, %v693_v24  ;;  %v756_v24 = vsel %vm656_vm4, %v1000_v22, 0  ;;  %v1030_v22 = vld [vmem:[%s1268_s10] ss:$0 sm:$0xff] }
 0x122   : > { %v549_v25 = vpop.f32.mrf.mxu3  ;;  %765 = vmatpush.bf16.msra.mxu3 %v756_v24  ;;  %v1031_v24 = vld [vmem:[%s1269_s11] ss:$0 sm:$0xff] }
 0x123   : > { %v553_v26 = vmul.f32 0.35355338, %v549_v25 }
 0x125   : > { %v555_v27 = vsel %vm554_vm2, %v553_v26, -inf }
 0x126   : > { %556 = vmax.xlane.f32.xlu0 %v555_v27 }
 0x12a   : > { %v551_v28 = vpop.f32.mrf.mxu3 }
 0x18e   : > { %v611_v29 = vpop.f32.mrf.mxu1 }
 0x18f   : > { %v615_v30 = vmul.f32 0.35355338, %v611_v29 }
 0x191   : > { %v616_v31 = vsel %vm554_vm2, %v615_v30, -inf }
 0x192   : > { %617 = vmax.xlane.f32.xlu2 %v616_v31 }
 0x196   : > { %v613_v32 = vpop.f32.mrf.mxu1 }
 0x199   : > { %v557_v33 = vpop.xlane.xlu0 %556 }
 0x19a   : > { %v558_v34 = vsub.f32 %v553_v26, %v557_v33 }
 0x19c   : > { %v559_v35 = vmul.f32 1.442695, %v558_v34 }
 0x19e   : > { %1032 = vpow2.f32 %v559_v35  ;;  %v711_v36 = vpop.f32.mrf.mxu1 }
 0x19f   : > { %v715_v37 = vmul.f32 0.35355338, %v711_v36 }
 0x1a1   : > { %v716_v38 = vsel %vm554_vm2, %v715_v37, -inf }
 0x1a2   : > { %717 = vmax.xlane.f32.xlu1 %v716_v38 }
 0x1a4   : > { %v1033_v39 = vpop.eup %1032 }
 0x1a5   : > { %v561_v40 = vsel %vm554_vm2, %v1033_v39, 0.0 }
 0x1a6   : > { %562 = vadd.xlane.f32.xlu0 %v561_v40  ;;  %v713_v41 = vpop.f32.mrf.mxu1 }
 0x1ba   : > { %774 = vrot.lane.b32.xlu0 %v531_v11, %s1062_s28 }
 0x205   : > { %v618_v48 = vpop.xlane.xlu2 %617 }
 0x206   : > { %v619_v49 = vsub.f32 %v615_v30, %v618_v48 }
 0x208   : > { %v620_v50 = vmul.f32 1.442695, %v619_v49 }
 0x20a   : > { %1034 = vpow2.f32 %v620_v50 }
 0x210   : > { %v1035_v54 = vpop.eup %1034 }
 0x211   : > { %v622_v55 = vsel %vm554_vm2, %v1035_v54, 0.0 }
 0x212   : > { %623 = vadd.xlane.f32.xlu2 %v622_v55 }
 0x215   : > { %v718_v56 = vpop.xlane.xlu1 %717 }
 0x216   : > { %v719_v57 = vsub.f32 %v715_v37, %v718_v56 }
 0x218   : > { %v720_v58 = vmul.f32 1.442695, %v719_v57  ;;  %v852_v57 = vunpack.c.l.bf16 %v1156_v4 }
 0x219   : > { %v563_v59 = vpop.xlane.xlu0 %562 }
 0x21a   : > { %1036 = vpow2.f32 %v720_v58 }
 0x21b   : > { %1038 = vrcp.f32 %v563_v59 }
 0x220   : > { %v1037_v60 = vpop.eup %1036 }
 0x221   : > { %v1039_v61 = vpop.eup %1038  ;;  %v722_v62 = vsel %vm554_vm2, %v1037_v60, 0.0 }
 0x222   : > { %v565_v63 = vmul.f32 %v1039_v61, %v1033_v39  ;;  %723 = vadd.xlane.f32.xlu1 %v722_v62 }
 0x224   : > { %v566_v0 = vpack.c.bf16 %v565_v63, %v565_v63 }
 0x226   : > { %992 = vmatmul.msk.bf16.vlgmr.msrb.gmra.mxu0 %vm567_vm5, %v566_v0 }
 0x22a   : > { %629 = vrot.lane.b32.xlu2 %v1196_v46, %s1061_s27 }
 0x22c   : > { %v775_v1 = vpop.permute.xlu0 %774 }
 0x22d   : > { %v780_v2 = vsel %vm533_vm1, %v775_v1, 0  ;;  %v1063_v1 = vmov 32.0  }
 0x22e   : > { %789 = vmatpush.bf16.xpose.msrb.mxu0 %v780_v2 }
 0x23b   : > { %728 = vrot.lane.b32.xlu1 %v1196_v46, %s1060_s26 }
 0x285   : > { %v624_v3 = vpop.xlane.xlu2 %623 }
 0x286   : > { %1040 = vrcp.f32 %v624_v3 }
 0x28c   : > { %v1041_v5 = vpop.eup %1040 }
 0x28d   : > { %v626_v6 = vmul.f32 %v1041_v5, %v1035_v54  ;;  %v630_v7 = vpop.permute.xlu2 %629  ;;  %v836_v54 = vsel %vm656_vm4, %v1004_v53, 0 }
 0x28e   : > { %v635_v8 = vsel %vm571_vm3, %v630_v7, 0 }
 0x28f   : > { %644 = vmatpush.bf16.msrb.mxu2 %v635_v8  ;;  %v627_v9 = vpack.c.bf16 %v626_v6, %v626_v6 }
 0x292   : > { %994 = vmatmul.msk.bf16.vlgmr.msrb.gmra.mxu2 %vm567_vm5, %v627_v9 }
 0x295   : > { %v724_v10 = vpop.xlane.xlu1 %723 }
 0x296   : > { %1042 = vrcp.f32 %v724_v10 }
 0x29c   : > { %v1043_v13 = vpop.eup %1042 }
 0x29d   : > { %v726_v15 = vmul.f32 %v1043_v13, %v1037_v60  ;;  %v1029_v60 = vld [vmem:[%s1267_s9] ss:$0 sm:$0xff] }
 0x29f   : > { %v727_v18 = vpack.c.bf16 %v726_v15, %v726_v15 }
 0x2a3   : > { %v584_v11 = vpop.f32.mrf.mxu0 }
 0x2a4   : > { %v588_v12 = vpack.c.bf16 %v584_v11, %v584_v11 }
 0x2a6   : > { %997 = vmatmul.msk.bf16.vlgmr.msra.gmra.mxu0 %vm533_vm1, %v588_v12 }
 0x2ab   : > { %v586_v14 = vpop.f32.mrf.mxu0 }
 0x2ad   : > { %v729_v16 = vpop.permute.xlu1 %728 }
 0x2ae   : > { %v734_v17 = vsel %vm571_vm3, %v729_v16, 0 }
 0x2af   : > { %743 = vmatpush.bf16.msra.mxu2 %v734_v17 }
 0x2b2   : > { %999 = vmatmul.msk.bf16.vlgmr.msra.gmra.mxu2 %vm567_vm5, %v727_v18 }
 0x2b3   : > { %845 = vmatpush.bf16.msrb.mxu2 %v836_v54 }
 0x2b6   : > { %1002 = vmatmul.msk.bf16.vlgmr.msrb.gmra.mxu0 %vm533_vm1, %v773_v52 }
 0x315   : > { %v646_v21 = vpop.f32.mrf.mxu2 }
 0x316   : > { %v650_v23 = vpack.c.bf16 %v646_v21, %v646_v21 }
 0x318   : > { %996 = vmatmul.msk.bf16.vlgmr.msrb.gmra.mxu3 %vm533_vm1, %v650_v23 }
 0x31d   : > { %v648_v25 = vpop.f32.mrf.mxu2 }
 0x323   : > { %v688_v26 = vpop.f32.mrf.mxu0 }
 0x32b   : > { %v690_v27 = vpop.f32.mrf.mxu0 }
 0x333   : > { %v791_v28 = vpop.f32.mrf.mxu0 }
 0x334   : > { %v795_v29 = vmul.f32 0.35355338, %v791_v28 }
 0x335   : > { %v745_v30 = vpop.f32.mrf.mxu2 }
 0x336   : > { %v749_v31 = vpack.c.bf16 %v745_v30, %v745_v30  ;;  %v796_v32 = vsel %vm554_vm2, %v795_v29, -inf }
 0x337   : > { %797 = vmax.xlane.f32.xlu0 %v796_v32 }
 0x338   : > { %1001 = vmatmul.msk.bf16.vlgmr.msra.gmra.mxu3 %vm533_vm1, %v749_v31 }
 0x33b   : > { %v793_v33 = vpop.f32.mrf.mxu0 }
 0x33d   : > { %v747_v34 = vpop.f32.mrf.mxu2 }
 0x39b   : > { %v669_v35 = vpop.f32.mrf.mxu3 }
 0x39c   : > { %v689_v42 = vadd.f32 %v688_v26, %v669_v35 }
 0x3a3   : > { %v671_v36 = vpop.f32.mrf.mxu3 }
 0x3aa   : > { %v798_v37 = vpop.xlane.xlu0 %797 }
 0x3ab   : > { %v799_v38 = vsub.f32 %v795_v29, %v798_v37 }
 0x3ad   : > { %v800_v39 = vmul.f32 1.442695, %v799_v38 }
 0x3af   : > { %1044 = vpow2.f32 %v800_v39 }
 0x3b5   : > { %v1045_v40 = vpop.eup %1044 }
 0x3b6   : > { %v802_v41 = vsel %vm554_vm2, %v1045_v40, 0.0 }
 0x3b7   : > { %803 = vadd.xlane.f32.xlu0 %v802_v41 }
 0x3bb   : > { %v767_v43 = vpop.f32.mrf.mxu3 }
 0x3bc   : > { %v771_v44 = vadd.f32 %v767_v43, %v689_v42 }
 0x3c3   : > { %v769_v45 = vpop.f32.mrf.mxu3 }
 0x3cb   : > { %808 = vrot.lane.b32.xlu0 %v1196_v46, %s1062_s28 }
 0x42a   : > { %v804_v47 = vpop.xlane.xlu0 %803 }
 0x42b   : > { %1046 = vrcp.f32 %v804_v47 }
 0x42c   : > { %1048 = vrcp.f32 %v1063_v1 }
 0x431   : > { %v1047_v48 = vpop.eup %1046 }
 0x432   : > { %v806_v49 = vmul.f32 %v1047_v48, %v1045_v40  ;;  %v1049_v2 = vpop.eup %1048 }
 0x433   : > { %v866_v3 = vmul.f32 32.0, %v1049_v2  ;;  %vm870_vm7 = vweird.f32 %v1049_v2 }
 0x434   : > { %v807_v52 = vpack.c.bf16 %v806_v49, %v806_v49 }
 0x435   : > { %v867_v5 = vsub.f32 1.0, %v866_v3 }
 0x437   : > { %v868_v6 = vmul.f32 %v1049_v2, %v867_v5 }
 0x439   : > { %v869_v4 = vadd.f32 %v1049_v2, %v868_v6 }
 0x43b   : > { %v871_v7 = vsel %vm870_vm7, %v1049_v2, %v869_v4 }
 0x43d   : > { %v809_v50 = vpop.permute.xlu0 %808 }
 0x43e   : > { %v814_v51 = vsel %vm571_vm3, %v809_v50, 0 }
 0x43f   : > { %823 = vmatpush.bf16.msrb.mxu1 %v814_v51 }
 0x442   : > { %1003 = vmatmul.msk.bf16.vlgmr.msrb.gmra.mxu1 %vm567_vm5, %v807_v52 }
 0x4bf   : > { %v825_v55 = vpop.f32.mrf.mxu1 }
 0x4c0   : > { %v829_v46 = vpack.c.bf16 %v825_v55, %v825_v55 }
 0x4c2   : > { %1005 = vmatmul.msk.bf16.vlgmr.msrb.gmra.mxu2 %vm533_vm1, %v829_v46 }
 0x4c7   : > { %v827_v56 = vpop.f32.mrf.mxu1 }
 0x545   : > { %v847_v58 = vpop.f32.mrf.mxu2 }
 0x546   : > { %v851_v59 = vadd.f32 %v847_v58, %v771_v44 }
 0x548   : > { %v853_v61 = vadd.f32 %v852_v57, %v851_v59 }
 0x54a   : > { %v858_v62 = vadd.f32 %v1029_v60, %v853_v61 }
 0x54c   : > { %v862_v63 = vsel %vm861_vm6, %v858_v62, 0.0 }
 0x54d   : > { %v849_v0 = vpop.f32.mrf.mxu2  ;;  %863 = vadd.xlane.f32.xlu2 %v862_v63 }
 0x5c0   : > { %v864_v8 = vpop.xlane.xlu2 %863 }
 0x5c1   : > { %v872_v9 = vmul.f32 %v871_v7, %v864_v8 }
 0x5c3   : > { %v873_v10 = vsub.f32 %v858_v62, %v872_v9 }
 0x5c5   : > { %v874_v11 = vmul.f32 %v873_v10, %v873_v10 }
 0x5c7   : > { %v875_v12 = vsel %vm861_vm6, %v874_v11, 0.0 }
 0x5c8   : > { %876 = vadd.xlane.f32.xlu1 %v875_v12 }
 0x63b   : > { %v877_v13 = vpop.xlane.xlu1 %876 }
 0x63c   : > { %v878_v14 = vmul.f32 %v877_v13, %v871_v7 }
 0x63e   : > { %v879_v15 = vadd.f32 1e-05, %v878_v14 }
 0x640   : > { %1050 = vrsqrt.f32 %v879_v15  ;;  %vm886_vm9 = vweird.f32 %v879_v15 }
 0x646   : > { %v1051_v16 = vpop.eup %1050 }
 0x647   : > { %v881_v17 = vmul.f32 %v1051_v16, %v879_v15  ;;  %vm887_vm8 = vweird.f32 %v1051_v16 }
 0x648   : > { %vm888_vm10 = vmor %vm886_vm9, %vm887_vm8 }
 0x649   : > { %v882_v18 = vmul.f32 %v1051_v16, %v881_v17 }
 0x64b   : > { %v883_v19 = vmul.f32 0.5, %v882_v18 }
 0x64d   : > { %v884_v20 = vsub.f32 1.5, %v883_v19 }
 0x64f   : > { %v885_v21 = vmul.f32 %v1051_v16, %v884_v20 }
 0x651   : > { %v889_v23 = vsel %vm888_vm10, %v1051_v16, %v885_v21 }
 0x652   : > { %v890_v25 = vmul.f32 %v889_v23, %v873_v10 }
 0x654   : > { %v894_v26 = vmul.f32 %v1030_v22, %v890_v25 }
 0x656   : > { %v898_v27 = vadd.f32 %v1031_v24, %v894_v26 }
 0x658   : > { %v899_v28 = vpack.c.bf16 %v898_v27, %v898_v27 }
 0x65a   : > { %901 = vst.msk [vmem:[%s420_s17] sm:$0x1] %vm900_vm11, %v899_v28 }
 0x65b PF: > { %s22_s21 = sadd.s32 1, %s1058_s21  }
 0x65c   : > { %p19_p4 = scmp.ge.s32.totalorder %s22_s21, 10  }
 0x65e   :  { %21 = sbr.rel (!%p19_p4) target bundleno = 1 (0x1), region = 104 }

// kernel: transformer_forward.10
= control target key start
LH: loop header
LB: loop body
LE: loop exit
PB: predicated region body
PF: predicated region fallthrough
CT: control target
= control target key end

     0   :  { %17 = vsyncpa [#allocation3], 0  ;;  %s1477_s0 = inlined_call_operand.vmem [shape: bf16[8,2,32], index: 0, kind: input, shape index: {}, may-alias: {0,1}]   ;;  %s1478_s1 = inlined_call_operand.vmem [shape: bf16[8,2,32], index: 1, kind: input, shape index: {}, may-alias: {0,1}]   ;;  %s1479_s2 = inlined_call_operand.vmem [shape: bf16[32,32], index: 2, kind: input, shape index: {}]   ;;  %s1480_s3 = inlined_call_operand.vmem [shape: bf16[32,32], index: 3, kind: input, shape index: {}]   ;;  %s1481_s4 = inlined_call_operand.vmem [shape: bf16[32,32], index: 4, kind: input, shape index: {}]   ;;  %s1482_s5 = inlined_call_operand.vmem [shape: bf16[4,8,32], index: 5, kind: input, shape index: {}]   ;;  %s1483_s6 = inlined_call_operand.vmem [shape: f32[1,32], index: 6, kind: input, shape index: {}]   ;;  %s1484_s7 = inlined_call_operand.vmem [shape: f32[1,32], index: 7, kind: input, shape index: {}]   ;;  %s1485_s8 = inlined_call_operand.vmem [shape: f32[1,32], index: 8, kind: input, shape index: {}]   ;;  %s1486_s9 = inlined_call_operand.hbm [shape: f32[1,32], index: 9, kind: input, shape index: {}]   ;;  %s1487_s10 = inlined_call_operand.hbm [shape: f32[1,32], index: 10, kind: input, shape index: {}]   ;;  %s1488_s11 = inlined_call_operand.hbm [shape: f32[1,32], index: 11, kind: input, shape index: {}]   ;;  %s1489_s12 = inlined_call_operand.vmem [shape: bf16[8,2,32], index: 12, kind: output, shape index: {}]  }
   0x1   :  { %18 = vsyncpa [#allocation5], 0  ;;  %s1335_s21 = smov 0  }
   0x2 LB: > { %s362_s24 = sshll.u32 %s1487_s10, 4  ;;  %s1027_s25 = sadd.s32 4294967295, %s1261_s21   ;;  %s1261_s21 = sphi %s1335_s21, %s24_s21   ;;  %s363_s24 = int_to_ptr.hbm [resolvable:$true] %s362_s24 }
   0x3   : > { %p1029_p0 = scmp.ge.s32.totalorder %s1261_s21, 1  ;;  %p317_p1 = scmp.lt.s32.totalorder %s1261_s21, 9 }
   0x4   : > { %p1110_p2 = scmp.eq.s32.totalorder %s1027_s25, 0  ;;  %s1263_s27 = smov [#allocation4]  }
   0x5   : > { %p1346_p3 = pnand %p1029_p0, %p317_p1  ;;  %s364_s28 = sshll.u32 %s1263_s27, 4  ;;  %s365_s28 = int_to_ptr.vmem [resolvable:$true] %s364_s28 }
   0x6   : > { %s350_s13 = sshll.u32 %s1486_s9, 4  ;;  %s374_s16 = sshll.u32 %s1488_s11, 4  ;;  %s351_s13 = int_to_ptr.hbm [resolvable:$true] %s350_s13  ;;  %s375_s16 = int_to_ptr.hbm [resolvable:$true] %s374_s16 }
   0x7   : > { %p1100_p4 = pneg %p1346_p3  ;;  %s1264_s17 = smov [#allocation2]  }
   0x8   : > { %s352_s18 = sshll.u32 %s1264_s17, 4  ;;  %s1265_s19 = smov [#allocation6]   ;;  %s353_s18 = int_to_ptr.vmem [resolvable:$true] %s352_s18 }
   0x9   : > { %p1101_p5 = pnand %p1110_p2, %p1100_p4  ;;  %s376_s20 = sshll.u32 %s1265_s19, 4  ;;  %s377_s20 = int_to_ptr.vmem [resolvable:$true] %s376_s20 }
   0xa   : > { %401 = sbr.rel (%p1346_p3) target bundleno = 1634 (0x662), region = 68 }
   0xb   : > { %1106 = dma.hbm_to_vmem [thread:$0]  (!%p1101_p5), %s363_s24, 16, %s365_s28, [#allocation5]  }
   0xc   : > { %1103 = dma.hbm_to_vmem [thread:$0]  (!%p1101_p5), %s351_s13, 16, %s353_s18, [#allocation3]  }
   0xd   : > { %1109 = dma.hbm_to_vmem [thread:$0]  (!%p1101_p5), %s375_s16, 16, %s377_s20, [#allocation5]  }
   0xf   : > { %1252 = dma.done.wait (%p1110_p2), [#allocation3], 16  }
  0x10   : > { %1254 = vsyncadd (%p1110_p2), [#allocation3], 4294967280 }
  0x11   : > { %1256 = dma.done.wait (%p1110_p2), [#allocation5], 32  }
  0x12   : > { %1258 = vsyncadd (%p1110_p2), [#allocation5], 4294967264  ;;  %p453_p6 = scmp.lt.s32.totalorder %s1027_s25, 7  ;;  %v1083_v0 = vld [vmem:[%s1479_s2 + $0x8] sm:$0xff]  ;;  %v1082_v2 = vld [vmem:[%s1479_s2] sm:$0xff]  ;;  %vm485_vm0 = vcmask 261120  }
  0x13   : > { %v1085_v1 = vld [vmem:[%s1480_s3 + $0x8] sm:$0xff]  ;;  %495 = vmatpush.bf16.msra.mxu0 %v1083_v0  ;;  %v1084_v3 = vld [vmem:[%s1480_s3] sm:$0xff]  ;;  %vm574_vm1 = vcmask 64512   ;;  %s1266_s24 = smov 112   ;;  %s1267_s26 = smov 120   ;;  %vm595_vm2 = vcmask 9216  }
  0x14   : > { %s1492_s25 = smov (!%p453_p6, %s1027_s25), 7  ;;  %531 = vmatpush.bf16.msra.mxu1 %v1085_v1  ;;  %v1132_v6 = vld [vmem:[%s1484_s7] ss:$0 sm:$0xff]  ;;  %s1268_s27 = smov 104   ;;  %v1087_v21 = vld [vmem:[%s1481_s4 + $0x8] sm:$0xff]  ;;  %vm612_vm3 = vcmask 1040384  }
  0x15   : > { %s455_s15 = scalar_lea.vmem %s1477_s0, %s1492_s25  ;;  %s458_s18 = scalar_lea.vmem %s1478_s1, %s1492_s25  ;;  %v1131_v9 = vld [vmem:[%s1483_s6] ss:$0 sm:$0xff]  ;;  %564 = vmatpush.bf16.msra.mxu2 %v1087_v21  ;;  %vm697_vm4 = vcmask 1043456   ;;  %vm608_vm5 = vcmask 15360   ;;  %vm902_vm6 = vcmask 254976   ;;  %vm941_vm11 = vcmask 253952  }
  0x16   : > { %v1387_v4 = vld [vmem:[%s455_s15] sm:$0x1]  ;;  %s461_s28 = scalar_lea.vmem %s1489_s12, %s1492_s25 }
  0x17   : > { %496 = vmatpush.bf16.msra.mxu0 %v1082_v2  ;;  %v464_v5 = vld [vmem:[%s458_s18] sm:$0x1] }
  0x18   : > { %532 = vmatpush.bf16.msra.mxu1 %v1084_v3  ;;  %v1086_v22 = vld [vmem:[%s1481_s4] sm:$0xff] }
  0x19   : > { %565 = vmatpush.bf16.msra.mxu2 %v1086_v22  ;;  %v1133_v43 = vld [vmem:[%s1485_s8] ss:$0 sm:$0xff]  ;;  %v1074_v22 = vld [vmem:[%s1482_s5 + $0x8] sm:$0xf] }
  0x1a   : > { %1046 = vmatmul.msk.bf16.vlgmr.msra.gmra.mxu0 %vm485_vm0, %v1387_v4  ;;  %v630_v51 = vld [vmem:[%s1482_s5] sm:$0xf] }
  0x1b   : > { %1055 = vmatmul.msk.bf16.vlgmr.msra.gmra.mxu1 %vm485_vm0, %v464_v5  ;;  %v718_v53 = vsel %vm697_vm4, %v630_v51, 0 }
  0x1c   : > { %1064 = vmatmul.msk.bf16.vlgmr.msra.gmra.mxu2 %vm485_vm0, %v464_v5 }
  0x97   : > { %v498_v7 = vpop.f32.mrf.mxu0 }
  0x98   : > { %v534_v8 = vpop.f32.mrf.mxu1  ;;  %v499_v12 = vadd.f32 %v1131_v9, %v498_v7 }
  0x99   : > { %v535_v10 = vadd.f32 %v1132_v6, %v534_v8 }
  0x9a   : > { %v571_v16 = vpack.c.bf16 %v499_v12, %v499_v12 }
  0x9b   : > { %v572_v11 = vpack.c.bf16 %v535_v10, %v535_v10 }
  0x9d   : > { %735 = vrot.lane.b32.xlu2 %v572_v11, %s1266_s24  ;;  %635 = vrot.lane.b32.xlu1 %v572_v11, %s1267_s26  ;;  %v579_v13 = vsel %vm574_vm1, %v572_v11, 0 }
  0x9e   : > { %588 = vmatpush.bf16.xpose.msra.mxu3 %v579_v13 }
  0x9f   : > { %v500_v14 = vpop.f32.mrf.mxu0  ;;  %v567_v42 = vpop.f32.mrf.mxu2 }
  0xa0   : > { %v536_v15 = vpop.f32.mrf.mxu1  ;;  %v568_v44 = vadd.f32 %v1133_v43, %v567_v42 }
  0xa2   : > { %v1424_v46 = vpack.c.bf16 %v568_v44, %v568_v44 }
  0xa4   : > { %v614_v47 = vsel %vm612_vm3, %v1424_v46, 0 }
  0xa5   : > { %733 = vrot.lane.b32.xlu2 %v571_v16, %s1266_s24  ;;  %632 = vrot.lane.b32.xlu1 %v571_v16, %s1267_s26 }
  0xa6   : > { %1065 = vmatmul.msk.bf16.vlgmr.msra.gmra.mxu3 %vm574_vm1, %v571_v16  ;;  %623 = vmatpush.bf16.msrb.mxu0 %v614_v47 }
  0xa7   : > { %v569_v45 = vpop.f32.mrf.mxu2 }
  0xaa   : > { %727 = vmatpush.bf16.msra.mxu0 %v718_v53  ;;  %v1078_v53 = vld [vmem:[%s1482_s5 + $0xc] sm:$0xf] }
  0xad   : > { %813 = vrot.lane.b32.xlu1 %v571_v16, %s1268_s27 }
  0xf7   : > { %v736_v17 = vpop.permute.xlu2 %735 }
  0xf8   : > { %v741_v20 = vsel %vm574_vm1, %v736_v17, 0 }
  0xff   : > { %v734_v24 = vpop.permute.xlu2 %733 }
 0x10f   : > { %v636_v18 = vpop.permute.xlu1 %635 }
 0x110   : > { %v641_v19 = vsel %vm574_vm1, %v636_v18, 0 }
 0x111   : > { %650 = vmatpush.bf16.xpose.msrb.mxu1 %v641_v19  ;;  %v1069_v19 = vld [vmem:[%s1482_s5 + $0x4] sm:$0xf] }
 0x117   : > { %v633_v23 = vpop.permute.xlu1 %632 }
 0x118   : > { %1067 = vmatmul.msk.bf16.vlgmr.msrb.gmra.mxu1 %vm574_vm1, %v633_v23 }
 0x119   : > { %750 = vmatpush.bf16.xpose.msra.mxu1 %v741_v20  ;;  %v699_v20 = vsel %vm697_vm4, %v1069_v19, 0 }
 0x11a   : > { %708 = vmatpush.bf16.msrb.mxu3 %v699_v20 }
 0x11f   : > { %v814_v52 = vpop.permute.xlu1 %813 }
 0x128   : > { %1072 = vmatmul.msk.bf16.vlgmr.msra.gmra.mxu1 %vm574_vm1, %v734_v24  ;;  %v797_v24 = vsel %vm697_vm4, %v1074_v22, 0  ;;  %v1135_v22 = vld [vmem:[#allocation4] ss:$0 sm:$0xff] }
 0x129   : > { %v590_v25 = vpop.f32.mrf.mxu3  ;;  %806 = vmatpush.bf16.msra.mxu3 %v797_v24  ;;  %v1136_v24 = vld [vmem:[#allocation6] ss:$0 sm:$0xff] }
 0x12a   : > { %v594_v26 = vmul.f32 0.35355338, %v590_v25 }
 0x12c   : > { %v596_v27 = vsel %vm595_vm2, %v594_v26, -inf }
 0x12d   : > { %597 = vmax.xlane.f32.xlu0 %v596_v27 }
 0x131   : > { %v592_v28 = vpop.f32.mrf.mxu3 }
 0x195   : > { %v652_v29 = vpop.f32.mrf.mxu1 }
 0x196   : > { %v656_v30 = vmul.f32 0.35355338, %v652_v29 }
 0x198   : > { %v657_v31 = vsel %vm595_vm2, %v656_v30, -inf }
 0x199   : > { %658 = vmax.xlane.f32.xlu2 %v657_v31 }
 0x19d   : > { %v654_v32 = vpop.f32.mrf.mxu1 }
 0x1a0   : > { %v598_v33 = vpop.xlane.xlu0 %597 }
 0x1a1   : > { %v599_v34 = vsub.f32 %v594_v26, %v598_v33 }
 0x1a3   : > { %v600_v35 = vmul.f32 1.442695, %v599_v34 }
 0x1a5   : > { %1137 = vpow2.f32 %v600_v35  ;;  %v752_v36 = vpop.f32.mrf.mxu1 }
 0x1a6   : > { %v756_v37 = vmul.f32 0.35355338, %v752_v36 }
 0x1a8   : > { %v757_v38 = vsel %vm595_vm2, %v756_v37, -inf }
 0x1a9   : > { %758 = vmax.xlane.f32.xlu1 %v757_v38 }
 0x1ab   : > { %v1138_v39 = vpop.eup %1137 }
 0x1ac   : > { %v602_v40 = vsel %vm595_vm2, %v1138_v39, 0.0 }
 0x1ad   : > { %603 = vadd.xlane.f32.xlu0 %v602_v40  ;;  %v754_v41 = vpop.f32.mrf.mxu1 }
 0x1c1   : > { %815 = vrot.lane.b32.xlu0 %v572_v11, %s1268_s27 }
 0x20c   : > { %v659_v48 = vpop.xlane.xlu2 %658 }
 0x20d   : > { %v660_v49 = vsub.f32 %v656_v30, %v659_v48 }
 0x20f   : > { %v661_v50 = vmul.f32 1.442695, %v660_v49 }
 0x211   : > { %1139 = vpow2.f32 %v661_v50 }
 0x217   : > { %v1140_v54 = vpop.eup %1139 }
 0x218   : > { %v663_v55 = vsel %vm595_vm2, %v1140_v54, 0.0 }
 0x219   : > { %664 = vadd.xlane.f32.xlu2 %v663_v55 }
 0x21c   : > { %v759_v56 = vpop.xlane.xlu1 %758 }
 0x21d   : > { %v760_v57 = vsub.f32 %v756_v37, %v759_v56 }
 0x21f   : > { %v761_v58 = vmul.f32 1.442695, %v760_v57  ;;  %v893_v57 = vunpack.c.l.bf16 %v1387_v4 }
 0x220   : > { %v604_v59 = vpop.xlane.xlu0 %603 }
 0x221   : > { %1141 = vpow2.f32 %v761_v58 }
 0x222   : > { %1143 = vrcp.f32 %v604_v59 }
 0x227   : > { %v1142_v60 = vpop.eup %1141 }
 0x228   : > { %v1144_v61 = vpop.eup %1143  ;;  %v763_v62 = vsel %vm595_vm2, %v1142_v60, 0.0 }
 0x229   : > { %v606_v63 = vmul.f32 %v1144_v61, %v1138_v39  ;;  %764 = vadd.xlane.f32.xlu1 %v763_v62 }
 0x22b   : > { %v607_v0 = vpack.c.bf16 %v606_v63, %v606_v63 }
 0x22d   : > { %1066 = vmatmul.msk.bf16.vlgmr.msrb.gmra.mxu0 %vm608_vm5, %v607_v0 }
 0x231   : > { %670 = vrot.lane.b32.xlu2 %v1424_v46, %s1267_s26 }
 0x233   : > { %v816_v1 = vpop.permute.xlu0 %815 }
 0x234   : > { %v821_v2 = vsel %vm574_vm1, %v816_v1, 0  ;;  %v1269_v1 = vmov 32.0  }
 0x235   : > { %830 = vmatpush.bf16.xpose.msrb.mxu0 %v821_v2 }
 0x242   : > { %769 = vrot.lane.b32.xlu1 %v1424_v46, %s1266_s24 }
 0x28c   : > { %v665_v3 = vpop.xlane.xlu2 %664 }
 0x28d   : > { %1145 = vrcp.f32 %v665_v3 }
 0x293   : > { %v1146_v5 = vpop.eup %1145 }
 0x294   : > { %v667_v6 = vmul.f32 %v1146_v5, %v1140_v54  ;;  %v671_v7 = vpop.permute.xlu2 %670  ;;  %v877_v54 = vsel %vm697_vm4, %v1078_v53, 0 }
 0x295   : > { %v676_v8 = vsel %vm612_vm3, %v671_v7, 0 }
 0x296   : > { %685 = vmatpush.bf16.msrb.mxu2 %v676_v8  ;;  %v668_v9 = vpack.c.bf16 %v667_v6, %v667_v6 }
 0x299   : > { %1068 = vmatmul.msk.bf16.vlgmr.msrb.gmra.mxu2 %vm608_vm5, %v668_v9 }
 0x29c   : > { %v765_v10 = vpop.xlane.xlu1 %764 }
 0x29d   : > { %1147 = vrcp.f32 %v765_v10 }
 0x2a3   : > { %v1148_v13 = vpop.eup %1147 }
 0x2a4   : > { %v767_v15 = vmul.f32 %v1148_v13, %v1142_v60  ;;  %v1134_v60 = vld [vmem:[#allocation2] ss:$0 sm:$0xff] }
 0x2a6   : > { %v768_v18 = vpack.c.bf16 %v767_v15, %v767_v15 }
 0x2aa   : > { %v625_v11 = vpop.f32.mrf.mxu0 }
 0x2ab   : > { %v629_v12 = vpack.c.bf16 %v625_v11, %v625_v11 }
 0x2ad   : > { %1071 = vmatmul.msk.bf16.vlgmr.msra.gmra.mxu0 %vm574_vm1, %v629_v12 }
 0x2b2   : > { %v627_v14 = vpop.f32.mrf.mxu0 }
 0x2b4   : > { %v770_v16 = vpop.permute.xlu1 %769 }
 0x2b5   : > { %v775_v17 = vsel %vm612_vm3, %v770_v16, 0 }
 0x2b6   : > { %784 = vmatpush.bf16.msra.mxu2 %v775_v17 }
 0x2b9   : > { %1073 = vmatmul.msk.bf16.vlgmr.msra.gmra.mxu2 %vm608_vm5, %v768_v18 }
 0x2ba   : > { %886 = vmatpush.bf16.msrb.mxu2 %v877_v54 }
 0x2bd   : > { %1076 = vmatmul.msk.bf16.vlgmr.msrb.gmra.mxu0 %vm574_vm1, %v814_v52 }
 0x31c   : > { %v687_v21 = vpop.f32.mrf.mxu2 }
 0x31d   : > { %v691_v23 = vpack.c.bf16 %v687_v21, %v687_v21 }
 0x31f   : > { %1070 = vmatmul.msk.bf16.vlgmr.msrb.gmra.mxu3 %vm574_vm1, %v691_v23 }
 0x324   : > { %v689_v25 = vpop.f32.mrf.mxu2 }
 0x32a   : > { %v729_v26 = vpop.f32.mrf.mxu0 }
 0x332   : > { %v731_v27 = vpop.f32.mrf.mxu0 }
 0x33a   : > { %v832_v28 = vpop.f32.mrf.mxu0 }
 0x33b   : > { %v836_v29 = vmul.f32 0.35355338, %v832_v28 }
 0x33c   : > { %v786_v30 = vpop.f32.mrf.mxu2 }
 0x33d   : > { %v790_v31 = vpack.c.bf16 %v786_v30, %v786_v30  ;;  %v837_v32 = vsel %vm595_vm2, %v836_v29, -inf }
 0x33e   : > { %838 = vmax.xlane.f32.xlu0 %v837_v32 }
 0x33f   : > { %1075 = vmatmul.msk.bf16.vlgmr.msra.gmra.mxu3 %vm574_vm1, %v790_v31 }
 0x342   : > { %v834_v33 = vpop.f32.mrf.mxu0 }
 0x344   : > { %v788_v34 = vpop.f32.mrf.mxu2 }
 0x3a2   : > { %v710_v35 = vpop.f32.mrf.mxu3 }
 0x3a3   : > { %v730_v42 = vadd.f32 %v729_v26, %v710_v35 }
 0x3aa   : > { %v712_v36 = vpop.f32.mrf.mxu3 }
 0x3b1   : > { %v839_v37 = vpop.xlane.xlu0 %838 }
 0x3b2   : > { %v840_v38 = vsub.f32 %v836_v29, %v839_v37 }
 0x3b4   : > { %v841_v39 = vmul.f32 1.442695, %v840_v38 }
 0x3b6   : > { %1149 = vpow2.f32 %v841_v39 }
 0x3bc   : > { %v1150_v40 = vpop.eup %1149 }
 0x3bd   : > { %v843_v41 = vsel %vm595_vm2, %v1150_v40, 0.0 }
 0x3be   : > { %844 = vadd.xlane.f32.xlu0 %v843_v41 }
 0x3c2   : > { %v808_v43 = vpop.f32.mrf.mxu3 }
 0x3c3   : > { %v812_v44 = vadd.f32 %v808_v43, %v730_v42 }
 0x3ca   : > { %v810_v45 = vpop.f32.mrf.mxu3 }
 0x3d2   : > { %849 = vrot.lane.b32.xlu0 %v1424_v46, %s1268_s27 }
 0x431   : > { %v845_v47 = vpop.xlane.xlu0 %844 }
 0x432   : > { %1151 = vrcp.f32 %v845_v47 }
 0x433   : > { %1153 = vrcp.f32 %v1269_v1 }
 0x438   : > { %v1152_v48 = vpop.eup %1151 }
 0x439   : > { %v847_v49 = vmul.f32 %v1152_v48, %v1150_v40  ;;  %v1154_v2 = vpop.eup %1153 }
 0x43a   : > { %v907_v3 = vmul.f32 32.0, %v1154_v2  ;;  %vm911_vm7 = vweird.f32 %v1154_v2 }
 0x43b   : > { %v848_v52 = vpack.c.bf16 %v847_v49, %v847_v49 }
 0x43c   : > { %v908_v5 = vsub.f32 1.0, %v907_v3 }
 0x43e   : > { %v909_v6 = vmul.f32 %v1154_v2, %v908_v5 }
 0x440   : > { %v910_v7 = vadd.f32 %v1154_v2, %v909_v6 }
 0x442   : > { %v912_v8 = vsel %vm911_vm7, %v1154_v2, %v910_v7 }
 0x444   : > { %v850_v50 = vpop.permute.xlu0 %849 }
 0x445   : > { %v855_v51 = vsel %vm612_vm3, %v850_v50, 0 }
 0x446   : > { %864 = vmatpush.bf16.msrb.mxu1 %v855_v51 }
 0x449   : > { %1077 = vmatmul.msk.bf16.vlgmr.msrb.gmra.mxu1 %vm608_vm5, %v848_v52 }
 0x4c6   : > { %v866_v55 = vpop.f32.mrf.mxu1 }
 0x4c7   : > { %v870_v46 = vpack.c.bf16 %v866_v55, %v866_v55 }
 0x4c9   : > { %1079 = vmatmul.msk.bf16.vlgmr.msrb.gmra.mxu2 %vm574_vm1, %v870_v46 }
 0x4ce   : > { %v868_v56 = vpop.f32.mrf.mxu1 }
 0x54c   : > { %v888_v58 = vpop.f32.mrf.mxu2 }
 0x54d   : > { %v892_v59 = vadd.f32 %v888_v58, %v812_v44 }
 0x54f   : > { %v894_v61 = vadd.f32 %v893_v57, %v892_v59 }
 0x551   : > { %v899_v62 = vadd.f32 %v1134_v60, %v894_v61 }
 0x553   : > { %v903_v63 = vsel %vm902_vm6, %v899_v62, 0.0 }
 0x554   : > { %v890_v0 = vpop.f32.mrf.mxu2  ;;  %904 = vadd.xlane.f32.xlu2 %v903_v63 }
 0x5c7   : > { %v905_v4 = vpop.xlane.xlu2 %904 }
 0x5c8   : > { %v913_v9 = vmul.f32 %v912_v8, %v905_v4 }
 0x5ca   : > { %v914_v10 = vsub.f32 %v899_v62, %v913_v9 }
 0x5cc   : > { %v915_v11 = vmul.f32 %v914_v10, %v914_v10 }
 0x5ce   : > { %v916_v12 = vsel %vm902_vm6, %v915_v11, 0.0 }
 0x5cf   : > { %917 = vadd.xlane.f32.xlu1 %v916_v12 }
 0x642   : > { %v918_v13 = vpop.xlane.xlu1 %917 }
 0x643   : > { %v919_v14 = vmul.f32 %v918_v13, %v912_v8 }
 0x645   : > { %v920_v15 = vadd.f32 1e-05, %v919_v14 }
 0x647   : > { %1155 = vrsqrt.f32 %v920_v15  ;;  %vm927_vm9 = vweird.f32 %v920_v15 }
 0x64d   : > { %v1156_v16 = vpop.eup %1155 }
 0x64e   : > { %v922_v17 = vmul.f32 %v1156_v16, %v920_v15  ;;  %vm928_vm8 = vweird.f32 %v1156_v16 }
 0x64f   : > { %vm929_vm10 = vmor %vm927_vm9, %vm928_vm8 }
 0x650   : > { %v923_v18 = vmul.f32 %v1156_v16, %v922_v17 }
 0x652   : > { %v924_v19 = vmul.f32 0.5, %v923_v18 }
 0x654   : > { %v925_v20 = vsub.f32 1.5, %v924_v19 }
 0x656   : > { %v926_v21 = vmul.f32 %v1156_v16, %v925_v20 }
 0x658   : > { %v930_v23 = vsel %vm929_vm10, %v1156_v16, %v926_v21 }
 0x659   : > { %v931_v25 = vmul.f32 %v930_v23, %v914_v10 }
 0x65b   : > { %v935_v26 = vmul.f32 %v1135_v22, %v931_v25 }
 0x65d   : > { %v939_v27 = vadd.f32 %v1136_v24, %v935_v26 }
 0x65f   : > { %v940_v28 = vpack.c.bf16 %v939_v27, %v939_v27 }
 0x661   : > { %942 = vst.msk [vmem:[%s461_s28] sm:$0x1] %vm941_vm11, %v940_v28 }
 0x662 PF: > { %s24_s21 = sadd.s32 1, %s1261_s21  }
 0x663   : > { %p21_p7 = scmp.ge.s32.totalorder %s24_s21, 10  }
 0x665   :  { %23 = sbr.rel (!%p21_p7) target bundleno = 2 (0x2), region = 117 }
 0x66a   :  { %960 = vsyncpa [#allocation3], 1 }
 0x66b   :  { %962 = vsyncpa [#allocation3 + $0x1], 1 }
 0x66c   :  { %963 = vsyncpa [#allocation5], 1 }

// kernel: transformer_forward.13
= control target key start
LH: loop header
LB: loop body
LE: loop exit
PB: predicated region body
PF: predicated region fallthrough
CT: control target
= control target key end

     0   :  { %vm19_vm0 = vcmask 523264   ;;  %v105_v1 = vmov 0.0   ;;  %vm47_vm1 = vcmask 261120   ;;  %s150_s1 = inlined_call_operand.vmem [shape: bf16[32,64], index: 1, kind: input, shape index: {}]   ;;  %s151_s2 = inlined_call_operand.vmem [shape: f32[1,64], index: 2, kind: input, shape index: {}]   ;;  %s152_s0 = inlined_call_operand.vmem [shape: bf16[16,32], index: 0, kind: input, shape index: {}]   ;;  %s153_s3 = inlined_call_operand.vmem [shape: f32[16,64], index: 3, kind: output, shape index: {}]  }
   0x1   :  { %v102_v0 = vld [vmem:[%s150_s1 + $0x8] sm:$0xff]  ;;  %20 = vst.msk [vmem:[#allocation2] sm:$0xff] %vm19_vm0, %v105_v1  ;;  %v101_v2 = vld [vmem:[%s150_s1] sm:$0xff] }
   0x2   :  { %21 = vst.msk [vmem:[#allocation2 + $0x8] sm:$0xff] %vm19_vm0, %v105_v1  ;;  %57 = vmatpush.bf16.msra.mxu0 %v102_v0  ;;  %v100_v3 = vld [vmem:[%s152_s0] sm:$0xff] }
   0x3   :  { %v104_v8 = vld [vmem:[%s151_s2] ss:$0 sm:$0xff] }
   0x6   :  { %58 = vmatpush.bf16.msra.mxu0 %v101_v2 }
   0x8   :  { %v22_v4 = vld [vmem:[#allocation2] sm:$0xff] }
   0x9   :  { %99 = vmatmul.msk.bf16.vlgmr.msra.gmra.mxu0 %vm47_vm1, %v100_v3  ;;  %v23_v7 = vld [vmem:[#allocation2 + $0x8] sm:$0xff] }
  0x86   :  { %v60_v5 = vpop.f32.mrf.mxu0 }
  0x87   :  { %v65_v6 = vadd.f32 %v60_v5, %v22_v4 }
  0x89   :  { %68 = vst.msk [vmem:[#allocation2] sm:$0xff] %vm19_vm0, %v65_v6 }
  0x8e   :  { %v62_v9 = vpop.f32.mrf.mxu0 }
  0x8f   :  { %v66_v10 = vadd.f32 %v62_v9, %v23_v7 }
  0x90   :  { %v73_v11 = vld [vmem:[#allocation2] sm:$0xff] }
  0x91   :  { %v79_v12 = vadd.f32 %v104_v8, %v73_v11  ;;  %69 = vst.msk [vmem:[#allocation2 + $0x8] sm:$0xff] %vm19_vm0, %v66_v10 }
  0x93   :  { %81 = vst.msk [vmem:[%s153_s3] sm:$0xff] %vm19_vm0, %v79_v12 }
  0x98   :  { %v74_v13 = vld [vmem:[#allocation2 + $0x8] sm:$0xff] }
  0x99   :  { %v80_v14 = vadd.f32 %v104_v8, %v74_v13 }
  0x9b   :  { %82 = vst.msk [vmem:[%s153_s3 + $0x8] sm:$0xff] %vm19_vm0, %v80_v14 }

// kernel: transformer_forward.11
= control target key start
LH: loop header
LB: loop body
LE: loop exit
PB: predicated region body
PF: predicated region fallthrough
CT: control target
= control target key end

     0   :  { %s1650_s0 = inlined_call_operand.vmem [shape: bf16[8,2,32], index: 0, kind: input, shape index: {}]   ;;  %s1651_s1 = inlined_call_operand.vmem [shape: bf16[8,4,32], index: 1, kind: input, shape index: {}]   ;;  %s1652_s2 = inlined_call_operand.vmem [shape: bf16[32,32], index: 2, kind: input, shape index: {}]   ;;  %s1653_s3 = inlined_call_operand.vmem [shape: bf16[32,32], index: 3, kind: input, shape index: {}]   ;;  %s1654_s4 = inlined_call_operand.vmem [shape: bf16[32,32], index: 4, kind: input, shape index: {}]   ;;  %s1655_s5 = inlined_call_operand.vmem [shape: bf16[4,8,32], index: 5, kind: input, shape index: {}]   ;;  %s1656_s6 = inlined_call_operand.vmem [shape: f32[1,32], index: 6, kind: input, shape index: {}]   ;;  %s1657_s7 = inlined_call_operand.hbm [shape: f32[1,32], index: 7, kind: input, shape index: {}]   ;;  %s1658_s8 = inlined_call_operand.hbm [shape: f32[1,32], index: 8, kind: input, shape index: {}]   ;;  %s1659_s9 = inlined_call_operand.hbm [shape: f32[1,32], index: 9, kind: input, shape index: {}]   ;;  %s1660_s10 = inlined_call_operand.hbm [shape: f32[1,32], index: 10, kind: input, shape index: {}]   ;;  %s1661_s11 = inlined_call_operand.hbm [shape: f32[1,32], index: 11, kind: input, shape index: {}]   ;;  %s1662_s12 = inlined_call_operand.vmem [shape: bf16[8,2,32], index: 12, kind: output, shape index: {}]  }
   0x1   :  { %1663 = sst [smem:[#allocation13_spill]] %s1657_s7 }
   0x2   :  { %17 = vsyncpa [#allocation3], 0 }
   0x3   :  { %18 = vsyncpa [#allocation5], 0 }
   0x4   :  { %19 = vsyncpa [#allocation8], 0  ;;  %s1480_s21 = smov 0  }
   0x5 LB: > { %s357_s24 = sshll.u32 %s1658_s8, 4  ;;  %s1489_s25 = sadd.s32 4294967295, %s1404_s21   ;;  %s1404_s21 = sphi %s1480_s21, %s25_s21   ;;  %s358_s24 = int_to_ptr.hbm [resolvable:$true] %s357_s24 }
   0x6   : > { %p1083_p0 = scmp.ge.s32.totalorder %s1404_s21, 1  ;;  %p318_p1 = scmp.lt.s32.totalorder %s1404_s21, 9 }
   0x7   : > { %p1183_p2 = scmp.eq.s32.totalorder %s1489_s25, 0  ;;  %s1406_s27 = smov [#allocation4]  }
   0x8   : > { %p1494_p3 = pnand %p1083_p0, %p318_p1  ;;  %s359_s28 = sshll.u32 %s1406_s27, 4  ;;  %s360_s28 = int_to_ptr.vmem [resolvable:$true] %s359_s28 }
   0x9   : > { %s381_s13 = sshll.u32 %s1660_s10, 4  ;;  %s1665_s7 = sld [smem:[#allocation13_spill]]  ;;  %s382_s13 = int_to_ptr.hbm [resolvable:$true] %s381_s13 }
   0xa   : > { %p1167_p4 = pneg %p1494_p3  ;;  %s1407_s18 = smov [#allocation7]  }
   0xb   : > { %s383_s19 = sshll.u32 %s1407_s18, 4  ;;  %s1408_s20 = smov [#allocation2]   ;;  %s384_s19 = int_to_ptr.vmem [resolvable:$true] %s383_s19 }
   0xc   : > { %p1508_p5 = pnand %p1183_p2, %p1167_p4  ;;  %s347_s22 = sshll.u32 %s1408_s20, 4  ;;  %s348_s22 = int_to_ptr.vmem [resolvable:$true] %s347_s22 }
   0xd   : > { %s369_s29 = sshll.u32 %s1659_s9, 4  ;;  %s393_s15 = sshll.u32 %s1661_s11, 4  ;;  %s370_s29 = int_to_ptr.hbm [resolvable:$true] %s369_s29  ;;  %s394_s15 = int_to_ptr.hbm [resolvable:$true] %s393_s15 }
   0xe   : > { %1173 = dma.hbm_to_vmem [thread:$0]  (!%p1508_p5), %s358_s24, 16, %s360_s28, [#allocation5]  }
   0xf   : > { %s345_s16 = sshll.u32 %s1665_s7, 4  ;;  %s1409_s18 = smov [#allocation6]   ;;  %s346_s16 = int_to_ptr.hbm [resolvable:$true] %s345_s16 }
  0x10   : > { %1179 = dma.hbm_to_vmem [thread:$0]  (!%p1508_p5), %s382_s13, 16, %s384_s19, [#allocation8]  }
  0x11   : > { %1170 = dma.hbm_to_vmem [thread:$0]  (!%p1508_p5), %s346_s16, 16, %s348_s22, [#allocation3]  }
  0x12   : > { %s371_s7 = sshll.u32 %s1409_s18, 4  ;;  %s1410_s24 = smov [#allocation9]   ;;  %s372_s7 = int_to_ptr.vmem [resolvable:$true] %s371_s7 }
  0x13   : > { %1176 = dma.hbm_to_vmem [thread:$0]  (!%p1508_p5), %s370_s29, 16, %s372_s7, [#allocation5]  }
  0x14   : > { %s395_s28 = sshll.u32 %s1410_s24, 4  ;;  %421 = sbr.rel (%p1494_p3) target bundleno = 1646 (0x66e), region = 68  ;;  %s396_s28 = int_to_ptr.vmem [resolvable:$true] %s395_s28 }
  0x15   : > { %1182 = dma.hbm_to_vmem [thread:$0]  (!%p1508_p5), %s394_s15, 16, %s396_s28, [#allocation8]  }
  0x19   : > { %1391 = dma.done.wait (%p1183_p2), [#allocation3], 16  }
  0x1a   : > { %1393 = vsyncadd (%p1183_p2), [#allocation3], 4294967280 }
  0x1b   : > { %1395 = dma.done.wait (%p1183_p2), [#allocation5], 32  }
  0x1c   : > { %1397 = vsyncadd (%p1183_p2), [#allocation5], 4294967264 }
  0x1d   : > { %1399 = dma.done.wait (%p1183_p2), [#allocation8], 32  }
  0x1e   : > { %1401 = vsyncadd (%p1183_p2), [#allocation8], 4294967264  ;;  %p484_p6 = scmp.lt.s32.totalorder %s1489_s25, 7  ;;  %v1142_v0 = vld [vmem:[%s1652_s2 + $0x8] sm:$0xff]  ;;  %v1141_v2 = vld [vmem:[%s1652_s2] sm:$0xff]  ;;  %vm517_vm0 = vcmask 261120  }
  0x1f   : > { %v1144_v1 = vld [vmem:[%s1653_s3 + $0x8] sm:$0xff]  ;;  %527 = vmatpush.bf16.msra.mxu0 %v1142_v0  ;;  %v1143_v3 = vld [vmem:[%s1653_s3] sm:$0xff]  ;;  %vm606_vm1 = vcmask 64512   ;;  %s1411_s7 = smov 112   ;;  %s1412_s26 = smov 120   ;;  %vm627_vm2 = vcmask 25600  }
  0x20   : > { %s1668_s25 = smov (!%p484_p6, %s1489_s25), 7  ;;  %563 = vmatpush.bf16.msra.mxu1 %v1144_v1  ;;  %v1211_v6 = vld [vmem:[#allocation2] ss:$0 sm:$0xff]  ;;  %s1413_s13 = smov 104   ;;  %v1146_v21 = vld [vmem:[%s1654_s4 + $0x8] sm:$0xff]  ;;  %vm644_vm3 = vcmask 1041408  }
  0x21   : > { %s1096_s17 = sshll.u32 %s1668_s25, 1  ;;  %s486_s30 = scalar_lea.vmem %s1650_s0, %s1668_s25  ;;  %v1210_v9 = vld [vmem:[%s1656_s6] ss:$0 sm:$0xff]  ;;  %596 = vmatpush.bf16.msra.mxu2 %v1146_v21  ;;  %v1212_v43 = vld [vmem:[#allocation4] ss:$0 sm:$0xff]  ;;  %vm729_vm4 = vcmask 1043456  }
  0x22   : > { %s490_s18 = scalar_lea.vmem %s1651_s1, %s1096_s17  ;;  %v1566_v4 = vld [vmem:[%s486_s30] sm:$0x1]  ;;  %vm640_vm5 = vcmask 31744   ;;  %vm934_vm6 = vcmask 254976   ;;  %vm973_vm11 = vcmask 253952  }
  0x23   : > { %528 = vmatpush.bf16.msra.mxu0 %v1141_v2  ;;  %v496_v5 = vld [vmem:[%s490_s18] sm:$0x3] }
  0x24   : > { %564 = vmatpush.bf16.msra.mxu1 %v1143_v3  ;;  %v1145_v22 = vld [vmem:[%s1654_s4] sm:$0xff] }
  0x25   : > { %597 = vmatpush.bf16.msra.mxu2 %v1145_v22  ;;  %v662_v51 = vld [vmem:[%s1655_s5] sm:$0xf]  ;;  %v1133_v22 = vld [vmem:[%s1655_s5 + $0x8] sm:$0xf] }
  0x26   : > { %1105 = vmatmul.msk.bf16.vlgmr.msra.gmra.mxu0 %vm517_vm0, %v1566_v4  ;;  %v750_v53 = vsel %vm729_vm4, %v662_v51, 0 }
  0x27   : > { %1114 = vmatmul.msk.bf16.vlgmr.msra.gmra.mxu1 %vm517_vm0, %v496_v5 }
  0x28   : > { %1123 = vmatmul.msk.bf16.vlgmr.msra.gmra.mxu2 %vm517_vm0, %v496_v5 }
  0xa3   : > { %v530_v7 = vpop.f32.mrf.mxu0 }
  0xa4   : > { %v566_v8 = vpop.f32.mrf.mxu1  ;;  %v531_v12 = vadd.f32 %v1210_v9, %v530_v7 }
  0xa5   : > { %v567_v10 = vadd.f32 %v1211_v6, %v566_v8 }
  0xa6   : > { %v603_v16 = vpack.c.bf16 %v531_v12, %v531_v12 }
  0xa7   : > { %v604_v11 = vpack.c.bf16 %v567_v10, %v567_v10 }
  0xa9   : > { %767 = vrot.lane.b32.xlu2 %v604_v11, %s1411_s7  ;;  %667 = vrot.lane.b32.xlu1 %v604_v11, %s1412_s26  ;;  %v611_v13 = vsel %vm606_vm1, %v604_v11, 0 }
  0xaa   : > { %620 = vmatpush.bf16.xpose.msra.mxu3 %v611_v13 }
  0xab   : > { %v532_v14 = vpop.f32.mrf.mxu0  ;;  %v599_v42 = vpop.f32.mrf.mxu2 }
  0xac   : > { %v568_v15 = vpop.f32.mrf.mxu1  ;;  %v600_v44 = vadd.f32 %v1212_v43, %v599_v42 }
  0xae   : > { %v1597_v46 = vpack.c.bf16 %v600_v44, %v600_v44 }
  0xb0   : > { %v646_v47 = vsel %vm644_vm3, %v1597_v46, 0 }
  0xb1   : > { %765 = vrot.lane.b32.xlu2 %v603_v16, %s1411_s7  ;;  %664 = vrot.lane.b32.xlu1 %v603_v16, %s1412_s26 }
  0xb2   : > { %1124 = vmatmul.msk.bf16.vlgmr.msra.gmra.mxu3 %vm606_vm1, %v603_v16  ;;  %655 = vmatpush.bf16.msrb.mxu0 %v646_v47 }
  0xb3   : > { %v601_v45 = vpop.f32.mrf.mxu2 }
  0xb6   : > { %759 = vmatpush.bf16.msra.mxu0 %v750_v53  ;;  %v1137_v53 = vld [vmem:[%s1655_s5 + $0xc] sm:$0xf] }
  0xb9   : > { %845 = vrot.lane.b32.xlu1 %v603_v16, %s1413_s13 }
 0x103   : > { %v768_v17 = vpop.permute.xlu2 %767 }
 0x104   : > { %v773_v20 = vsel %vm606_vm1, %v768_v17, 0 }
 0x10b   : > { %v766_v24 = vpop.permute.xlu2 %765 }
 0x11b   : > { %v668_v18 = vpop.permute.xlu1 %667 }
 0x11c   : > { %v673_v19 = vsel %vm606_vm1, %v668_v18, 0 }
 0x11d   : > { %682 = vmatpush.bf16.xpose.msrb.mxu1 %v673_v19  ;;  %v1128_v19 = vld [vmem:[%s1655_s5 + $0x4] sm:$0xf] }
 0x123   : > { %v665_v23 = vpop.permute.xlu1 %664 }
 0x124   : > { %1126 = vmatmul.msk.bf16.vlgmr.msrb.gmra.mxu1 %vm606_vm1, %v665_v23 }
 0x125   : > { %782 = vmatpush.bf16.xpose.msra.mxu1 %v773_v20  ;;  %v731_v20 = vsel %vm729_vm4, %v1128_v19, 0 }
 0x126   : > { %740 = vmatpush.bf16.msrb.mxu3 %v731_v20 }
 0x12b   : > { %v846_v52 = vpop.permute.xlu1 %845 }
 0x134   : > { %1131 = vmatmul.msk.bf16.vlgmr.msra.gmra.mxu1 %vm606_vm1, %v766_v24  ;;  %v829_v24 = vsel %vm729_vm4, %v1133_v22, 0  ;;  %v1214_v22 = vld [vmem:[#allocation7] ss:$0 sm:$0xff] }
 0x135   : > { %v622_v25 = vpop.f32.mrf.mxu3  ;;  %838 = vmatpush.bf16.msra.mxu3 %v829_v24  ;;  %v1215_v24 = vld [vmem:[#allocation9] ss:$0 sm:$0xff] }
 0x136   : > { %v626_v26 = vmul.f32 0.35355338, %v622_v25 }
 0x138   : > { %v628_v27 = vsel %vm627_vm2, %v626_v26, -inf }
 0x139   : > { %629 = vmax.xlane.f32.xlu0 %v628_v27 }
 0x13d   : > { %v624_v28 = vpop.f32.mrf.mxu3 }
 0x1a1   : > { %v684_v29 = vpop.f32.mrf.mxu1 }
 0x1a2   : > { %v688_v30 = vmul.f32 0.35355338, %v684_v29 }
 0x1a4   : > { %v689_v31 = vsel %vm627_vm2, %v688_v30, -inf }
 0x1a5   : > { %690 = vmax.xlane.f32.xlu2 %v689_v31 }
 0x1a9   : > { %v686_v32 = vpop.f32.mrf.mxu1 }
 0x1ac   : > { %v630_v33 = vpop.xlane.xlu0 %629 }
 0x1ad   : > { %v631_v34 = vsub.f32 %v626_v26, %v630_v33 }
 0x1af   : > { %v632_v35 = vmul.f32 1.442695, %v631_v34 }
 0x1b1   : > { %1216 = vpow2.f32 %v632_v35  ;;  %v784_v36 = vpop.f32.mrf.mxu1 }
 0x1b2   : > { %v788_v37 = vmul.f32 0.35355338, %v784_v36 }
 0x1b4   : > { %v789_v38 = vsel %vm627_vm2, %v788_v37, -inf }
 0x1b5   : > { %790 = vmax.xlane.f32.xlu1 %v789_v38 }
 0x1b7   : > { %v1217_v39 = vpop.eup %1216 }
 0x1b8   : > { %v634_v40 = vsel %vm627_vm2, %v1217_v39, 0.0 }
 0x1b9   : > { %635 = vadd.xlane.f32.xlu0 %v634_v40  ;;  %v786_v41 = vpop.f32.mrf.mxu1 }
 0x1cd   : > { %847 = vrot.lane.b32.xlu0 %v604_v11, %s1413_s13 }
 0x218   : > { %v691_v48 = vpop.xlane.xlu2 %690 }
 0x219   : > { %v692_v49 = vsub.f32 %v688_v30, %v691_v48 }
 0x21b   : > { %v693_v50 = vmul.f32 1.442695, %v692_v49 }
 0x21d   : > { %1218 = vpow2.f32 %v693_v50 }
 0x223   : > { %v1219_v54 = vpop.eup %1218 }
 0x224   : > { %v695_v55 = vsel %vm627_vm2, %v1219_v54, 0.0 }
 0x225   : > { %696 = vadd.xlane.f32.xlu2 %v695_v55 }
 0x228   : > { %v791_v56 = vpop.xlane.xlu1 %790 }
 0x229   : > { %v792_v57 = vsub.f32 %v788_v37, %v791_v56 }
 0x22b   : > { %v793_v58 = vmul.f32 1.442695, %v792_v57  ;;  %v925_v57 = vunpack.c.l.bf16 %v1566_v4 }
 0x22c   : > { %v636_v59 = vpop.xlane.xlu0 %635 }
 0x22d   : > { %1220 = vpow2.f32 %v793_v58 }
 0x22e   : > { %1222 = vrcp.f32 %v636_v59 }
 0x233   : > { %v1221_v60 = vpop.eup %1220 }
 0x234   : > { %v1223_v61 = vpop.eup %1222  ;;  %v795_v62 = vsel %vm627_vm2, %v1221_v60, 0.0 }
 0x235   : > { %v638_v63 = vmul.f32 %v1223_v61, %v1217_v39  ;;  %796 = vadd.xlane.f32.xlu1 %v795_v62 }
 0x237   : > { %v639_v0 = vpack.c.bf16 %v638_v63, %v638_v63 }
 0x239   : > { %1125 = vmatmul.msk.bf16.vlgmr.msrb.gmra.mxu0 %vm640_vm5, %v639_v0 }
 0x23d   : > { %702 = vrot.lane.b32.xlu2 %v1597_v46, %s1412_s26 }
 0x23f   : > { %v848_v1 = vpop.permute.xlu0 %847 }
 0x240   : > { %v853_v2 = vsel %vm606_vm1, %v848_v1, 0  ;;  %v1414_v1 = vmov 32.0  }
 0x241   : > { %862 = vmatpush.bf16.xpose.msrb.mxu0 %v853_v2 }
 0x24e   : > { %801 = vrot.lane.b32.xlu1 %v1597_v46, %s1411_s7  ;;  %s493_s7 = scalar_lea.vmem %s1662_s12, %s1668_s25 }
 0x298   : > { %v697_v3 = vpop.xlane.xlu2 %696 }
 0x299   : > { %1224 = vrcp.f32 %v697_v3 }
 0x29f   : > { %v1225_v5 = vpop.eup %1224 }
 0x2a0   : > { %v699_v6 = vmul.f32 %v1225_v5, %v1219_v54  ;;  %v703_v7 = vpop.permute.xlu2 %702  ;;  %v909_v54 = vsel %vm729_vm4, %v1137_v53, 0 }
 0x2a1   : > { %v708_v8 = vsel %vm644_vm3, %v703_v7, 0 }
 0x2a2   : > { %717 = vmatpush.bf16.msrb.mxu2 %v708_v8  ;;  %v700_v9 = vpack.c.bf16 %v699_v6, %v699_v6 }
 0x2a5   : > { %1127 = vmatmul.msk.bf16.vlgmr.msrb.gmra.mxu2 %vm640_vm5, %v700_v9 }
 0x2a8   : > { %v797_v10 = vpop.xlane.xlu1 %796 }
 0x2a9   : > { %1226 = vrcp.f32 %v797_v10 }
 0x2af   : > { %v1227_v13 = vpop.eup %1226 }
 0x2b0   : > { %v799_v15 = vmul.f32 %v1227_v13, %v1221_v60  ;;  %v1213_v60 = vld [vmem:[#allocation6] ss:$0 sm:$0xff] }
 0x2b2   : > { %v800_v18 = vpack.c.bf16 %v799_v15, %v799_v15 }
 0x2b6   : > { %v657_v11 = vpop.f32.mrf.mxu0 }
 0x2b7   : > { %v661_v12 = vpack.c.bf16 %v657_v11, %v657_v11 }
 0x2b9   : > { %1130 = vmatmul.msk.bf16.vlgmr.msra.gmra.mxu0 %vm606_vm1, %v661_v12 }
 0x2be   : > { %v659_v14 = vpop.f32.mrf.mxu0 }
 0x2c0   : > { %v802_v16 = vpop.permute.xlu1 %801 }
 0x2c1   : > { %v807_v17 = vsel %vm644_vm3, %v802_v16, 0 }
 0x2c2   : > { %816 = vmatpush.bf16.msra.mxu2 %v807_v17 }
 0x2c5   : > { %1132 = vmatmul.msk.bf16.vlgmr.msra.gmra.mxu2 %vm640_vm5, %v800_v18 }
 0x2c6   : > { %918 = vmatpush.bf16.msrb.mxu2 %v909_v54 }
 0x2c9   : > { %1135 = vmatmul.msk.bf16.vlgmr.msrb.gmra.mxu0 %vm606_vm1, %v846_v52 }
 0x328   : > { %v719_v21 = vpop.f32.mrf.mxu2 }
 0x329   : > { %v723_v23 = vpack.c.bf16 %v719_v21, %v719_v21 }
 0x32b   : > { %1129 = vmatmul.msk.bf16.vlgmr.msrb.gmra.mxu3 %vm606_vm1, %v723_v23 }
 0x330   : > { %v721_v25 = vpop.f32.mrf.mxu2 }
 0x336   : > { %v761_v26 = vpop.f32.mrf.mxu0 }
 0x33e   : > { %v763_v27 = vpop.f32.mrf.mxu0 }
 0x346   : > { %v864_v28 = vpop.f32.mrf.mxu0 }
 0x347   : > { %v868_v29 = vmul.f32 0.35355338, %v864_v28 }
 0x348   : > { %v818_v30 = vpop.f32.mrf.mxu2 }
 0x349   : > { %v822_v31 = vpack.c.bf16 %v818_v30, %v818_v30  ;;  %v869_v32 = vsel %vm627_vm2, %v868_v29, -inf }
 0x34a   : > { %870 = vmax.xlane.f32.xlu0 %v869_v32 }
 0x34b   : > { %1134 = vmatmul.msk.bf16.vlgmr.msra.gmra.mxu3 %vm606_vm1, %v822_v31 }
 0x34e   : > { %v866_v33 = vpop.f32.mrf.mxu0 }
 0x350   : > { %v820_v34 = vpop.f32.mrf.mxu2 }
 0x3ae   : > { %v742_v35 = vpop.f32.mrf.mxu3 }
 0x3af   : > { %v762_v42 = vadd.f32 %v761_v26, %v742_v35 }
 0x3b6   : > { %v744_v36 = vpop.f32.mrf.mxu3 }
 0x3bd   : > { %v871_v37 = vpop.xlane.xlu0 %870 }
 0x3be   : > { %v872_v38 = vsub.f32 %v868_v29, %v871_v37 }
 0x3c0   : > { %v873_v39 = vmul.f32 1.442695, %v872_v38 }
 0x3c2   : > { %1228 = vpow2.f32 %v873_v39 }
 0x3c8   : > { %v1229_v40 = vpop.eup %1228 }
 0x3c9   : > { %v875_v41 = vsel %vm627_vm2, %v1229_v40, 0.0 }
 0x3ca   : > { %876 = vadd.xlane.f32.xlu0 %v875_v41 }
 0x3ce   : > { %v840_v43 = vpop.f32.mrf.mxu3 }
 0x3cf   : > { %v844_v44 = vadd.f32 %v840_v43, %v762_v42 }
 0x3d6   : > { %v842_v45 = vpop.f32.mrf.mxu3 }
 0x3de   : > { %881 = vrot.lane.b32.xlu0 %v1597_v46, %s1413_s13 }
 0x43d   : > { %v877_v47 = vpop.xlane.xlu0 %876 }
 0x43e   : > { %1230 = vrcp.f32 %v877_v47 }
 0x43f   : > { %1232 = vrcp.f32 %v1414_v1 }
 0x444   : > { %v1231_v48 = vpop.eup %1230 }
 0x445   : > { %v879_v49 = vmul.f32 %v1231_v48, %v1229_v40  ;;  %v1233_v2 = vpop.eup %1232 }
 0x446   : > { %v939_v3 = vmul.f32 32.0, %v1233_v2  ;;  %vm943_vm7 = vweird.f32 %v1233_v2 }
 0x447   : > { %v880_v52 = vpack.c.bf16 %v879_v49, %v879_v49 }
 0x448   : > { %v940_v5 = vsub.f32 1.0, %v939_v3 }
 0x44a   : > { %v941_v6 = vmul.f32 %v1233_v2, %v940_v5 }
 0x44c   : > { %v942_v7 = vadd.f32 %v1233_v2, %v941_v6 }
 0x44e   : > { %v944_v8 = vsel %vm943_vm7, %v1233_v2, %v942_v7 }
 0x450   : > { %v882_v50 = vpop.permute.xlu0 %881 }
 0x451   : > { %v887_v51 = vsel %vm644_vm3, %v882_v50, 0 }
 0x452   : > { %896 = vmatpush.bf16.msrb.mxu1 %v887_v51 }
 0x455   : > { %1136 = vmatmul.msk.bf16.vlgmr.msrb.gmra.mxu1 %vm640_vm5, %v880_v52 }
 0x4d2   : > { %v898_v55 = vpop.f32.mrf.mxu1 }
 0x4d3   : > { %v902_v46 = vpack.c.bf16 %v898_v55, %v898_v55 }
 0x4d5   : > { %1138 = vmatmul.msk.bf16.vlgmr.msrb.gmra.mxu2 %vm606_vm1, %v902_v46 }
 0x4da   : > { %v900_v56 = vpop.f32.mrf.mxu1 }
 0x558   : > { %v920_v58 = vpop.f32.mrf.mxu2 }
 0x559   : > { %v924_v59 = vadd.f32 %v920_v58, %v844_v44 }
 0x55b   : > { %v926_v61 = vadd.f32 %v925_v57, %v924_v59 }
 0x55d   : > { %v931_v62 = vadd.f32 %v1213_v60, %v926_v61 }
 0x55f   : > { %v935_v63 = vsel %vm934_vm6, %v931_v62, 0.0 }
 0x560   : > { %v922_v0 = vpop.f32.mrf.mxu2  ;;  %936 = vadd.xlane.f32.xlu2 %v935_v63 }
 0x5d3   : > { %v937_v4 = vpop.xlane.xlu2 %936 }
 0x5d4   : > { %v945_v9 = vmul.f32 %v944_v8, %v937_v4 }
 0x5d6   : > { %v946_v10 = vsub.f32 %v931_v62, %v945_v9 }
 0x5d8   : > { %v947_v11 = vmul.f32 %v946_v10, %v946_v10 }
 0x5da   : > { %v948_v12 = vsel %vm934_vm6, %v947_v11, 0.0 }
 0x5db   : > { %949 = vadd.xlane.f32.xlu1 %v948_v12 }
 0x64e   : > { %v950_v13 = vpop.xlane.xlu1 %949 }
 0x64f   : > { %v951_v14 = vmul.f32 %v950_v13, %v944_v8 }
 0x651   : > { %v952_v15 = vadd.f32 1e-05, %v951_v14 }
 0x653   : > { %1234 = vrsqrt.f32 %v952_v15  ;;  %vm959_vm9 = vweird.f32 %v952_v15 }
 0x659   : > { %v1235_v16 = vpop.eup %1234 }
 0x65a   : > { %v954_v17 = vmul.f32 %v1235_v16, %v952_v15  ;;  %vm960_vm8 = vweird.f32 %v1235_v16 }
 0x65b   : > { %vm961_vm10 = vmor %vm959_vm9, %vm960_vm8 }
 0x65c   : > { %v955_v18 = vmul.f32 %v1235_v16, %v954_v17 }
 0x65e   : > { %v956_v19 = vmul.f32 0.5, %v955_v18 }
 0x660   : > { %v957_v20 = vsub.f32 1.5, %v956_v19 }
 0x662   : > { %v958_v21 = vmul.f32 %v1235_v16, %v957_v20 }
 0x664   : > { %v962_v23 = vsel %vm961_vm10, %v1235_v16, %v958_v21 }
 0x665   : > { %v963_v25 = vmul.f32 %v962_v23, %v946_v10 }
 0x667   : > { %v967_v26 = vmul.f32 %v1214_v22, %v963_v25 }
 0x669   : > { %v971_v27 = vadd.f32 %v1215_v24, %v967_v26 }
 0x66b   : > { %v972_v28 = vpack.c.bf16 %v971_v27, %v971_v27 }
 0x66d   : > { %974 = vst.msk [vmem:[%s493_s7] sm:$0x1] %vm973_vm11, %v972_v28 }
 0x66e PF: > { %s25_s21 = sadd.s32 1, %s1404_s21  }
 0x66f   : > { %p22_p7 = scmp.ge.s32.totalorder %s25_s21, 10  }
 0x671   :  { %24 = sbr.rel (!%p22_p7) target bundleno = 5 (0x5), region = 125 }
 0x676   :  { %992 = vsyncpa [#allocation3], 1 }
 0x677   :  { %994 = vsyncpa [#allocation3 + $0x1], 1 }
 0x678   :  { %995 = vsyncpa [#allocation5], 1 }
 0x679   :  { %996 = vsyncpa [#allocation8], 1 }

</bundles_post_ra>
